<compile_context>
chip_gen: v5e
topology: v5e:2x2
jax: 0.10.0
libtpu: 0.0.40
codegen_flags: <defaults>
</compile_context>

<pallas_src>
import functools
import math

import numpy as np
import jax
import jax.numpy as jnp
from jax.experimental import pallas as pl
from jax.experimental.pallas import tpu as pltpu


_NEG_INF = -1e30

_CONST_NAMES = (
    "pe_e", "pe_d",                               # positional encodings (tiled per batch)
    "mee", "med",                                 # per-batch averaging matrices
    "mask_enc", "mask_dec_self", "mask_cross",    # additive masks, tiled x H on key axis
    "hmask_e", "hmask_d",                         # head-lane masks for stacked K/V
    "segsum_e", "segsum_d",                       # block-diag ones for per-head softmax sums
)


# ------------------------------ fused kernel ---------------------------------

def _layer_norm(x, g, b, eps=1e-5):
    mu = jnp.mean(x, axis=-1, keepdims=True)
    var = jnp.mean((x - mu) * (x - mu), axis=-1, keepdims=True)
    return (x - mu) * jax.lax.rsqrt(var + eps) * g + b


def _informer_kernel(*refs, treedef, n_data, n_const, dims, window_norm):
    Le, C, D, H = dims
    E = D // H
    f32 = jnp.float32

    out_ref = refs[-1]
    data_refs = refs[:n_data]
    const_refs = refs[n_data:n_data + n_const]
    param_refs = list(refs[n_data + n_const:-1])
    assert len(param_refs) == treedef.num_leaves
    p = jax.tree_util.tree_unflatten(treedef, param_refs)

    (x_enc_cat_ref, x_dec_cat_ref, xmark_enc_ref, xmark_dec_ref) = data_refs
    (pe_e_ref, pe_d_ref, mee_ref, med_ref,
     mask_enc_ref, mask_dec_self_ref, mask_cross_ref,
     hmask_e_ref, hmask_d_ref, segsum_e_ref, segsum_d_ref) = const_refs

    x_enc_cat = x_enc_cat_ref[...]          # (Me, 3C) = [x_{t-1} | x_t | x_{t+1}]
    x_dec_cat = x_dec_cat_ref[...]          # (Md, 3C)

    # ---- window normalization (per-batch stats over the encoder window) ----
    # Computed directly on the concatenated slab: each C-column chunk is a
    # within-batch circular permutation of x_enc, so its per-batch mean/std
    # equal those of x_enc (stats come out naturally tiled along lanes).
    mean_out = None
    std_out = None
    if window_norm:
        corr = float(Le) / float(max(Le - 1, 1))      # torch std(unbiased=True)
        mee = mee_ref[...]
        med = med_ref[...]
        xsq = x_enc_cat * x_enc_cat
        mean_e = jnp.dot(mee, x_enc_cat, preferred_element_type=f32)
        var_e = jnp.maximum(jnp.dot(mee, xsq, preferred_element_type=f32)
                            - mean_e * mean_e, 0.0) * corr
        std_e = jnp.sqrt(var_e) + 1e-8
        mean_d = jnp.dot(med, x_enc_cat, preferred_element_type=f32)
        var_d = jnp.maximum(jnp.dot(med, xsq, preferred_element_type=f32)
                            - mean_d * mean_d, 0.0) * corr
        std_d = jnp.sqrt(var_d) + 1e-8
        x_enc_cat = (x_enc_cat - mean_e) * pl.reciprocal(std_e, approx=True)
        x_dec_cat = (x_dec_cat - mean_d) * pl.reciprocal(std_d, approx=True)
        mean_out = mean_d[:, :C]            # stats of any chunk == stats of x_enc
        std_out = std_d[:, :C]

    # ---- DataEmbedding: circular Conv1d(k=3) folded into one matmul + timeF + PE
    def embed(x_cat, xmark_ref, pe_ref, ep):
        val = jnp.dot(x_cat, ep["conv_w"][...], preferred_element_type=f32)
        temp = jnp.dot(xmark_ref[...], ep["temp_w"][...],
                       preferred_element_type=f32)
        return val + temp + pe_ref[...]

    # ---- batched-head dense attention (exact ProbSparse here: u >= L) ----
    scale = 1.0 / math.sqrt(E)

    def attention(q_in, kv_in, ap, mask_ref, hmask_ref, segsum_ref):
        q = jnp.dot(q_in, ap["wq"][...], preferred_element_type=f32) + ap["bq"][...]
        k = jnp.dot(kv_in, ap["wk"][...], preferred_element_type=f32) + ap["bk"][...]
        v = jnp.dot(kv_in, ap["wv"][...], preferred_element_type=f32) + ap["bv"][...]

        hmask = hmask_ref[...]                        # (H*Mk, D) head-lane mask
        k_heads = jnp.concatenate([k] * H, axis=0) * hmask
        v_heads = jnp.concatenate([v] * H, axis=0) * hmask

        # scores for all heads at once: block h = q_h @ k_h^T
        s = jax.lax.dot_general(q, k_heads, (((1,), (1,)), ((), ())),
                                preferred_element_type=f32) * scale
        s = s + mask_ref[...]                         # batch / causal mask (tiled x H)

        m = jnp.max(s, axis=-1, keepdims=True)        # global row shift (valid per head)
        e = jnp.exp(s - m)
        denom = jnp.dot(e, segsum_ref[...], preferred_element_type=f32)
        pr = e * pl.reciprocal(denom, approx=True)    # per-head softmax

        out = jnp.dot(pr, v_heads, preferred_element_type=f32)   # heads concat in lanes
        return jnp.dot(out, ap["wo"][...], preferred_element_type=f32) + ap["bo"][...]

    def ffn(x, lp):                                   # pointwise convs (k=1)
        y = jnp.dot(x, lp["w1"][...], preferred_element_type=f32) + lp["b1"][...]
        y = jnp.maximum(y, 0.0)                       # activation = relu
        return jnp.dot(y, lp["w2"][...], preferred_element_type=f32) + lp["b2"][...]

    # ---- encoder ----
    enc = embed(x_enc_cat, xmark_enc_ref, pe_e_ref, p["enc_emb"])
    for lp in p["enc_layers"]:
        enc = enc + attention(enc, enc, lp["attn"],
                              mask_enc_ref, hmask_e_ref, segsum_e_ref)
        enc = _layer_norm(enc, lp["norm1_g"][...], lp["norm1_b"][...])
        enc = _layer_norm(enc + ffn(enc, lp),
                          lp["norm2_g"][...], lp["norm2_b"][...])
    enc = _layer_norm(enc, p["enc_norm_g"][...], p["enc_norm_b"][...])

    # ---- decoder ----
    dec = embed(x_dec_cat, xmark_dec_ref, pe_d_ref, p["dec_emb"])
    for lp in p["dec_layers"]:
        dec = dec + attention(dec, dec, lp["self_attn"],
                              mask_dec_self_ref, hmask_d_ref, segsum_d_ref)
        dec = _layer_norm(dec, lp["norm1_g"][...], lp["norm1_b"][...])
        dec = dec + attention(dec, enc, lp["cross_attn"],
                              mask_cross_ref, hmask_e_ref, segsum_e_ref)
        dec = _layer_norm(dec, lp["norm2_g"][...], lp["norm2_b"][...])
        dec = _layer_norm(dec + ffn(dec, lp),
                          lp["norm3_g"][...], lp["norm3_b"][...])
    dec = _layer_norm(dec, p["dec_norm_g"][...], p["dec_norm_b"][...])

    out = jnp.dot(dec, p["proj_w"][...], preferred_element_type=f32) + p["proj_b"][...]
    if window_norm:
        out = out * std_out + mean_out                # de-normalize
    out_ref[...] = out


# ------------------------------ host wrapper ---------------------------------

def informer_forward(params, consts, x_enc, x_mark_enc, x_dec, x_mark_dec, *, cfg):
    B, Le, C = x_enc.shape
    Ld, Cd = x_dec.shape[1], x_dec.shape[2]
    D, H = cfg.d_model, cfg.n_heads
    Me, Md = B * Le, B * Ld
    n_mark = x_mark_enc.shape[-1]

    # Host-precompute the circular rolls for the k=3 token conv and concat
    # along channels -> the conv becomes a single (M, 3C) x (3C, D) matmul.
    def cat_roll(x):
        return jnp.concatenate(
            [jnp.roll(x, 1, axis=1), x, jnp.roll(x, -1, axis=1)], axis=-1)

    data = [cat_roll(x_enc).reshape(Me, 3 * C),
            cat_roll(x_dec).reshape(Md, 3 * Cd),
            x_mark_enc.reshape(Me, n_mark),
            x_mark_dec.reshape(Md, n_mark)]
    const_list = [consts[k] for k in _CONST_NAMES]
    flat_params, treedef = jax.tree_util.tree_flatten(params)
    inputs = data + const_list + flat_params

    kernel = functools.partial(
        _informer_kernel, treedef=treedef, n_data=len(data),
        n_const=len(const_list), dims=(Le, C, D, H),
        window_norm=(not cfg.scale))

    def full_spec(a):
        nd = a.ndim
        return pl.BlockSpec(a.shape, lambda i, _nd=nd: (0,) * _nd)

    out = pl.pallas_call(
        kernel,
        out_shape=jax.ShapeDtypeStruct((Md, cfg.c_out), jnp.float32),
        grid=(1,),
        in_specs=[full_spec(a) for a in inputs],
        out_specs=pl.BlockSpec((Md, cfg.c_out), lambda i: (0, 0)),
        compiler_params=pltpu.CompilerParams(
            dimension_semantics=("arbitrary",)),
    )(*inputs)

    return out.reshape(B, Ld, cfg.c_out)[:, -cfg.pred_len:, :]


def build_constants(cfg, B):
    """Small constant matrices consumed by the fused kernel."""
    Le = cfg.seq_len
    Ld = cfg.label_len + cfg.pred_len
    D, H = cfg.d_model, cfg.n_heads
    E = D // H
    Me, Md = B * Le, B * Ld

    be = np.arange(Me) // Le
    bd = np.arange(Md) // Ld
    td = np.arange(Md) % Ld

    # per-batch averaging over the encoder window
    mee = (be[:, None] == be[None, :]).astype(np.float32) / Le
    med = (bd[:, None] == be[None, :]).astype(np.float32) / Le

    # additive attention masks (batch separation; causal for decoder self-attn)
    mask_enc = np.where(be[:, None] == be[None, :], 0.0, _NEG_INF).astype(np.float32)
    mask_cross = np.where(bd[:, None] == be[None, :], 0.0, _NEG_INF).astype(np.float32)
    mask_dec_self = np.where(
        (bd[:, None] == bd[None, :]) & (td[None, :] <= td[:, None]),
        0.0, _NEG_INF).astype(np.float32)

    def head_lane_mask(Mk):                 # (H*Mk, D): row-block h keeps head-h lanes
        seg = np.arange(H * Mk) // Mk
        lane = np.arange(D)
        return ((lane[None, :] >= seg[:, None] * E)
                & (lane[None, :] < (seg[:, None] + 1) * E)).astype(np.float32)

    def seg_sum(Mk):                        # (H*Mk, H*Mk) block-diag ones
        seg = np.arange(H * Mk) // Mk
        return (seg[:, None] == seg[None, :]).astype(np.float32)

    def pe_table(L):
        pos = np.arange(L, dtype=np.float32)[:, None]
        div = np.exp(np.arange(0, D, 2, dtype=np.float32)
                     * (-math.log(10000.0) / D))
        pe = np.zeros((L, D), np.float32)
        pe[:, 0::2] = np.sin(pos * div)
        pe[:, 1::2] = np.cos(pos * div)
        return np.tile(pe, (B, 1))

    consts = dict(
        pe_e=pe_table(Le), pe_d=pe_table(Ld),
        mee=mee, med=med,
        mask_enc=np.tile(mask_enc, (1, H)),
        mask_dec_self=np.tile(mask_dec_self, (1, H)),
        mask_cross=np.tile(mask_cross, (1, H)),
        hmask_e=head_lane_mask(Me), hmask_d=head_lane_mask(Md),
        segsum_e=seg_sum(Me), segsum_d=seg_sum(Md),
    )
    return {k: jnp.asarray(v) for k, v in consts.items()}


# --------------------------------- config ------------------------------------

class Configs:
    seq_len = 8
    label_len = 4
    pred_len = 4
    enc_in = 4
    dec_in = 4
    c_out = 4
    d_model = 32
    n_heads = 4
    e_layers = 2
    d_layers = 1
    d_ff = 64
    factor = 5
    dropout = 0.0
    embed = "timeF"
    freq = "h"            # -> 4 time-feature columns
    activation = "relu"
    output_attention = False
    distil = False
    scale = False         # -> window_norm = True


def init_params(cfg, key):
    keys = iter(jax.random.split(key, 256))

    def nrm(shape, s=0.1):
        return s * jax.random.normal(next(keys), shape, dtype=jnp.float32)

    D, F = cfg.d_model, cfg.d_ff
    n_mark = 4  # freq == 'h'

    def attn_params():
        return {"wq": nrm((D, D)), "wk": nrm((D, D)), "wv": nrm((D, D)),
                "bq": nrm((1, D), 0.02), "bk": nrm((1, D), 0.02),
                "bv": nrm((1, D), 0.02),
                "wo": nrm((D, D)), "bo": nrm((1, D), 0.02)}

    def ffn_params():
        return {"w1": nrm((D, F)), "b1": nrm((1, F), 0.02),
                "w2": nrm((F, D)), "b2": nrm((1, D), 0.02)}

    def norms(n):
        d = {}
        for i in range(1, n + 1):
            d[f"norm{i}_g"] = jnp.ones((1, D), jnp.float32)
            d[f"norm{i}_b"] = jnp.zeros((1, D), jnp.float32)
        return d

    params = {
        # conv_w is the k=3 circular conv weight stacked to (3*C, D):
        # rows [0:C]->x_{t-1}, [C:2C]->x_t, [2C:3C]->x_{t+1}
        "enc_emb": {"conv_w": nrm((3 * cfg.enc_in, D)), "temp_w": nrm((n_mark, D))},
        "dec_emb": {"conv_w": nrm((3 * cfg.dec_in, D)), "temp_w": nrm((n_mark, D))},
        "enc_layers": [dict(attn=attn_params(), **ffn_params(), **norms(2))
                       for _ in range(cfg.e_layers)],
        "enc_norm_g": jnp.ones((1, D), jnp.float32),
        "enc_norm_b": jnp.zeros((1, D), jnp.float32),
        "dec_layers": [dict(self_attn=attn_params(), cross_attn=attn_params(),
                            **ffn_params(), **norms(3))
                       for _ in range(cfg.d_layers)],
        "dec_norm_g": jnp.ones((1, D), jnp.float32),
        "dec_norm_b": jnp.zeros((1, D), jnp.float32),
        "proj_w": nrm((D, cfg.c_out)),
        "proj_b": nrm((1, cfg.c_out), 0.02),
    }
    return params


# ----------------------------------- main -------------------------------------

if __name__ == "__main__":
    cfg = Configs()
    key = jax.random.PRNGKey(0)
    k1, k2, k3, k4, kp = jax.random.split(key, 5)

    B = 2
    dec_len = cfg.label_len + cfg.pred_len
    x_enc = jax.random.normal(k1, (B, cfg.seq_len, cfg.enc_in), jnp.float32)
    x_mark_enc = jax.random.normal(k2, (B, cfg.seq_len, 4), jnp.float32)
    x_dec = jax.random.normal(k3, (B, dec_len, cfg.dec_in), jnp.float32)
    x_mark_dec = jax.random.normal(k4, (B, dec_len, 4), jnp.float32)

    params = init_params(cfg, kp)
    consts = build_constants(cfg, B)

    fwd = jax.jit(functools.partial(informer_forward, cfg=cfg))
    out = fwd(params, consts, x_enc, x_mark_enc, x_dec, x_mark_dec)
    out = jax.block_until_ready(out)

    assert out.shape == (B, cfg.pred_len, cfg.c_out), out.shape
    assert bool(jnp.all(jnp.isfinite(out)))
    print("KERNEL_OK")
</pallas_src>

<mosaic_0001>
module attributes {stable_mosaic.version = 11 : i64} {
  func.func @_informer_kernel(%arg0: i32, %arg1: memref<16x12xf32, #tpu.memory_space<vmem>>, %arg2: memref<16x12xf32, #tpu.memory_space<vmem>>, %arg3: memref<16x4xf32, #tpu.memory_space<vmem>>, %arg4: memref<16x4xf32, #tpu.memory_space<vmem>>, %arg5: memref<16x32xf32, #tpu.memory_space<vmem>>, %arg6: memref<16x32xf32, #tpu.memory_space<vmem>>, %arg7: memref<16x16xf32, #tpu.memory_space<vmem>>, %arg8: memref<16x16xf32, #tpu.memory_space<vmem>>, %arg9: memref<16x64xf32, #tpu.memory_space<vmem>>, %arg10: memref<16x64xf32, #tpu.memory_space<vmem>>, %arg11: memref<16x64xf32, #tpu.memory_space<vmem>>, %arg12: memref<64x32xf32, #tpu.memory_space<vmem>>, %arg13: memref<64x32xf32, #tpu.memory_space<vmem>>, %arg14: memref<64x64xf32, #tpu.memory_space<vmem>>, %arg15: memref<64x64xf32, #tpu.memory_space<vmem>>, %arg16: memref<12x32xf32, #tpu.memory_space<vmem>>, %arg17: memref<4x32xf32, #tpu.memory_space<vmem>>, %arg18: memref<1x64xf32, #tpu.memory_space<vmem>>, %arg19: memref<1x32xf32, #tpu.memory_space<vmem>>, %arg20: memref<1x32xf32, #tpu.memory_space<vmem>>, %arg21: memref<1x32xf32, #tpu.memory_space<vmem>>, %arg22: memref<1x32xf32, #tpu.memory_space<vmem>>, %arg23: memref<1x32xf32, #tpu.memory_space<vmem>>, %arg24: memref<32x32xf32, #tpu.memory_space<vmem>>, %arg25: memref<32x32xf32, #tpu.memory_space<vmem>>, %arg26: memref<32x32xf32, #tpu.memory_space<vmem>>, %arg27: memref<32x32xf32, #tpu.memory_space<vmem>>, %arg28: memref<1x32xf32, #tpu.memory_space<vmem>>, %arg29: memref<1x32xf32, #tpu.memory_space<vmem>>, %arg30: memref<1x32xf32, #tpu.memory_space<vmem>>, %arg31: memref<1x32xf32, #tpu.memory_space<vmem>>, %arg32: memref<1x32xf32, #tpu.memory_space<vmem>>, %arg33: memref<1x32xf32, #tpu.memory_space<vmem>>, %arg34: memref<1x32xf32, #tpu.memory_space<vmem>>, %arg35: memref<1x32xf32, #tpu.memory_space<vmem>>, %arg36: memref<1x32xf32, #tpu.memory_space<vmem>>, %arg37: memref<1x32xf32, #tpu.memory_space<vmem>>, %arg38: memref<32x32xf32, #tpu.memory_space<vmem>>, %arg39: memref<32x32xf32, #tpu.memory_space<vmem>>, %arg40: memref<32x32xf32, #tpu.memory_space<vmem>>, %arg41: memref<32x32xf32, #tpu.memory_space<vmem>>, %arg42: memref<32x64xf32, #tpu.memory_space<vmem>>, %arg43: memref<64x32xf32, #tpu.memory_space<vmem>>, %arg44: memref<1x32xf32, #tpu.memory_space<vmem>>, %arg45: memref<1x32xf32, #tpu.memory_space<vmem>>, %arg46: memref<12x32xf32, #tpu.memory_space<vmem>>, %arg47: memref<4x32xf32, #tpu.memory_space<vmem>>, %arg48: memref<1x32xf32, #tpu.memory_space<vmem>>, %arg49: memref<1x32xf32, #tpu.memory_space<vmem>>, %arg50: memref<1x32xf32, #tpu.memory_space<vmem>>, %arg51: memref<1x32xf32, #tpu.memory_space<vmem>>, %arg52: memref<32x32xf32, #tpu.memory_space<vmem>>, %arg53: memref<32x32xf32, #tpu.memory_space<vmem>>, %arg54: memref<32x32xf32, #tpu.memory_space<vmem>>, %arg55: memref<32x32xf32, #tpu.memory_space<vmem>>, %arg56: memref<1x64xf32, #tpu.memory_space<vmem>>, %arg57: memref<1x32xf32, #tpu.memory_space<vmem>>, %arg58: memref<1x32xf32, #tpu.memory_space<vmem>>, %arg59: memref<1x32xf32, #tpu.memory_space<vmem>>, %arg60: memref<1x32xf32, #tpu.memory_space<vmem>>, %arg61: memref<1x32xf32, #tpu.memory_space<vmem>>, %arg62: memref<32x64xf32, #tpu.memory_space<vmem>>, %arg63: memref<64x32xf32, #tpu.memory_space<vmem>>, %arg64: memref<1x32xf32, #tpu.memory_space<vmem>>, %arg65: memref<1x32xf32, #tpu.memory_space<vmem>>, %arg66: memref<1x32xf32, #tpu.memory_space<vmem>>, %arg67: memref<1x32xf32, #tpu.memory_space<vmem>>, %arg68: memref<32x32xf32, #tpu.memory_space<vmem>>, %arg69: memref<32x32xf32, #tpu.memory_space<vmem>>, %arg70: memref<32x32xf32, #tpu.memory_space<vmem>>, %arg71: memref<32x32xf32, #tpu.memory_space<vmem>>, %arg72: memref<1x64xf32, #tpu.memory_space<vmem>>, %arg73: memref<1x32xf32, #tpu.memory_space<vmem>>, %arg74: memref<1x32xf32, #tpu.memory_space<vmem>>, %arg75: memref<1x32xf32, #tpu.memory_space<vmem>>, %arg76: memref<1x32xf32, #tpu.memory_space<vmem>>, %arg77: memref<1x32xf32, #tpu.memory_space<vmem>>, %arg78: memref<32x64xf32, #tpu.memory_space<vmem>>, %arg79: memref<64x32xf32, #tpu.memory_space<vmem>>, %arg80: memref<1x32xf32, #tpu.memory_space<vmem>>, %arg81: memref<1x32xf32, #tpu.memory_space<vmem>>, %arg82: memref<1x4xf32, #tpu.memory_space<vmem>>, %arg83: memref<32x4xf32, #tpu.memory_space<vmem>>, %arg84: memref<16x4xf32, #tpu.memory_space<vmem>>) attributes {dimension_semantics = [#tpu.dimension_semantics<arbitrary>], iteration_bounds = array<i64: 1>, scalar_prefetch = 0 : i64, scratch_operands = 0 : i64, tpu.core_type = #tpu.core_type<tc>, window_params = [{pipeline_mode = #tpu.pipeline_mode<synchronous>, transform_indices = @transform_0, window_bounds = array<i64: 16, 12>}, {pipeline_mode = #tpu.pipeline_mode<synchronous>, transform_indices = @transform_1, window_bounds = array<i64: 16, 12>}, {pipeline_mode = #tpu.pipeline_mode<synchronous>, transform_indices = @transform_2, window_bounds = array<i64: 16, 4>}, {pipeline_mode = #tpu.pipeline_mode<synchronous>, transform_indices = @transform_3, window_bounds = array<i64: 16, 4>}, {pipeline_mode = #tpu.pipeline_mode<synchronous>, transform_indices = @transform_4, window_bounds = array<i64: 16, 32>}, {pipeline_mode = #tpu.pipeline_mode<synchronous>, transform_indices = @transform_5, window_bounds = array<i64: 16, 32>}, {pipeline_mode = #tpu.pipeline_mode<synchronous>, transform_indices = @transform_6, window_bounds = array<i64: 16, 16>}, {pipeline_mode = #tpu.pipeline_mode<synchronous>, transform_indices = @transform_7, window_bounds = array<i64: 16, 16>}, {pipeline_mode = #tpu.pipeline_mode<synchronous>, transform_indices = @transform_8, window_bounds = array<i64: 16, 64>}, {pipeline_mode = #tpu.pipeline_mode<synchronous>, transform_indices = @transform_9, window_bounds = array<i64: 16, 64>}, {pipeline_mode = #tpu.pipeline_mode<synchronous>, transform_indices = @transform_10, window_bounds = array<i64: 16, 64>}, {pipeline_mode = #tpu.pipeline_mode<synchronous>, transform_indices = @transform_11, window_bounds = array<i64: 64, 32>}, {pipeline_mode = #tpu.pipeline_mode<synchronous>, transform_indices = @transform_12, window_bounds = array<i64: 64, 32>}, {pipeline_mode = #tpu.pipeline_mode<synchronous>, transform_indices = @transform_13, window_bounds = array<i64: 64, 64>}, {pipeline_mode = #tpu.pipeline_mode<synchronous>, transform_indices = @transform_14, window_bounds = array<i64: 64, 64>}, {pipeline_mode = #tpu.pipeline_mode<synchronous>, transform_indices = @transform_15, window_bounds = array<i64: 12, 32>}, {pipeline_mode = #tpu.pipeline_mode<synchronous>, transform_indices = @transform_16, window_bounds = array<i64: 4, 32>}, {pipeline_mode = #tpu.pipeline_mode<synchronous>, transform_indices = @transform_17, window_bounds = array<i64: 1, 64>}, {pipeline_mode = #tpu.pipeline_mode<synchronous>, transform_indices = @transform_18, window_bounds = array<i64: 1, 32>}, {pipeline_mode = #tpu.pipeline_mode<synchronous>, transform_indices = @transform_19, window_bounds = array<i64: 1, 32>}, {pipeline_mode = #tpu.pipeline_mode<synchronous>, transform_indices = @transform_20, window_bounds = array<i64: 1, 32>}, {pipeline_mode = #tpu.pipeline_mode<synchronous>, transform_indices = @transform_21, window_bounds = array<i64: 1, 32>}, {pipeline_mode = #tpu.pipeline_mode<synchronous>, transform_indices = @transform_22, window_bounds = array<i64: 1, 32>}, {pipeline_mode = #tpu.pipeline_mode<synchronous>, transform_indices = @transform_23, window_bounds = array<i64: 32, 32>}, {pipeline_mode = #tpu.pipeline_mode<synchronous>, transform_indices = @transform_24, window_bounds = array<i64: 32, 32>}, {pipeline_mode = #tpu.pipeline_mode<synchronous>, transform_indices = @transform_25, window_bounds = array<i64: 32, 32>}, {pipeline_mode = #tpu.pipeline_mode<synchronous>, transform_indices = @transform_26, window_bounds = array<i64: 32, 32>}, {pipeline_mode = #tpu.pipeline_mode<synchronous>, transform_indices = @transform_27, window_bounds = array<i64: 1, 32>}, {pipeline_mode = #tpu.pipeline_mode<synchronous>, transform_indices = @transform_28, window_bounds = array<i64: 1, 32>}, {pipeline_mode = #tpu.pipeline_mode<synchronous>, transform_indices = @transform_29, window_bounds = array<i64: 1, 32>}, {pipeline_mode = #tpu.pipeline_mode<synchronous>, transform_indices = @transform_30, window_bounds = array<i64: 1, 32>}, {pipeline_mode = #tpu.pipeline_mode<synchronous>, transform_indices = @transform_31, window_bounds = array<i64: 1, 32>}, {pipeline_mode = #tpu.pipeline_mode<synchronous>, transform_indices = @transform_32, window_bounds = array<i64: 1, 32>}, {pipeline_mode = #tpu.pipeline_mode<synchronous>, transform_indices = @transform_33, window_bounds = array<i64: 1, 32>}, {pipeline_mode = #tpu.pipeline_mode<synchronous>, transform_indices = @transform_34, window_bounds = array<i64: 1, 32>}, {pipeline_mode = #tpu.pipeline_mode<synchronous>, transform_indices = @transform_35, window_bounds = array<i64: 1, 32>}, {pipeline_mode = #tpu.pipeline_mode<synchronous>, transform_indices = @transform_36, window_bounds = array<i64: 1, 32>}, {pipeline_mode = #tpu.pipeline_mode<synchronous>, transform_indices = @transform_37, window_bounds = array<i64: 32, 32>}, {pipeline_mode = #tpu.pipeline_mode<synchronous>, transform_indices = @transform_38, window_bounds = array<i64: 32, 32>}, {pipeline_mode = #tpu.pipeline_mode<synchronous>, transform_indices = @transform_39, window_bounds = array<i64: 32, 32>}, {pipeline_mode = #tpu.pipeline_mode<synchronous>, transform_indices = @transform_40, window_bounds = array<i64: 32, 32>}, {pipeline_mode = #tpu.pipeline_mode<synchronous>, transform_indices = @transform_41, window_bounds = array<i64: 32, 64>}, {pipeline_mode = #tpu.pipeline_mode<synchronous>, transform_indices = @transform_42, window_bounds = array<i64: 64, 32>}, {pipeline_mode = #tpu.pipeline_mode<synchronous>, transform_indices = @transform_43, window_bounds = array<i64: 1, 32>}, {pipeline_mode = #tpu.pipeline_mode<synchronous>, transform_indices = @transform_44, window_bounds = array<i64: 1, 32>}, {pipeline_mode = #tpu.pipeline_mode<synchronous>, transform_indices = @transform_45, window_bounds = array<i64: 12, 32>}, {pipeline_mode = #tpu.pipeline_mode<synchronous>, transform_indices = @transform_46, window_bounds = array<i64: 4, 32>}, {pipeline_mode = #tpu.pipeline_mode<synchronous>, transform_indices = @transform_47, window_bounds = array<i64: 1, 32>}, {pipeline_mode = #tpu.pipeline_mode<synchronous>, transform_indices = @transform_48, window_bounds = array<i64: 1, 32>}, {pipeline_mode = #tpu.pipeline_mode<synchronous>, transform_indices = @transform_49, window_bounds = array<i64: 1, 32>}, {pipeline_mode = #tpu.pipeline_mode<synchronous>, transform_indices = @transform_50, window_bounds = array<i64: 1, 32>}, {pipeline_mode = #tpu.pipeline_mode<synchronous>, transform_indices = @transform_51, window_bounds = array<i64: 32, 32>}, {pipeline_mode = #tpu.pipeline_mode<synchronous>, transform_indices = @transform_52, window_bounds = array<i64: 32, 32>}, {pipeline_mode = #tpu.pipeline_mode<synchronous>, transform_indices = @transform_53, window_bounds = array<i64: 32, 32>}, {pipeline_mode = #tpu.pipeline_mode<synchronous>, transform_indices = @transform_54, window_bounds = array<i64: 32, 32>}, {pipeline_mode = #tpu.pipeline_mode<synchronous>, transform_indices = @transform_55, window_bounds = array<i64: 1, 64>}, {pipeline_mode = #tpu.pipeline_mode<synchronous>, transform_indices = @transform_56, window_bounds = array<i64: 1, 32>}, {pipeline_mode = #tpu.pipeline_mode<synchronous>, transform_indices = @transform_57, window_bounds = array<i64: 1, 32>}, {pipeline_mode = #tpu.pipeline_mode<synchronous>, transform_indices = @transform_58, window_bounds = array<i64: 1, 32>}, {pipeline_mode = #tpu.pipeline_mode<synchronous>, transform_indices = @transform_59, window_bounds = array<i64: 1, 32>}, {pipeline_mode = #tpu.pipeline_mode<synchronous>, transform_indices = @transform_60, window_bounds = array<i64: 1, 32>}, {pipeline_mode = #tpu.pipeline_mode<synchronous>, transform_indices = @transform_61, window_bounds = array<i64: 32, 64>}, {pipeline_mode = #tpu.pipeline_mode<synchronous>, transform_indices = @transform_62, window_bounds = array<i64: 64, 32>}, {pipeline_mode = #tpu.pipeline_mode<synchronous>, transform_indices = @transform_63, window_bounds = array<i64: 1, 32>}, {pipeline_mode = #tpu.pipeline_mode<synchronous>, transform_indices = @transform_64, window_bounds = array<i64: 1, 32>}, {pipeline_mode = #tpu.pipeline_mode<synchronous>, transform_indices = @transform_65, window_bounds = array<i64: 1, 32>}, {pipeline_mode = #tpu.pipeline_mode<synchronous>, transform_indices = @transform_66, window_bounds = array<i64: 1, 32>}, {pipeline_mode = #tpu.pipeline_mode<synchronous>, transform_indices = @transform_67, window_bounds = array<i64: 32, 32>}, {pipeline_mode = #tpu.pipeline_mode<synchronous>, transform_indices = @transform_68, window_bounds = array<i64: 32, 32>}, {pipeline_mode = #tpu.pipeline_mode<synchronous>, transform_indices = @transform_69, window_bounds = array<i64: 32, 32>}, {pipeline_mode = #tpu.pipeline_mode<synchronous>, transform_indices = @transform_70, window_bounds = array<i64: 32, 32>}, {pipeline_mode = #tpu.pipeline_mode<synchronous>, transform_indices = @transform_71, window_bounds = array<i64: 1, 64>}, {pipeline_mode = #tpu.pipeline_mode<synchronous>, transform_indices = @transform_72, window_bounds = array<i64: 1, 32>}, {pipeline_mode = #tpu.pipeline_mode<synchronous>, transform_indices = @transform_73, window_bounds = array<i64: 1, 32>}, {pipeline_mode = #tpu.pipeline_mode<synchronous>, transform_indices = @transform_74, window_bounds = array<i64: 1, 32>}, {pipeline_mode = #tpu.pipeline_mode<synchronous>, transform_indices = @transform_75, window_bounds = array<i64: 1, 32>}, {pipeline_mode = #tpu.pipeline_mode<synchronous>, transform_indices = @transform_76, window_bounds = array<i64: 1, 32>}, {pipeline_mode = #tpu.pipeline_mode<synchronous>, transform_indices = @transform_77, window_bounds = array<i64: 32, 64>}, {pipeline_mode = #tpu.pipeline_mode<synchronous>, transform_indices = @transform_78, window_bounds = array<i64: 64, 32>}, {pipeline_mode = #tpu.pipeline_mode<synchronous>, transform_indices = @transform_79, window_bounds = array<i64: 1, 32>}, {pipeline_mode = #tpu.pipeline_mode<synchronous>, transform_indices = @transform_80, window_bounds = array<i64: 1, 32>}, {pipeline_mode = #tpu.pipeline_mode<synchronous>, transform_indices = @transform_81, window_bounds = array<i64: 1, 4>}, {pipeline_mode = #tpu.pipeline_mode<synchronous>, transform_indices = @transform_82, window_bounds = array<i64: 32, 4>}, {pipeline_mode = #tpu.pipeline_mode<synchronous>, transform_indices = @transform_83, window_bounds = array<i64: 16, 4>}]} {
    %c0 = arith.constant 0 : index
    %c0_0 = arith.constant 0 : index
    %0 = vector.load %arg1[%c0, %c0_0] : memref<16x12xf32, #tpu.memory_space<vmem>>, vector<16x12xf32>
    %c0_1 = arith.constant 0 : index
    %c0_2 = arith.constant 0 : index
    %1 = vector.load %arg2[%c0_1, %c0_2] : memref<16x12xf32, #tpu.memory_space<vmem>>, vector<16x12xf32>
    %c0_3 = arith.constant 0 : index
    %c0_4 = arith.constant 0 : index
    %2 = vector.load %arg7[%c0_3, %c0_4] : memref<16x16xf32, #tpu.memory_space<vmem>>, vector<16x16xf32>
    %c0_5 = arith.constant 0 : index
    %c0_6 = arith.constant 0 : index
    %3 = vector.load %arg8[%c0_5, %c0_6] : memref<16x16xf32, #tpu.memory_space<vmem>>, vector<16x16xf32>
    %4 = arith.mulf %0, %0 : vector<16x12xf32>
    %cst = arith.constant dense<0.000000e+00> : vector<16x12xf32>
    %5 = tpu.matmul %2, %0, %cst {dimension_numbers = #tpu.dot_dimension_numbers<[1], [0], [0], [1], [0, 0, 1, 1], [], []>} : vector<16x16xf32>, vector<16x12xf32>, vector<16x12xf32> -> vector<16x12xf32>
    %cst_7 = arith.constant dense<0.000000e+00> : vector<16x12xf32>
    %6 = tpu.matmul %2, %4, %cst_7 {dimension_numbers = #tpu.dot_dimension_numbers<[1], [0], [0], [1], [0, 0, 1, 1], [], []>} : vector<16x16xf32>, vector<16x12xf32>, vector<16x12xf32> -> vector<16x12xf32>
    %7 = arith.mulf %5, %5 : vector<16x12xf32>
    %8 = arith.subf %6, %7 : vector<16x12xf32>
    %cst_8 = arith.constant 0.000000e+00 : f32
    %9 = vector.broadcast %cst_8 : f32 to vector<16x12xf32>
    %10 = arith.maximumf %8, %9 : vector<16x12xf32>
    %cst_9 = arith.constant 1.14285719 : f32
    %11 = vector.broadcast %cst_9 : f32 to vector<16x12xf32>
    %12 = arith.mulf %10, %11 : vector<16x12xf32>
    %13 = math.sqrt %12 : vector<16x12xf32>
    %cst_10 = arith.constant 9.99999993E-9 : f32
    %14 = vector.broadcast %cst_10 : f32 to vector<16x12xf32>
    %15 = arith.addf %13, %14 : vector<16x12xf32>
    %cst_11 = arith.constant dense<0.000000e+00> : vector<16x12xf32>
    %16 = tpu.matmul %3, %0, %cst_11 {dimension_numbers = #tpu.dot_dimension_numbers<[1], [0], [0], [1], [0, 0, 1, 1], [], []>} : vector<16x16xf32>, vector<16x12xf32>, vector<16x12xf32> -> vector<16x12xf32>
    %cst_12 = arith.constant dense<0.000000e+00> : vector<16x12xf32>
    %17 = tpu.matmul %3, %4, %cst_12 {dimension_numbers = #tpu.dot_dimension_numbers<[1], [0], [0], [1], [0, 0, 1, 1], [], []>} : vector<16x16xf32>, vector<16x12xf32>, vector<16x12xf32> -> vector<16x12xf32>
    %18 = arith.mulf %16, %16 : vector<16x12xf32>
    %19 = arith.subf %17, %18 : vector<16x12xf32>
    %cst_13 = arith.constant 0.000000e+00 : f32
    %20 = vector.broadcast %cst_13 : f32 to vector<16x12xf32>
    %21 = arith.maximumf %19, %20 : vector<16x12xf32>
    %cst_14 = arith.constant 1.14285719 : f32
    %22 = vector.broadcast %cst_14 : f32 to vector<16x12xf32>
    %23 = arith.mulf %21, %22 : vector<16x12xf32>
    %24 = math.sqrt %23 : vector<16x12xf32>
    %cst_15 = arith.constant 9.99999993E-9 : f32
    %25 = vector.broadcast %cst_15 : f32 to vector<16x12xf32>
    %26 = arith.addf %24, %25 : vector<16x12xf32>
    %27 = arith.subf %0, %5 : vector<16x12xf32>
    %28 = tpu.reciprocal %15 {approx = true} : vector<16x12xf32> -> vector<16x12xf32>
    %29 = arith.mulf %27, %28 : vector<16x12xf32>
    %30 = arith.subf %1, %16 : vector<16x12xf32>
    %31 = tpu.reciprocal %26 {approx = true} : vector<16x12xf32> -> vector<16x12xf32>
    %32 = arith.mulf %30, %31 : vector<16x12xf32>
    %33 = vector.extract_strided_slice %16 {offsets = [0, 0], sizes = [16, 4], strides = [1, 1]} : vector<16x12xf32> to vector<16x4xf32>
    %34 = vector.extract_strided_slice %26 {offsets = [0, 0], sizes = [16, 4], strides = [1, 1]} : vector<16x12xf32> to vector<16x4xf32>
    %c0_16 = arith.constant 0 : index
    %c0_17 = arith.constant 0 : index
    %35 = vector.load %arg46[%c0_16, %c0_17] : memref<12x32xf32, #tpu.memory_space<vmem>>, vector<12x32xf32>
    %cst_18 = arith.constant dense<0.000000e+00> : vector<16x32xf32>
    %36 = tpu.matmul %29, %35, %cst_18 {dimension_numbers = #tpu.dot_dimension_numbers<[1], [0], [0], [1], [0, 0, 1, 1], [], []>} : vector<16x12xf32>, vector<12x32xf32>, vector<16x32xf32> -> vector<16x32xf32>
    %c0_19 = arith.constant 0 : index
    %c0_20 = arith.constant 0 : index
    %37 = vector.load %arg3[%c0_19, %c0_20] : memref<16x4xf32, #tpu.memory_space<vmem>>, vector<16x4xf32>
    %c0_21 = arith.constant 0 : index
    %c0_22 = arith.constant 0 : index
    %38 = vector.load %arg47[%c0_21, %c0_22] : memref<4x32xf32, #tpu.memory_space<vmem>>, vector<4x32xf32>
    %cst_23 = arith.constant dense<0.000000e+00> : vector<16x32xf32>
    %39 = tpu.matmul %37, %38, %cst_23 {dimension_numbers = #tpu.dot_dimension_numbers<[1], [0], [0], [1], [0, 0, 1, 1], [], []>} : vector<16x4xf32>, vector<4x32xf32>, vector<16x32xf32> -> vector<16x32xf32>
    %40 = arith.addf %36, %39 : vector<16x32xf32>
    %c0_24 = arith.constant 0 : index
    %c0_25 = arith.constant 0 : index
    %41 = vector.load %arg5[%c0_24, %c0_25] : memref<16x32xf32, #tpu.memory_space<vmem>>, vector<16x32xf32>
    %42 = arith.addf %40, %41 : vector<16x32xf32>
    %c0_26 = arith.constant 0 : index
    %c0_27 = arith.constant 0 : index
    %43 = vector.load %arg54[%c0_26, %c0_27] : memref<32x32xf32, #tpu.memory_space<vmem>>, vector<32x32xf32>
    %cst_28 = arith.constant dense<0.000000e+00> : vector<16x32xf32>
    %44 = tpu.matmul %42, %43, %cst_28 {dimension_numbers = #tpu.dot_dimension_numbers<[1], [0], [0], [1], [0, 0, 1, 1], [], []>} : vector<16x32xf32>, vector<32x32xf32>, vector<16x32xf32> -> vector<16x32xf32>
    %c0_29 = arith.constant 0 : index
    %c0_30 = arith.constant 0 : index
    %45 = vector.load %arg50[%c0_29, %c0_30] : memref<1x32xf32, #tpu.memory_space<vmem>>, vector<1x32xf32>
    %46 = vector.broadcast %45 : vector<1x32xf32> to vector<16x32xf32>
    %47 = arith.addf %44, %46 : vector<16x32xf32>
    %c0_31 = arith.constant 0 : index
    %c0_32 = arith.constant 0 : index
    %48 = vector.load %arg52[%c0_31, %c0_32] : memref<32x32xf32, #tpu.memory_space<vmem>>, vector<32x32xf32>
    %cst_33 = arith.constant dense<0.000000e+00> : vector<16x32xf32>
    %49 = tpu.matmul %42, %48, %cst_33 {dimension_numbers = #tpu.dot_dimension_numbers<[1], [0], [0], [1], [0, 0, 1, 1], [], []>} : vector<16x32xf32>, vector<32x32xf32>, vector<16x32xf32> -> vector<16x32xf32>
    %c0_34 = arith.constant 0 : index
    %c0_35 = arith.constant 0 : index
    %50 = vector.load %arg48[%c0_34, %c0_35] : memref<1x32xf32, #tpu.memory_space<vmem>>, vector<1x32xf32>
    %51 = vector.broadcast %50 : vector<1x32xf32> to vector<16x32xf32>
    %52 = arith.addf %49, %51 : vector<16x32xf32>
    %c0_36 = arith.constant 0 : index
    %c0_37 = arith.constant 0 : index
    %53 = vector.load %arg55[%c0_36, %c0_37] : memref<32x32xf32, #tpu.memory_space<vmem>>, vector<32x32xf32>
    %cst_38 = arith.constant dense<0.000000e+00> : vector<16x32xf32>
    %54 = tpu.matmul %42, %53, %cst_38 {dimension_numbers = #tpu.dot_dimension_numbers<[1], [0], [0], [1], [0, 0, 1, 1], [], []>} : vector<16x32xf32>, vector<32x32xf32>, vector<16x32xf32> -> vector<16x32xf32>
    %c0_39 = arith.constant 0 : index
    %c0_40 = arith.constant 0 : index
    %55 = vector.load %arg51[%c0_39, %c0_40] : memref<1x32xf32, #tpu.memory_space<vmem>>, vector<1x32xf32>
    %56 = vector.broadcast %55 : vector<1x32xf32> to vector<16x32xf32>
    %57 = arith.addf %54, %56 : vector<16x32xf32>
    %c0_41 = arith.constant 0 : index
    %c0_42 = arith.constant 0 : index
    %58 = vector.load %arg12[%c0_41, %c0_42] : memref<64x32xf32, #tpu.memory_space<vmem>>, vector<64x32xf32>
    %59 = tpu.concatenate %52, %52, %52, %52 in 0 : vector<16x32xf32>, vector<16x32xf32>, vector<16x32xf32>, vector<16x32xf32> -> vector<64x32xf32>
    %60 = arith.mulf %59, %58 : vector<64x32xf32>
    %61 = tpu.concatenate %57, %57, %57, %57 in 0 : vector<16x32xf32>, vector<16x32xf32>, vector<16x32xf32>, vector<16x32xf32> -> vector<64x32xf32>
    %62 = arith.mulf %61, %58 : vector<64x32xf32>
    %cst_43 = arith.constant dense<0.000000e+00> : vector<16x64xf32>
    %63 = tpu.matmul %47, %60, %cst_43 {dimension_numbers = #tpu.dot_dimension_numbers<[1], [1], [0], [0], [0, 0, 1, 0], [], []>} : vector<16x32xf32>, vector<64x32xf32>, vector<16x64xf32> -> vector<16x64xf32>
    %cst_44 = arith.constant 0.353553385 : f32
    %64 = vector.broadcast %cst_44 : f32 to vector<16x64xf32>
    %65 = arith.mulf %63, %64 : vector<16x64xf32>
    %c0_45 = arith.constant 0 : index
    %c0_46 = arith.constant 0 : index
    %66 = vector.load %arg9[%c0_45, %c0_46] : memref<16x64xf32, #tpu.memory_space<vmem>>, vector<16x64xf32>
    %67 = arith.addf %65, %66 : vector<16x64xf32>
    %cst_47 = arith.constant dense<0xFF800000> : vector<16xf32>
    %68 = vector.multi_reduction <maximumf>, %67, %cst_47 [1] : vector<16x64xf32> to vector<16xf32>
    %69 = vector.shape_cast %68 : vector<16xf32> to vector<16x1xf32>
    %70 = vector.broadcast %69 : vector<16x1xf32> to vector<16x64xf32>
    %71 = arith.subf %67, %70 : vector<16x64xf32>
    %72 = math.exp %71 : vector<16x64xf32>
    %c0_48 = arith.constant 0 : index
    %c0_49 = arith.constant 0 : index
    %73 = vector.load %arg14[%c0_48, %c0_49] : memref<64x64xf32, #tpu.memory_space<vmem>>, vector<64x64xf32>
    %cst_50 = arith.constant dense<0.000000e+00> : vector<16x64xf32>
    %74 = tpu.matmul %72, %73, %cst_50 {dimension_numbers = #tpu.dot_dimension_numbers<[1], [0], [0], [1], [0, 0, 1, 1], [], []>} : vector<16x64xf32>, vector<64x64xf32>, vector<16x64xf32> -> vector<16x64xf32>
    %75 = tpu.reciprocal %74 {approx = true} : vector<16x64xf32> -> vector<16x64xf32>
    %76 = arith.mulf %72, %75 : vector<16x64xf32>
    %cst_51 = arith.constant dense<0.000000e+00> : vector<16x32xf32>
    %77 = tpu.matmul %76, %62, %cst_51 {dimension_numbers = #tpu.dot_dimension_numbers<[1], [0], [0], [1], [0, 0, 1, 1], [], []>} : vector<16x64xf32>, vector<64x32xf32>, vector<16x32xf32> -> vector<16x32xf32>
    %c0_52 = arith.constant 0 : index
    %c0_53 = arith.constant 0 : index
    %78 = vector.load %arg53[%c0_52, %c0_53] : memref<32x32xf32, #tpu.memory_space<vmem>>, vector<32x32xf32>
    %cst_54 = arith.constant dense<0.000000e+00> : vector<16x32xf32>
    %79 = tpu.matmul %77, %78, %cst_54 {dimension_numbers = #tpu.dot_dimension_numbers<[1], [0], [0], [1], [0, 0, 1, 1], [], []>} : vector<16x32xf32>, vector<32x32xf32>, vector<16x32xf32> -> vector<16x32xf32>
    %c0_55 = arith.constant 0 : index
    %c0_56 = arith.constant 0 : index
    %80 = vector.load %arg49[%c0_55, %c0_56] : memref<1x32xf32, #tpu.memory_space<vmem>>, vector<1x32xf32>
    %81 = vector.broadcast %80 : vector<1x32xf32> to vector<16x32xf32>
    %82 = arith.addf %79, %81 : vector<16x32xf32>
    %83 = arith.addf %42, %82 : vector<16x32xf32>
    %c0_57 = arith.constant 0 : index
    %c0_58 = arith.constant 0 : index
    %84 = vector.load %arg59[%c0_57, %c0_58] : memref<1x32xf32, #tpu.memory_space<vmem>>, vector<1x32xf32>
    %c0_59 = arith.constant 0 : index
    %c0_60 = arith.constant 0 : index
    %85 = vector.load %arg58[%c0_59, %c0_60] : memref<1x32xf32, #tpu.memory_space<vmem>>, vector<1x32xf32>
    %cst_61 = arith.constant dense<0.000000e+00> : vector<16xf32>
    %86 = vector.multi_reduction <add>, %83, %cst_61 [1] : vector<16x32xf32> to vector<16xf32>
    %87 = vector.shape_cast %86 : vector<16xf32> to vector<16x1xf32>
    %cst_62 = arith.constant 3.200000e+01 : f32
    %88 = vector.broadcast %cst_62 : f32 to vector<16x1xf32>
    %89 = arith.divf %87, %88 : vector<16x1xf32>
    %90 = vector.broadcast %89 : vector<16x1xf32> to vector<16x32xf32>
    %91 = arith.subf %83, %90 : vector<16x32xf32>
    %92 = vector.broadcast %89 : vector<16x1xf32> to vector<16x32xf32>
    %93 = arith.subf %83, %92 : vector<16x32xf32>
    %94 = arith.mulf %91, %93 : vector<16x32xf32>
    %cst_63 = arith.constant dense<0.000000e+00> : vector<16xf32>
    %95 = vector.multi_reduction <add>, %94, %cst_63 [1] : vector<16x32xf32> to vector<16xf32>
    %96 = vector.shape_cast %95 : vector<16xf32> to vector<16x1xf32>
    %cst_64 = arith.constant 3.200000e+01 : f32
    %97 = vector.broadcast %cst_64 : f32 to vector<16x1xf32>
    %98 = arith.divf %96, %97 : vector<16x1xf32>
    %99 = vector.broadcast %89 : vector<16x1xf32> to vector<16x32xf32>
    %100 = arith.subf %83, %99 : vector<16x32xf32>
    %cst_65 = arith.constant 9.99999974E-6 : f32
    %101 = vector.broadcast %cst_65 : f32 to vector<16x1xf32>
    %102 = arith.addf %98, %101 : vector<16x1xf32>
    %103 = math.rsqrt %102 : vector<16x1xf32>
    %104 = vector.broadcast %103 : vector<16x1xf32> to vector<16x32xf32>
    %105 = arith.mulf %100, %104 : vector<16x32xf32>
    %106 = vector.broadcast %84 : vector<1x32xf32> to vector<16x32xf32>
    %107 = arith.mulf %105, %106 : vector<16x32xf32>
    %108 = vector.broadcast %85 : vector<1x32xf32> to vector<16x32xf32>
    %109 = arith.addf %107, %108 : vector<16x32xf32>
    %c0_66 = arith.constant 0 : index
    %c0_67 = arith.constant 0 : index
    %110 = vector.load %arg62[%c0_66, %c0_67] : memref<32x64xf32, #tpu.memory_space<vmem>>, vector<32x64xf32>
    %cst_68 = arith.constant dense<0.000000e+00> : vector<16x64xf32>
    %111 = tpu.matmul %109, %110, %cst_68 {dimension_numbers = #tpu.dot_dimension_numbers<[1], [0], [0], [1], [0, 0, 1, 1], [], []>} : vector<16x32xf32>, vector<32x64xf32>, vector<16x64xf32> -> vector<16x64xf32>
    %c0_69 = arith.constant 0 : index
    %c0_70 = arith.constant 0 : index
    %112 = vector.load %arg56[%c0_69, %c0_70] : memref<1x64xf32, #tpu.memory_space<vmem>>, vector<1x64xf32>
    %113 = vector.broadcast %112 : vector<1x64xf32> to vector<16x64xf32>
    %114 = arith.addf %111, %113 : vector<16x64xf32>
    %cst_71 = arith.constant 0.000000e+00 : f32
    %115 = vector.broadcast %cst_71 : f32 to vector<16x64xf32>
    %116 = arith.maximumf %114, %115 : vector<16x64xf32>
    %c0_72 = arith.constant 0 : index
    %c0_73 = arith.constant 0 : index
    %117 = vector.load %arg63[%c0_72, %c0_73] : memref<64x32xf32, #tpu.memory_space<vmem>>, vector<64x32xf32>
    %cst_74 = arith.constant dense<0.000000e+00> : vector<16x32xf32>
    %118 = tpu.matmul %116, %117, %cst_74 {dimension_numbers = #tpu.dot_dimension_numbers<[1], [0], [0], [1], [0, 0, 1, 1], [], []>} : vector<16x64xf32>, vector<64x32xf32>, vector<16x32xf32> -> vector<16x32xf32>
    %c0_75 = arith.constant 0 : index
    %c0_76 = arith.constant 0 : index
    %119 = vector.load %arg57[%c0_75, %c0_76] : memref<1x32xf32, #tpu.memory_space<vmem>>, vector<1x32xf32>
    %120 = vector.broadcast %119 : vector<1x32xf32> to vector<16x32xf32>
    %121 = arith.addf %118, %120 : vector<16x32xf32>
    %122 = arith.addf %109, %121 : vector<16x32xf32>
    %c0_77 = arith.constant 0 : index
    %c0_78 = arith.constant 0 : index
    %123 = vector.load %arg61[%c0_77, %c0_78] : memref<1x32xf32, #tpu.memory_space<vmem>>, vector<1x32xf32>
    %c0_79 = arith.constant 0 : index
    %c0_80 = arith.constant 0 : index
    %124 = vector.load %arg60[%c0_79, %c0_80] : memref<1x32xf32, #tpu.memory_space<vmem>>, vector<1x32xf32>
    %cst_81 = arith.constant dense<0.000000e+00> : vector<16xf32>
    %125 = vector.multi_reduction <add>, %122, %cst_81 [1] : vector<16x32xf32> to vector<16xf32>
    %126 = vector.shape_cast %125 : vector<16xf32> to vector<16x1xf32>
    %cst_82 = arith.constant 3.200000e+01 : f32
    %127 = vector.broadcast %cst_82 : f32 to vector<16x1xf32>
    %128 = arith.divf %126, %127 : vector<16x1xf32>
    %129 = vector.broadcast %128 : vector<16x1xf32> to vector<16x32xf32>
    %130 = arith.subf %122, %129 : vector<16x32xf32>
    %131 = vector.broadcast %128 : vector<16x1xf32> to vector<16x32xf32>
    %132 = arith.subf %122, %131 : vector<16x32xf32>
    %133 = arith.mulf %130, %132 : vector<16x32xf32>
    %cst_83 = arith.constant dense<0.000000e+00> : vector<16xf32>
    %134 = vector.multi_reduction <add>, %133, %cst_83 [1] : vector<16x32xf32> to vector<16xf32>
    %135 = vector.shape_cast %134 : vector<16xf32> to vector<16x1xf32>
    %cst_84 = arith.constant 3.200000e+01 : f32
    %136 = vector.broadcast %cst_84 : f32 to vector<16x1xf32>
    %137 = arith.divf %135, %136 : vector<16x1xf32>
    %138 = vector.broadcast %128 : vector<16x1xf32> to vector<16x32xf32>
    %139 = arith.subf %122, %138 : vector<16x32xf32>
    %cst_85 = arith.constant 9.99999974E-6 : f32
    %140 = vector.broadcast %cst_85 : f32 to vector<16x1xf32>
    %141 = arith.addf %137, %140 : vector<16x1xf32>
    %142 = math.rsqrt %141 : vector<16x1xf32>
    %143 = vector.broadcast %142 : vector<16x1xf32> to vector<16x32xf32>
    %144 = arith.mulf %139, %143 : vector<16x32xf32>
    %145 = vector.broadcast %123 : vector<1x32xf32> to vector<16x32xf32>
    %146 = arith.mulf %144, %145 : vector<16x32xf32>
    %147 = vector.broadcast %124 : vector<1x32xf32> to vector<16x32xf32>
    %148 = arith.addf %146, %147 : vector<16x32xf32>
    %c0_86 = arith.constant 0 : index
    %c0_87 = arith.constant 0 : index
    %149 = vector.load %arg70[%c0_86, %c0_87] : memref<32x32xf32, #tpu.memory_space<vmem>>, vector<32x32xf32>
    %cst_88 = arith.constant dense<0.000000e+00> : vector<16x32xf32>
    %150 = tpu.matmul %148, %149, %cst_88 {dimension_numbers = #tpu.dot_dimension_numbers<[1], [0], [0], [1], [0, 0, 1, 1], [], []>} : vector<16x32xf32>, vector<32x32xf32>, vector<16x32xf32> -> vector<16x32xf32>
    %c0_89 = arith.constant 0 : index
    %c0_90 = arith.constant 0 : index
    %151 = vector.load %arg66[%c0_89, %c0_90] : memref<1x32xf32, #tpu.memory_space<vmem>>, vector<1x32xf32>
    %152 = vector.broadcast %151 : vector<1x32xf32> to vector<16x32xf32>
    %153 = arith.addf %150, %152 : vector<16x32xf32>
    %c0_91 = arith.constant 0 : index
    %c0_92 = arith.constant 0 : index
    %154 = vector.load %arg68[%c0_91, %c0_92] : memref<32x32xf32, #tpu.memory_space<vmem>>, vector<32x32xf32>
    %cst_93 = arith.constant dense<0.000000e+00> : vector<16x32xf32>
    %155 = tpu.matmul %148, %154, %cst_93 {dimension_numbers = #tpu.dot_dimension_numbers<[1], [0], [0], [1], [0, 0, 1, 1], [], []>} : vector<16x32xf32>, vector<32x32xf32>, vector<16x32xf32> -> vector<16x32xf32>
    %c0_94 = arith.constant 0 : index
    %c0_95 = arith.constant 0 : index
    %156 = vector.load %arg64[%c0_94, %c0_95] : memref<1x32xf32, #tpu.memory_space<vmem>>, vector<1x32xf32>
    %157 = vector.broadcast %156 : vector<1x32xf32> to vector<16x32xf32>
    %158 = arith.addf %155, %157 : vector<16x32xf32>
    %c0_96 = arith.constant 0 : index
    %c0_97 = arith.constant 0 : index
    %159 = vector.load %arg71[%c0_96, %c0_97] : memref<32x32xf32, #tpu.memory_space<vmem>>, vector<32x32xf32>
    %cst_98 = arith.constant dense<0.000000e+00> : vector<16x32xf32>
    %160 = tpu.matmul %148, %159, %cst_98 {dimension_numbers = #tpu.dot_dimension_numbers<[1], [0], [0], [1], [0, 0, 1, 1], [], []>} : vector<16x32xf32>, vector<32x32xf32>, vector<16x32xf32> -> vector<16x32xf32>
    %c0_99 = arith.constant 0 : index
    %c0_100 = arith.constant 0 : index
    %161 = vector.load %arg67[%c0_99, %c0_100] : memref<1x32xf32, #tpu.memory_space<vmem>>, vector<1x32xf32>
    %162 = vector.broadcast %161 : vector<1x32xf32> to vector<16x32xf32>
    %163 = arith.addf %160, %162 : vector<16x32xf32>
    %c0_101 = arith.constant 0 : index
    %c0_102 = arith.constant 0 : index
    %164 = vector.load %arg12[%c0_101, %c0_102] : memref<64x32xf32, #tpu.memory_space<vmem>>, vector<64x32xf32>
    %165 = tpu.concatenate %158, %158, %158, %158 in 0 : vector<16x32xf32>, vector<16x32xf32>, vector<16x32xf32>, vector<16x32xf32> -> vector<64x32xf32>
    %166 = arith.mulf %165, %164 : vector<64x32xf32>
    %167 = tpu.concatenate %163, %163, %163, %163 in 0 : vector<16x32xf32>, vector<16x32xf32>, vector<16x32xf32>, vector<16x32xf32> -> vector<64x32xf32>
    %168 = arith.mulf %167, %164 : vector<64x32xf32>
    %cst_103 = arith.constant dense<0.000000e+00> : vector<16x64xf32>
    %169 = tpu.matmul %153, %166, %cst_103 {dimension_numbers = #tpu.dot_dimension_numbers<[1], [1], [0], [0], [0, 0, 1, 0], [], []>} : vector<16x32xf32>, vector<64x32xf32>, vector<16x64xf32> -> vector<16x64xf32>
    %cst_104 = arith.constant 0.353553385 : f32
    %170 = vector.broadcast %cst_104 : f32 to vector<16x64xf32>
    %171 = arith.mulf %169, %170 : vector<16x64xf32>
    %c0_105 = arith.constant 0 : index
    %c0_106 = arith.constant 0 : index
    %172 = vector.load %arg9[%c0_105, %c0_106] : memref<16x64xf32, #tpu.memory_space<vmem>>, vector<16x64xf32>
    %173 = arith.addf %171, %172 : vector<16x64xf32>
    %cst_107 = arith.constant dense<0xFF800000> : vector<16xf32>
    %174 = vector.multi_reduction <maximumf>, %173, %cst_107 [1] : vector<16x64xf32> to vector<16xf32>
    %175 = vector.shape_cast %174 : vector<16xf32> to vector<16x1xf32>
    %176 = vector.broadcast %175 : vector<16x1xf32> to vector<16x64xf32>
    %177 = arith.subf %173, %176 : vector<16x64xf32>
    %178 = math.exp %177 : vector<16x64xf32>
    %c0_108 = arith.constant 0 : index
    %c0_109 = arith.constant 0 : index
    %179 = vector.load %arg14[%c0_108, %c0_109] : memref<64x64xf32, #tpu.memory_space<vmem>>, vector<64x64xf32>
    %cst_110 = arith.constant dense<0.000000e+00> : vector<16x64xf32>
    %180 = tpu.matmul %178, %179, %cst_110 {dimension_numbers = #tpu.dot_dimension_numbers<[1], [0], [0], [1], [0, 0, 1, 1], [], []>} : vector<16x64xf32>, vector<64x64xf32>, vector<16x64xf32> -> vector<16x64xf32>
    %181 = tpu.reciprocal %180 {approx = true} : vector<16x64xf32> -> vector<16x64xf32>
    %182 = arith.mulf %178, %181 : vector<16x64xf32>
    %cst_111 = arith.constant dense<0.000000e+00> : vector<16x32xf32>
    %183 = tpu.matmul %182, %168, %cst_111 {dimension_numbers = #tpu.dot_dimension_numbers<[1], [0], [0], [1], [0, 0, 1, 1], [], []>} : vector<16x64xf32>, vector<64x32xf32>, vector<16x32xf32> -> vector<16x32xf32>
    %c0_112 = arith.constant 0 : index
    %c0_113 = arith.constant 0 : index
    %184 = vector.load %arg69[%c0_112, %c0_113] : memref<32x32xf32, #tpu.memory_space<vmem>>, vector<32x32xf32>
    %cst_114 = arith.constant dense<0.000000e+00> : vector<16x32xf32>
    %185 = tpu.matmul %183, %184, %cst_114 {dimension_numbers = #tpu.dot_dimension_numbers<[1], [0], [0], [1], [0, 0, 1, 1], [], []>} : vector<16x32xf32>, vector<32x32xf32>, vector<16x32xf32> -> vector<16x32xf32>
    %c0_115 = arith.constant 0 : index
    %c0_116 = arith.constant 0 : index
    %186 = vector.load %arg65[%c0_115, %c0_116] : memref<1x32xf32, #tpu.memory_space<vmem>>, vector<1x32xf32>
    %187 = vector.broadcast %186 : vector<1x32xf32> to vector<16x32xf32>
    %188 = arith.addf %185, %187 : vector<16x32xf32>
    %189 = arith.addf %148, %188 : vector<16x32xf32>
    %c0_117 = arith.constant 0 : index
    %c0_118 = arith.constant 0 : index
    %190 = vector.load %arg75[%c0_117, %c0_118] : memref<1x32xf32, #tpu.memory_space<vmem>>, vector<1x32xf32>
    %c0_119 = arith.constant 0 : index
    %c0_120 = arith.constant 0 : index
    %191 = vector.load %arg74[%c0_119, %c0_120] : memref<1x32xf32, #tpu.memory_space<vmem>>, vector<1x32xf32>
    %cst_121 = arith.constant dense<0.000000e+00> : vector<16xf32>
    %192 = vector.multi_reduction <add>, %189, %cst_121 [1] : vector<16x32xf32> to vector<16xf32>
    %193 = vector.shape_cast %192 : vector<16xf32> to vector<16x1xf32>
    %cst_122 = arith.constant 3.200000e+01 : f32
    %194 = vector.broadcast %cst_122 : f32 to vector<16x1xf32>
    %195 = arith.divf %193, %194 : vector<16x1xf32>
    %196 = vector.broadcast %195 : vector<16x1xf32> to vector<16x32xf32>
    %197 = arith.subf %189, %196 : vector<16x32xf32>
    %198 = vector.broadcast %195 : vector<16x1xf32> to vector<16x32xf32>
    %199 = arith.subf %189, %198 : vector<16x32xf32>
    %200 = arith.mulf %197, %199 : vector<16x32xf32>
    %cst_123 = arith.constant dense<0.000000e+00> : vector<16xf32>
    %201 = vector.multi_reduction <add>, %200, %cst_123 [1] : vector<16x32xf32> to vector<16xf32>
    %202 = vector.shape_cast %201 : vector<16xf32> to vector<16x1xf32>
    %cst_124 = arith.constant 3.200000e+01 : f32
    %203 = vector.broadcast %cst_124 : f32 to vector<16x1xf32>
    %204 = arith.divf %202, %203 : vector<16x1xf32>
    %205 = vector.broadcast %195 : vector<16x1xf32> to vector<16x32xf32>
    %206 = arith.subf %189, %205 : vector<16x32xf32>
    %cst_125 = arith.constant 9.99999974E-6 : f32
    %207 = vector.broadcast %cst_125 : f32 to vector<16x1xf32>
    %208 = arith.addf %204, %207 : vector<16x1xf32>
    %209 = math.rsqrt %208 : vector<16x1xf32>
    %210 = vector.broadcast %209 : vector<16x1xf32> to vector<16x32xf32>
    %211 = arith.mulf %206, %210 : vector<16x32xf32>
    %212 = vector.broadcast %190 : vector<1x32xf32> to vector<16x32xf32>
    %213 = arith.mulf %211, %212 : vector<16x32xf32>
    %214 = vector.broadcast %191 : vector<1x32xf32> to vector<16x32xf32>
    %215 = arith.addf %213, %214 : vector<16x32xf32>
    %c0_126 = arith.constant 0 : index
    %c0_127 = arith.constant 0 : index
    %216 = vector.load %arg78[%c0_126, %c0_127] : memref<32x64xf32, #tpu.memory_space<vmem>>, vector<32x64xf32>
    %cst_128 = arith.constant dense<0.000000e+00> : vector<16x64xf32>
    %217 = tpu.matmul %215, %216, %cst_128 {dimension_numbers = #tpu.dot_dimension_numbers<[1], [0], [0], [1], [0, 0, 1, 1], [], []>} : vector<16x32xf32>, vector<32x64xf32>, vector<16x64xf32> -> vector<16x64xf32>
    %c0_129 = arith.constant 0 : index
    %c0_130 = arith.constant 0 : index
    %218 = vector.load %arg72[%c0_129, %c0_130] : memref<1x64xf32, #tpu.memory_space<vmem>>, vector<1x64xf32>
    %219 = vector.broadcast %218 : vector<1x64xf32> to vector<16x64xf32>
    %220 = arith.addf %217, %219 : vector<16x64xf32>
    %cst_131 = arith.constant 0.000000e+00 : f32
    %221 = vector.broadcast %cst_131 : f32 to vector<16x64xf32>
    %222 = arith.maximumf %220, %221 : vector<16x64xf32>
    %c0_132 = arith.constant 0 : index
    %c0_133 = arith.constant 0 : index
    %223 = vector.load %arg79[%c0_132, %c0_133] : memref<64x32xf32, #tpu.memory_space<vmem>>, vector<64x32xf32>
    %cst_134 = arith.constant dense<0.000000e+00> : vector<16x32xf32>
    %224 = tpu.matmul %222, %223, %cst_134 {dimension_numbers = #tpu.dot_dimension_numbers<[1], [0], [0], [1], [0, 0, 1, 1], [], []>} : vector<16x64xf32>, vector<64x32xf32>, vector<16x32xf32> -> vector<16x32xf32>
    %c0_135 = arith.constant 0 : index
    %c0_136 = arith.constant 0 : index
    %225 = vector.load %arg73[%c0_135, %c0_136] : memref<1x32xf32, #tpu.memory_space<vmem>>, vector<1x32xf32>
    %226 = vector.broadcast %225 : vector<1x32xf32> to vector<16x32xf32>
    %227 = arith.addf %224, %226 : vector<16x32xf32>
    %228 = arith.addf %215, %227 : vector<16x32xf32>
    %c0_137 = arith.constant 0 : index
    %c0_138 = arith.constant 0 : index
    %229 = vector.load %arg77[%c0_137, %c0_138] : memref<1x32xf32, #tpu.memory_space<vmem>>, vector<1x32xf32>
    %c0_139 = arith.constant 0 : index
    %c0_140 = arith.constant 0 : index
    %230 = vector.load %arg76[%c0_139, %c0_140] : memref<1x32xf32, #tpu.memory_space<vmem>>, vector<1x32xf32>
    %cst_141 = arith.constant dense<0.000000e+00> : vector<16xf32>
    %231 = vector.multi_reduction <add>, %228, %cst_141 [1] : vector<16x32xf32> to vector<16xf32>
    %232 = vector.shape_cast %231 : vector<16xf32> to vector<16x1xf32>
    %cst_142 = arith.constant 3.200000e+01 : f32
    %233 = vector.broadcast %cst_142 : f32 to vector<16x1xf32>
    %234 = arith.divf %232, %233 : vector<16x1xf32>
    %235 = vector.broadcast %234 : vector<16x1xf32> to vector<16x32xf32>
    %236 = arith.subf %228, %235 : vector<16x32xf32>
    %237 = vector.broadcast %234 : vector<16x1xf32> to vector<16x32xf32>
    %238 = arith.subf %228, %237 : vector<16x32xf32>
    %239 = arith.mulf %236, %238 : vector<16x32xf32>
    %cst_143 = arith.constant dense<0.000000e+00> : vector<16xf32>
    %240 = vector.multi_reduction <add>, %239, %cst_143 [1] : vector<16x32xf32> to vector<16xf32>
    %241 = vector.shape_cast %240 : vector<16xf32> to vector<16x1xf32>
    %cst_144 = arith.constant 3.200000e+01 : f32
    %242 = vector.broadcast %cst_144 : f32 to vector<16x1xf32>
    %243 = arith.divf %241, %242 : vector<16x1xf32>
    %244 = vector.broadcast %234 : vector<16x1xf32> to vector<16x32xf32>
    %245 = arith.subf %228, %244 : vector<16x32xf32>
    %cst_145 = arith.constant 9.99999974E-6 : f32
    %246 = vector.broadcast %cst_145 : f32 to vector<16x1xf32>
    %247 = arith.addf %243, %246 : vector<16x1xf32>
    %248 = math.rsqrt %247 : vector<16x1xf32>
    %249 = vector.broadcast %248 : vector<16x1xf32> to vector<16x32xf32>
    %250 = arith.mulf %245, %249 : vector<16x32xf32>
    %251 = vector.broadcast %229 : vector<1x32xf32> to vector<16x32xf32>
    %252 = arith.mulf %250, %251 : vector<16x32xf32>
    %253 = vector.broadcast %230 : vector<1x32xf32> to vector<16x32xf32>
    %254 = arith.addf %252, %253 : vector<16x32xf32>
    %c0_146 = arith.constant 0 : index
    %c0_147 = arith.constant 0 : index
    %255 = vector.load %arg81[%c0_146, %c0_147] : memref<1x32xf32, #tpu.memory_space<vmem>>, vector<1x32xf32>
    %c0_148 = arith.constant 0 : index
    %c0_149 = arith.constant 0 : index
    %256 = vector.load %arg80[%c0_148, %c0_149] : memref<1x32xf32, #tpu.memory_space<vmem>>, vector<1x32xf32>
    %cst_150 = arith.constant dense<0.000000e+00> : vector<16xf32>
    %257 = vector.multi_reduction <add>, %254, %cst_150 [1] : vector<16x32xf32> to vector<16xf32>
    %258 = vector.shape_cast %257 : vector<16xf32> to vector<16x1xf32>
    %cst_151 = arith.constant 3.200000e+01 : f32
    %259 = vector.broadcast %cst_151 : f32 to vector<16x1xf32>
    %260 = arith.divf %258, %259 : vector<16x1xf32>
    %261 = vector.broadcast %260 : vector<16x1xf32> to vector<16x32xf32>
    %262 = arith.subf %254, %261 : vector<16x32xf32>
    %263 = vector.broadcast %260 : vector<16x1xf32> to vector<16x32xf32>
    %264 = arith.subf %254, %263 : vector<16x32xf32>
    %265 = arith.mulf %262, %264 : vector<16x32xf32>
    %cst_152 = arith.constant dense<0.000000e+00> : vector<16xf32>
    %266 = vector.multi_reduction <add>, %265, %cst_152 [1] : vector<16x32xf32> to vector<16xf32>
    %267 = vector.shape_cast %266 : vector<16xf32> to vector<16x1xf32>
    %cst_153 = arith.constant 3.200000e+01 : f32
    %268 = vector.broadcast %cst_153 : f32 to vector<16x1xf32>
    %269 = arith.divf %267, %268 : vector<16x1xf32>
    %270 = vector.broadcast %260 : vector<16x1xf32> to vector<16x32xf32>
    %271 = arith.subf %254, %270 : vector<16x32xf32>
    %cst_154 = arith.constant 9.99999974E-6 : f32
    %272 = vector.broadcast %cst_154 : f32 to vector<16x1xf32>
    %273 = arith.addf %269, %272 : vector<16x1xf32>
    %274 = math.rsqrt %273 : vector<16x1xf32>
    %275 = vector.broadcast %274 : vector<16x1xf32> to vector<16x32xf32>
    %276 = arith.mulf %271, %275 : vector<16x32xf32>
    %277 = vector.broadcast %255 : vector<1x32xf32> to vector<16x32xf32>
    %278 = arith.mulf %276, %277 : vector<16x32xf32>
    %279 = vector.broadcast %256 : vector<1x32xf32> to vector<16x32xf32>
    %280 = arith.addf %278, %279 : vector<16x32xf32>
    %c0_155 = arith.constant 0 : index
    %c0_156 = arith.constant 0 : index
    %281 = vector.load %arg16[%c0_155, %c0_156] : memref<12x32xf32, #tpu.memory_space<vmem>>, vector<12x32xf32>
    %cst_157 = arith.constant dense<0.000000e+00> : vector<16x32xf32>
    %282 = tpu.matmul %32, %281, %cst_157 {dimension_numbers = #tpu.dot_dimension_numbers<[1], [0], [0], [1], [0, 0, 1, 1], [], []>} : vector<16x12xf32>, vector<12x32xf32>, vector<16x32xf32> -> vector<16x32xf32>
    %c0_158 = arith.constant 0 : index
    %c0_159 = arith.constant 0 : index
    %283 = vector.load %arg4[%c0_158, %c0_159] : memref<16x4xf32, #tpu.memory_space<vmem>>, vector<16x4xf32>
    %c0_160 = arith.constant 0 : index
    %c0_161 = arith.constant 0 : index
    %284 = vector.load %arg17[%c0_160, %c0_161] : memref<4x32xf32, #tpu.memory_space<vmem>>, vector<4x32xf32>
    %cst_162 = arith.constant dense<0.000000e+00> : vector<16x32xf32>
    %285 = tpu.matmul %283, %284, %cst_162 {dimension_numbers = #tpu.dot_dimension_numbers<[1], [0], [0], [1], [0, 0, 1, 1], [], []>} : vector<16x4xf32>, vector<4x32xf32>, vector<16x32xf32> -> vector<16x32xf32>
    %286 = arith.addf %282, %285 : vector<16x32xf32>
    %c0_163 = arith.constant 0 : index
    %c0_164 = arith.constant 0 : index
    %287 = vector.load %arg6[%c0_163, %c0_164] : memref<16x32xf32, #tpu.memory_space<vmem>>, vector<16x32xf32>
    %288 = arith.addf %286, %287 : vector<16x32xf32>
    %c0_165 = arith.constant 0 : index
    %c0_166 = arith.constant 0 : index
    %289 = vector.load %arg40[%c0_165, %c0_166] : memref<32x32xf32, #tpu.memory_space<vmem>>, vector<32x32xf32>
    %cst_167 = arith.constant dense<0.000000e+00> : vector<16x32xf32>
    %290 = tpu.matmul %288, %289, %cst_167 {dimension_numbers = #tpu.dot_dimension_numbers<[1], [0], [0], [1], [0, 0, 1, 1], [], []>} : vector<16x32xf32>, vector<32x32xf32>, vector<16x32xf32> -> vector<16x32xf32>
    %c0_168 = arith.constant 0 : index
    %c0_169 = arith.constant 0 : index
    %291 = vector.load %arg36[%c0_168, %c0_169] : memref<1x32xf32, #tpu.memory_space<vmem>>, vector<1x32xf32>
    %292 = vector.broadcast %291 : vector<1x32xf32> to vector<16x32xf32>
    %293 = arith.addf %290, %292 : vector<16x32xf32>
    %c0_170 = arith.constant 0 : index
    %c0_171 = arith.constant 0 : index
    %294 = vector.load %arg38[%c0_170, %c0_171] : memref<32x32xf32, #tpu.memory_space<vmem>>, vector<32x32xf32>
    %cst_172 = arith.constant dense<0.000000e+00> : vector<16x32xf32>
    %295 = tpu.matmul %288, %294, %cst_172 {dimension_numbers = #tpu.dot_dimension_numbers<[1], [0], [0], [1], [0, 0, 1, 1], [], []>} : vector<16x32xf32>, vector<32x32xf32>, vector<16x32xf32> -> vector<16x32xf32>
    %c0_173 = arith.constant 0 : index
    %c0_174 = arith.constant 0 : index
    %296 = vector.load %arg34[%c0_173, %c0_174] : memref<1x32xf32, #tpu.memory_space<vmem>>, vector<1x32xf32>
    %297 = vector.broadcast %296 : vector<1x32xf32> to vector<16x32xf32>
    %298 = arith.addf %295, %297 : vector<16x32xf32>
    %c0_175 = arith.constant 0 : index
    %c0_176 = arith.constant 0 : index
    %299 = vector.load %arg41[%c0_175, %c0_176] : memref<32x32xf32, #tpu.memory_space<vmem>>, vector<32x32xf32>
    %cst_177 = arith.constant dense<0.000000e+00> : vector<16x32xf32>
    %300 = tpu.matmul %288, %299, %cst_177 {dimension_numbers = #tpu.dot_dimension_numbers<[1], [0], [0], [1], [0, 0, 1, 1], [], []>} : vector<16x32xf32>, vector<32x32xf32>, vector<16x32xf32> -> vector<16x32xf32>
    %c0_178 = arith.constant 0 : index
    %c0_179 = arith.constant 0 : index
    %301 = vector.load %arg37[%c0_178, %c0_179] : memref<1x32xf32, #tpu.memory_space<vmem>>, vector<1x32xf32>
    %302 = vector.broadcast %301 : vector<1x32xf32> to vector<16x32xf32>
    %303 = arith.addf %300, %302 : vector<16x32xf32>
    %c0_180 = arith.constant 0 : index
    %c0_181 = arith.constant 0 : index
    %304 = vector.load %arg13[%c0_180, %c0_181] : memref<64x32xf32, #tpu.memory_space<vmem>>, vector<64x32xf32>
    %305 = tpu.concatenate %298, %298, %298, %298 in 0 : vector<16x32xf32>, vector<16x32xf32>, vector<16x32xf32>, vector<16x32xf32> -> vector<64x32xf32>
    %306 = arith.mulf %305, %304 : vector<64x32xf32>
    %307 = tpu.concatenate %303, %303, %303, %303 in 0 : vector<16x32xf32>, vector<16x32xf32>, vector<16x32xf32>, vector<16x32xf32> -> vector<64x32xf32>
    %308 = arith.mulf %307, %304 : vector<64x32xf32>
    %cst_182 = arith.constant dense<0.000000e+00> : vector<16x64xf32>
    %309 = tpu.matmul %293, %306, %cst_182 {dimension_numbers = #tpu.dot_dimension_numbers<[1], [1], [0], [0], [0, 0, 1, 0], [], []>} : vector<16x32xf32>, vector<64x32xf32>, vector<16x64xf32> -> vector<16x64xf32>
    %cst_183 = arith.constant 0.353553385 : f32
    %310 = vector.broadcast %cst_183 : f32 to vector<16x64xf32>
    %311 = arith.mulf %309, %310 : vector<16x64xf32>
    %c0_184 = arith.constant 0 : index
    %c0_185 = arith.constant 0 : index
    %312 = vector.load %arg10[%c0_184, %c0_185] : memref<16x64xf32, #tpu.memory_space<vmem>>, vector<16x64xf32>
    %313 = arith.addf %311, %312 : vector<16x64xf32>
    %cst_186 = arith.constant dense<0xFF800000> : vector<16xf32>
    %314 = vector.multi_reduction <maximumf>, %313, %cst_186 [1] : vector<16x64xf32> to vector<16xf32>
    %315 = vector.shape_cast %314 : vector<16xf32> to vector<16x1xf32>
    %316 = vector.broadcast %315 : vector<16x1xf32> to vector<16x64xf32>
    %317 = arith.subf %313, %316 : vector<16x64xf32>
    %318 = math.exp %317 : vector<16x64xf32>
    %c0_187 = arith.constant 0 : index
    %c0_188 = arith.constant 0 : index
    %319 = vector.load %arg15[%c0_187, %c0_188] : memref<64x64xf32, #tpu.memory_space<vmem>>, vector<64x64xf32>
    %cst_189 = arith.constant dense<0.000000e+00> : vector<16x64xf32>
    %320 = tpu.matmul %318, %319, %cst_189 {dimension_numbers = #tpu.dot_dimension_numbers<[1], [0], [0], [1], [0, 0, 1, 1], [], []>} : vector<16x64xf32>, vector<64x64xf32>, vector<16x64xf32> -> vector<16x64xf32>
    %321 = tpu.reciprocal %320 {approx = true} : vector<16x64xf32> -> vector<16x64xf32>
    %322 = arith.mulf %318, %321 : vector<16x64xf32>
    %cst_190 = arith.constant dense<0.000000e+00> : vector<16x32xf32>
    %323 = tpu.matmul %322, %308, %cst_190 {dimension_numbers = #tpu.dot_dimension_numbers<[1], [0], [0], [1], [0, 0, 1, 1], [], []>} : vector<16x64xf32>, vector<64x32xf32>, vector<16x32xf32> -> vector<16x32xf32>
    %c0_191 = arith.constant 0 : index
    %c0_192 = arith.constant 0 : index
    %324 = vector.load %arg39[%c0_191, %c0_192] : memref<32x32xf32, #tpu.memory_space<vmem>>, vector<32x32xf32>
    %cst_193 = arith.constant dense<0.000000e+00> : vector<16x32xf32>
    %325 = tpu.matmul %323, %324, %cst_193 {dimension_numbers = #tpu.dot_dimension_numbers<[1], [0], [0], [1], [0, 0, 1, 1], [], []>} : vector<16x32xf32>, vector<32x32xf32>, vector<16x32xf32> -> vector<16x32xf32>
    %c0_194 = arith.constant 0 : index
    %c0_195 = arith.constant 0 : index
    %326 = vector.load %arg35[%c0_194, %c0_195] : memref<1x32xf32, #tpu.memory_space<vmem>>, vector<1x32xf32>
    %327 = vector.broadcast %326 : vector<1x32xf32> to vector<16x32xf32>
    %328 = arith.addf %325, %327 : vector<16x32xf32>
    %329 = arith.addf %288, %328 : vector<16x32xf32>
    %c0_196 = arith.constant 0 : index
    %c0_197 = arith.constant 0 : index
    %330 = vector.load %arg29[%c0_196, %c0_197] : memref<1x32xf32, #tpu.memory_space<vmem>>, vector<1x32xf32>
    %c0_198 = arith.constant 0 : index
    %c0_199 = arith.constant 0 : index
    %331 = vector.load %arg28[%c0_198, %c0_199] : memref<1x32xf32, #tpu.memory_space<vmem>>, vector<1x32xf32>
    %cst_200 = arith.constant dense<0.000000e+00> : vector<16xf32>
    %332 = vector.multi_reduction <add>, %329, %cst_200 [1] : vector<16x32xf32> to vector<16xf32>
    %333 = vector.shape_cast %332 : vector<16xf32> to vector<16x1xf32>
    %cst_201 = arith.constant 3.200000e+01 : f32
    %334 = vector.broadcast %cst_201 : f32 to vector<16x1xf32>
    %335 = arith.divf %333, %334 : vector<16x1xf32>
    %336 = vector.broadcast %335 : vector<16x1xf32> to vector<16x32xf32>
    %337 = arith.subf %329, %336 : vector<16x32xf32>
    %338 = vector.broadcast %335 : vector<16x1xf32> to vector<16x32xf32>
    %339 = arith.subf %329, %338 : vector<16x32xf32>
    %340 = arith.mulf %337, %339 : vector<16x32xf32>
    %cst_202 = arith.constant dense<0.000000e+00> : vector<16xf32>
    %341 = vector.multi_reduction <add>, %340, %cst_202 [1] : vector<16x32xf32> to vector<16xf32>
    %342 = vector.shape_cast %341 : vector<16xf32> to vector<16x1xf32>
    %cst_203 = arith.constant 3.200000e+01 : f32
    %343 = vector.broadcast %cst_203 : f32 to vector<16x1xf32>
    %344 = arith.divf %342, %343 : vector<16x1xf32>
    %345 = vector.broadcast %335 : vector<16x1xf32> to vector<16x32xf32>
    %346 = arith.subf %329, %345 : vector<16x32xf32>
    %cst_204 = arith.constant 9.99999974E-6 : f32
    %347 = vector.broadcast %cst_204 : f32 to vector<16x1xf32>
    %348 = arith.addf %344, %347 : vector<16x1xf32>
    %349 = math.rsqrt %348 : vector<16x1xf32>
    %350 = vector.broadcast %349 : vector<16x1xf32> to vector<16x32xf32>
    %351 = arith.mulf %346, %350 : vector<16x32xf32>
    %352 = vector.broadcast %330 : vector<1x32xf32> to vector<16x32xf32>
    %353 = arith.mulf %351, %352 : vector<16x32xf32>
    %354 = vector.broadcast %331 : vector<1x32xf32> to vector<16x32xf32>
    %355 = arith.addf %353, %354 : vector<16x32xf32>
    %c0_205 = arith.constant 0 : index
    %c0_206 = arith.constant 0 : index
    %356 = vector.load %arg26[%c0_205, %c0_206] : memref<32x32xf32, #tpu.memory_space<vmem>>, vector<32x32xf32>
    %cst_207 = arith.constant dense<0.000000e+00> : vector<16x32xf32>
    %357 = tpu.matmul %355, %356, %cst_207 {dimension_numbers = #tpu.dot_dimension_numbers<[1], [0], [0], [1], [0, 0, 1, 1], [], []>} : vector<16x32xf32>, vector<32x32xf32>, vector<16x32xf32> -> vector<16x32xf32>
    %c0_208 = arith.constant 0 : index
    %c0_209 = arith.constant 0 : index
    %358 = vector.load %arg22[%c0_208, %c0_209] : memref<1x32xf32, #tpu.memory_space<vmem>>, vector<1x32xf32>
    %359 = vector.broadcast %358 : vector<1x32xf32> to vector<16x32xf32>
    %360 = arith.addf %357, %359 : vector<16x32xf32>
    %c0_210 = arith.constant 0 : index
    %c0_211 = arith.constant 0 : index
    %361 = vector.load %arg24[%c0_210, %c0_211] : memref<32x32xf32, #tpu.memory_space<vmem>>, vector<32x32xf32>
    %cst_212 = arith.constant dense<0.000000e+00> : vector<16x32xf32>
    %362 = tpu.matmul %280, %361, %cst_212 {dimension_numbers = #tpu.dot_dimension_numbers<[1], [0], [0], [1], [0, 0, 1, 1], [], []>} : vector<16x32xf32>, vector<32x32xf32>, vector<16x32xf32> -> vector<16x32xf32>
    %c0_213 = arith.constant 0 : index
    %c0_214 = arith.constant 0 : index
    %363 = vector.load %arg20[%c0_213, %c0_214] : memref<1x32xf32, #tpu.memory_space<vmem>>, vector<1x32xf32>
    %364 = vector.broadcast %363 : vector<1x32xf32> to vector<16x32xf32>
    %365 = arith.addf %362, %364 : vector<16x32xf32>
    %c0_215 = arith.constant 0 : index
    %c0_216 = arith.constant 0 : index
    %366 = vector.load %arg27[%c0_215, %c0_216] : memref<32x32xf32, #tpu.memory_space<vmem>>, vector<32x32xf32>
    %cst_217 = arith.constant dense<0.000000e+00> : vector<16x32xf32>
    %367 = tpu.matmul %280, %366, %cst_217 {dimension_numbers = #tpu.dot_dimension_numbers<[1], [0], [0], [1], [0, 0, 1, 1], [], []>} : vector<16x32xf32>, vector<32x32xf32>, vector<16x32xf32> -> vector<16x32xf32>
    %c0_218 = arith.constant 0 : index
    %c0_219 = arith.constant 0 : index
    %368 = vector.load %arg23[%c0_218, %c0_219] : memref<1x32xf32, #tpu.memory_space<vmem>>, vector<1x32xf32>
    %369 = vector.broadcast %368 : vector<1x32xf32> to vector<16x32xf32>
    %370 = arith.addf %367, %369 : vector<16x32xf32>
    %c0_220 = arith.constant 0 : index
    %c0_221 = arith.constant 0 : index
    %371 = vector.load %arg12[%c0_220, %c0_221] : memref<64x32xf32, #tpu.memory_space<vmem>>, vector<64x32xf32>
    %372 = tpu.concatenate %365, %365, %365, %365 in 0 : vector<16x32xf32>, vector<16x32xf32>, vector<16x32xf32>, vector<16x32xf32> -> vector<64x32xf32>
    %373 = arith.mulf %372, %371 : vector<64x32xf32>
    %374 = tpu.concatenate %370, %370, %370, %370 in 0 : vector<16x32xf32>, vector<16x32xf32>, vector<16x32xf32>, vector<16x32xf32> -> vector<64x32xf32>
    %375 = arith.mulf %374, %371 : vector<64x32xf32>
    %cst_222 = arith.constant dense<0.000000e+00> : vector<16x64xf32>
    %376 = tpu.matmul %360, %373, %cst_222 {dimension_numbers = #tpu.dot_dimension_numbers<[1], [1], [0], [0], [0, 0, 1, 0], [], []>} : vector<16x32xf32>, vector<64x32xf32>, vector<16x64xf32> -> vector<16x64xf32>
    %cst_223 = arith.constant 0.353553385 : f32
    %377 = vector.broadcast %cst_223 : f32 to vector<16x64xf32>
    %378 = arith.mulf %376, %377 : vector<16x64xf32>
    %c0_224 = arith.constant 0 : index
    %c0_225 = arith.constant 0 : index
    %379 = vector.load %arg11[%c0_224, %c0_225] : memref<16x64xf32, #tpu.memory_space<vmem>>, vector<16x64xf32>
    %380 = arith.addf %378, %379 : vector<16x64xf32>
    %cst_226 = arith.constant dense<0xFF800000> : vector<16xf32>
    %381 = vector.multi_reduction <maximumf>, %380, %cst_226 [1] : vector<16x64xf32> to vector<16xf32>
    %382 = vector.shape_cast %381 : vector<16xf32> to vector<16x1xf32>
    %383 = vector.broadcast %382 : vector<16x1xf32> to vector<16x64xf32>
    %384 = arith.subf %380, %383 : vector<16x64xf32>
    %385 = math.exp %384 : vector<16x64xf32>
    %c0_227 = arith.constant 0 : index
    %c0_228 = arith.constant 0 : index
    %386 = vector.load %arg14[%c0_227, %c0_228] : memref<64x64xf32, #tpu.memory_space<vmem>>, vector<64x64xf32>
    %cst_229 = arith.constant dense<0.000000e+00> : vector<16x64xf32>
    %387 = tpu.matmul %385, %386, %cst_229 {dimension_numbers = #tpu.dot_dimension_numbers<[1], [0], [0], [1], [0, 0, 1, 1], [], []>} : vector<16x64xf32>, vector<64x64xf32>, vector<16x64xf32> -> vector<16x64xf32>
    %388 = tpu.reciprocal %387 {approx = true} : vector<16x64xf32> -> vector<16x64xf32>
    %389 = arith.mulf %385, %388 : vector<16x64xf32>
    %cst_230 = arith.constant dense<0.000000e+00> : vector<16x32xf32>
    %390 = tpu.matmul %389, %375, %cst_230 {dimension_numbers = #tpu.dot_dimension_numbers<[1], [0], [0], [1], [0, 0, 1, 1], [], []>} : vector<16x64xf32>, vector<64x32xf32>, vector<16x32xf32> -> vector<16x32xf32>
    %c0_231 = arith.constant 0 : index
    %c0_232 = arith.constant 0 : index
    %391 = vector.load %arg25[%c0_231, %c0_232] : memref<32x32xf32, #tpu.memory_space<vmem>>, vector<32x32xf32>
    %cst_233 = arith.constant dense<0.000000e+00> : vector<16x32xf32>
    %392 = tpu.matmul %390, %391, %cst_233 {dimension_numbers = #tpu.dot_dimension_numbers<[1], [0], [0], [1], [0, 0, 1, 1], [], []>} : vector<16x32xf32>, vector<32x32xf32>, vector<16x32xf32> -> vector<16x32xf32>
    %c0_234 = arith.constant 0 : index
    %c0_235 = arith.constant 0 : index
    %393 = vector.load %arg21[%c0_234, %c0_235] : memref<1x32xf32, #tpu.memory_space<vmem>>, vector<1x32xf32>
    %394 = vector.broadcast %393 : vector<1x32xf32> to vector<16x32xf32>
    %395 = arith.addf %392, %394 : vector<16x32xf32>
    %396 = arith.addf %355, %395 : vector<16x32xf32>
    %c0_236 = arith.constant 0 : index
    %c0_237 = arith.constant 0 : index
    %397 = vector.load %arg31[%c0_236, %c0_237] : memref<1x32xf32, #tpu.memory_space<vmem>>, vector<1x32xf32>
    %c0_238 = arith.constant 0 : index
    %c0_239 = arith.constant 0 : index
    %398 = vector.load %arg30[%c0_238, %c0_239] : memref<1x32xf32, #tpu.memory_space<vmem>>, vector<1x32xf32>
    %cst_240 = arith.constant dense<0.000000e+00> : vector<16xf32>
    %399 = vector.multi_reduction <add>, %396, %cst_240 [1] : vector<16x32xf32> to vector<16xf32>
    %400 = vector.shape_cast %399 : vector<16xf32> to vector<16x1xf32>
    %cst_241 = arith.constant 3.200000e+01 : f32
    %401 = vector.broadcast %cst_241 : f32 to vector<16x1xf32>
    %402 = arith.divf %400, %401 : vector<16x1xf32>
    %403 = vector.broadcast %402 : vector<16x1xf32> to vector<16x32xf32>
    %404 = arith.subf %396, %403 : vector<16x32xf32>
    %405 = vector.broadcast %402 : vector<16x1xf32> to vector<16x32xf32>
    %406 = arith.subf %396, %405 : vector<16x32xf32>
    %407 = arith.mulf %404, %406 : vector<16x32xf32>
    %cst_242 = arith.constant dense<0.000000e+00> : vector<16xf32>
    %408 = vector.multi_reduction <add>, %407, %cst_242 [1] : vector<16x32xf32> to vector<16xf32>
    %409 = vector.shape_cast %408 : vector<16xf32> to vector<16x1xf32>
    %cst_243 = arith.constant 3.200000e+01 : f32
    %410 = vector.broadcast %cst_243 : f32 to vector<16x1xf32>
    %411 = arith.divf %409, %410 : vector<16x1xf32>
    %412 = vector.broadcast %402 : vector<16x1xf32> to vector<16x32xf32>
    %413 = arith.subf %396, %412 : vector<16x32xf32>
    %cst_244 = arith.constant 9.99999974E-6 : f32
    %414 = vector.broadcast %cst_244 : f32 to vector<16x1xf32>
    %415 = arith.addf %411, %414 : vector<16x1xf32>
    %416 = math.rsqrt %415 : vector<16x1xf32>
    %417 = vector.broadcast %416 : vector<16x1xf32> to vector<16x32xf32>
    %418 = arith.mulf %413, %417 : vector<16x32xf32>
    %419 = vector.broadcast %397 : vector<1x32xf32> to vector<16x32xf32>
    %420 = arith.mulf %418, %419 : vector<16x32xf32>
    %421 = vector.broadcast %398 : vector<1x32xf32> to vector<16x32xf32>
    %422 = arith.addf %420, %421 : vector<16x32xf32>
    %c0_245 = arith.constant 0 : index
    %c0_246 = arith.constant 0 : index
    %423 = vector.load %arg42[%c0_245, %c0_246] : memref<32x64xf32, #tpu.memory_space<vmem>>, vector<32x64xf32>
    %cst_247 = arith.constant dense<0.000000e+00> : vector<16x64xf32>
    %424 = tpu.matmul %422, %423, %cst_247 {dimension_numbers = #tpu.dot_dimension_numbers<[1], [0], [0], [1], [0, 0, 1, 1], [], []>} : vector<16x32xf32>, vector<32x64xf32>, vector<16x64xf32> -> vector<16x64xf32>
    %c0_248 = arith.constant 0 : index
    %c0_249 = arith.constant 0 : index
    %425 = vector.load %arg18[%c0_248, %c0_249] : memref<1x64xf32, #tpu.memory_space<vmem>>, vector<1x64xf32>
    %426 = vector.broadcast %425 : vector<1x64xf32> to vector<16x64xf32>
    %427 = arith.addf %424, %426 : vector<16x64xf32>
    %cst_250 = arith.constant 0.000000e+00 : f32
    %428 = vector.broadcast %cst_250 : f32 to vector<16x64xf32>
    %429 = arith.maximumf %427, %428 : vector<16x64xf32>
    %c0_251 = arith.constant 0 : index
    %c0_252 = arith.constant 0 : index
    %430 = vector.load %arg43[%c0_251, %c0_252] : memref<64x32xf32, #tpu.memory_space<vmem>>, vector<64x32xf32>
    %cst_253 = arith.constant dense<0.000000e+00> : vector<16x32xf32>
    %431 = tpu.matmul %429, %430, %cst_253 {dimension_numbers = #tpu.dot_dimension_numbers<[1], [0], [0], [1], [0, 0, 1, 1], [], []>} : vector<16x64xf32>, vector<64x32xf32>, vector<16x32xf32> -> vector<16x32xf32>
    %c0_254 = arith.constant 0 : index
    %c0_255 = arith.constant 0 : index
    %432 = vector.load %arg19[%c0_254, %c0_255] : memref<1x32xf32, #tpu.memory_space<vmem>>, vector<1x32xf32>
    %433 = vector.broadcast %432 : vector<1x32xf32> to vector<16x32xf32>
    %434 = arith.addf %431, %433 : vector<16x32xf32>
    %435 = arith.addf %422, %434 : vector<16x32xf32>
    %c0_256 = arith.constant 0 : index
    %c0_257 = arith.constant 0 : index
    %436 = vector.load %arg33[%c0_256, %c0_257] : memref<1x32xf32, #tpu.memory_space<vmem>>, vector<1x32xf32>
    %c0_258 = arith.constant 0 : index
    %c0_259 = arith.constant 0 : index
    %437 = vector.load %arg32[%c0_258, %c0_259] : memref<1x32xf32, #tpu.memory_space<vmem>>, vector<1x32xf32>
    %cst_260 = arith.constant dense<0.000000e+00> : vector<16xf32>
    %438 = vector.multi_reduction <add>, %435, %cst_260 [1] : vector<16x32xf32> to vector<16xf32>
    %439 = vector.shape_cast %438 : vector<16xf32> to vector<16x1xf32>
    %cst_261 = arith.constant 3.200000e+01 : f32
    %440 = vector.broadcast %cst_261 : f32 to vector<16x1xf32>
    %441 = arith.divf %439, %440 : vector<16x1xf32>
    %442 = vector.broadcast %441 : vector<16x1xf32> to vector<16x32xf32>
    %443 = arith.subf %435, %442 : vector<16x32xf32>
    %444 = vector.broadcast %441 : vector<16x1xf32> to vector<16x32xf32>
    %445 = arith.subf %435, %444 : vector<16x32xf32>
    %446 = arith.mulf %443, %445 : vector<16x32xf32>
    %cst_262 = arith.constant dense<0.000000e+00> : vector<16xf32>
    %447 = vector.multi_reduction <add>, %446, %cst_262 [1] : vector<16x32xf32> to vector<16xf32>
    %448 = vector.shape_cast %447 : vector<16xf32> to vector<16x1xf32>
    %cst_263 = arith.constant 3.200000e+01 : f32
    %449 = vector.broadcast %cst_263 : f32 to vector<16x1xf32>
    %450 = arith.divf %448, %449 : vector<16x1xf32>
    %451 = vector.broadcast %441 : vector<16x1xf32> to vector<16x32xf32>
    %452 = arith.subf %435, %451 : vector<16x32xf32>
    %cst_264 = arith.constant 9.99999974E-6 : f32
    %453 = vector.broadcast %cst_264 : f32 to vector<16x1xf32>
    %454 = arith.addf %450, %453 : vector<16x1xf32>
    %455 = math.rsqrt %454 : vector<16x1xf32>
    %456 = vector.broadcast %455 : vector<16x1xf32> to vector<16x32xf32>
    %457 = arith.mulf %452, %456 : vector<16x32xf32>
    %458 = vector.broadcast %436 : vector<1x32xf32> to vector<16x32xf32>
    %459 = arith.mulf %457, %458 : vector<16x32xf32>
    %460 = vector.broadcast %437 : vector<1x32xf32> to vector<16x32xf32>
    %461 = arith.addf %459, %460 : vector<16x32xf32>
    %c0_265 = arith.constant 0 : index
    %c0_266 = arith.constant 0 : index
    %462 = vector.load %arg45[%c0_265, %c0_266] : memref<1x32xf32, #tpu.memory_space<vmem>>, vector<1x32xf32>
    %c0_267 = arith.constant 0 : index
    %c0_268 = arith.constant 0 : index
    %463 = vector.load %arg44[%c0_267, %c0_268] : memref<1x32xf32, #tpu.memory_space<vmem>>, vector<1x32xf32>
    %cst_269 = arith.constant dense<0.000000e+00> : vector<16xf32>
    %464 = vector.multi_reduction <add>, %461, %cst_269 [1] : vector<16x32xf32> to vector<16xf32>
    %465 = vector.shape_cast %464 : vector<16xf32> to vector<16x1xf32>
    %cst_270 = arith.constant 3.200000e+01 : f32
    %466 = vector.broadcast %cst_270 : f32 to vector<16x1xf32>
    %467 = arith.divf %465, %466 : vector<16x1xf32>
    %468 = vector.broadcast %467 : vector<16x1xf32> to vector<16x32xf32>
    %469 = arith.subf %461, %468 : vector<16x32xf32>
    %470 = vector.broadcast %467 : vector<16x1xf32> to vector<16x32xf32>
    %471 = arith.subf %461, %470 : vector<16x32xf32>
    %472 = arith.mulf %469, %471 : vector<16x32xf32>
    %cst_271 = arith.constant dense<0.000000e+00> : vector<16xf32>
    %473 = vector.multi_reduction <add>, %472, %cst_271 [1] : vector<16x32xf32> to vector<16xf32>
    %474 = vector.shape_cast %473 : vector<16xf32> to vector<16x1xf32>
    %cst_272 = arith.constant 3.200000e+01 : f32
    %475 = vector.broadcast %cst_272 : f32 to vector<16x1xf32>
    %476 = arith.divf %474, %475 : vector<16x1xf32>
    %477 = vector.broadcast %467 : vector<16x1xf32> to vector<16x32xf32>
    %478 = arith.subf %461, %477 : vector<16x32xf32>
    %cst_273 = arith.constant 9.99999974E-6 : f32
    %479 = vector.broadcast %cst_273 : f32 to vector<16x1xf32>
    %480 = arith.addf %476, %479 : vector<16x1xf32>
    %481 = math.rsqrt %480 : vector<16x1xf32>
    %482 = vector.broadcast %481 : vector<16x1xf32> to vector<16x32xf32>
    %483 = arith.mulf %478, %482 : vector<16x32xf32>
    %484 = vector.broadcast %462 : vector<1x32xf32> to vector<16x32xf32>
    %485 = arith.mulf %483, %484 : vector<16x32xf32>
    %486 = vector.broadcast %463 : vector<1x32xf32> to vector<16x32xf32>
    %487 = arith.addf %485, %486 : vector<16x32xf32>
    %c0_274 = arith.constant 0 : index
    %c0_275 = arith.constant 0 : index
    %488 = vector.load %arg83[%c0_274, %c0_275] : memref<32x4xf32, #tpu.memory_space<vmem>>, vector<32x4xf32>
    %cst_276 = arith.constant dense<0.000000e+00> : vector<16x4xf32>
    %489 = tpu.matmul %487, %488, %cst_276 {dimension_numbers = #tpu.dot_dimension_numbers<[1], [0], [0], [1], [0, 0, 1, 1], [], []>} : vector<16x32xf32>, vector<32x4xf32>, vector<16x4xf32> -> vector<16x4xf32>
    %c0_277 = arith.constant 0 : index
    %c0_278 = arith.constant 0 : index
    %490 = vector.load %arg82[%c0_277, %c0_278] : memref<1x4xf32, #tpu.memory_space<vmem>>, vector<1x4xf32>
    %491 = vector.broadcast %490 : vector<1x4xf32> to vector<16x4xf32>
    %492 = arith.addf %489, %491 : vector<16x4xf32>
    %493 = arith.mulf %492, %34 : vector<16x4xf32>
    %494 = arith.addf %493, %33 : vector<16x4xf32>
    %c0_279 = arith.constant 0 : index
    %c0_280 = arith.constant 0 : index
    %495 = vector.load %arg84[%c0_279, %c0_280] : memref<16x4xf32, #tpu.memory_space<vmem>>, vector<16x4xf32>
    tpu.vector_store %arg84[%c0_279, %c0_280], %494 {strides = array<i32>} : memref<16x4xf32, #tpu.memory_space<vmem>>, vector<16x4xf32>,
    return
  }
  func.func @transform_0(%arg0: i32) -> (i32, i32) {
    %c0_i32 = arith.constant 0 : i32
    %c0_i32_0 = arith.constant 0 : i32
    %c0_i32_1 = arith.constant 0 : i32
    return %c0_i32, %c0_i32_0 : i32, i32
  }
  func.func @transform_1(%arg0: i32) -> (i32, i32) {
    %c0_i32 = arith.constant 0 : i32
    %c0_i32_0 = arith.constant 0 : i32
    %c0_i32_1 = arith.constant 0 : i32
    return %c0_i32, %c0_i32_0 : i32, i32
  }
  func.func @transform_2(%arg0: i32) -> (i32, i32) {
    %c0_i32 = arith.constant 0 : i32
    %c0_i32_0 = arith.constant 0 : i32
    %c0_i32_1 = arith.constant 0 : i32
    return %c0_i32, %c0_i32_0 : i32, i32
  }
  func.func @transform_3(%arg0: i32) -> (i32, i32) {
    %c0_i32 = arith.constant 0 : i32
    %c0_i32_0 = arith.constant 0 : i32
    %c0_i32_1 = arith.constant 0 : i32
    return %c0_i32, %c0_i32_0 : i32, i32
  }
  func.func @transform_4(%arg0: i32) -> (i32, i32) {
    %c0_i32 = arith.constant 0 : i32
    %c0_i32_0 = arith.constant 0 : i32
    %c0_i32_1 = arith.constant 0 : i32
    return %c0_i32, %c0_i32_0 : i32, i32
  }
  func.func @transform_5(%arg0: i32) -> (i32, i32) {
    %c0_i32 = arith.constant 0 : i32
    %c0_i32_0 = arith.constant 0 : i32
    %c0_i32_1 = arith.constant 0 : i32
    return %c0_i32, %c0_i32_0 : i32, i32
  }
  func.func @transform_6(%arg0: i32) -> (i32, i32) {
    %c0_i32 = arith.constant 0 : i32
    %c0_i32_0 = arith.constant 0 : i32
    %c0_i32_1 = arith.constant 0 : i32
    return %c0_i32, %c0_i32_0 : i32, i32
  }
  func.func @transform_7(%arg0: i32) -> (i32, i32) {
    %c0_i32 = arith.constant 0 : i32
    %c0_i32_0 = arith.constant 0 : i32
    %c0_i32_1 = arith.constant 0 : i32
    return %c0_i32, %c0_i32_0 : i32, i32
  }
  func.func @transform_8(%arg0: i32) -> (i32, i32) {
    %c0_i32 = arith.constant 0 : i32
    %c0_i32_0 = arith.constant 0 : i32
    %c0_i32_1 = arith.constant 0 : i32
    return %c0_i32, %c0_i32_0 : i32, i32
  }
  func.func @transform_9(%arg0: i32) -> (i32, i32) {
    %c0_i32 = arith.constant 0 : i32
    %c0_i32_0 = arith.constant 0 : i32
    %c0_i32_1 = arith.constant 0 : i32
    return %c0_i32, %c0_i32_0 : i32, i32
  }
  func.func @transform_10(%arg0: i32) -> (i32, i32) {
    %c0_i32 = arith.constant 0 : i32
    %c0_i32_0 = arith.constant 0 : i32
    %c0_i32_1 = arith.constant 0 : i32
    return %c0_i32, %c0_i32_0 : i32, i32
  }
  func.func @transform_11(%arg0: i32) -> (i32, i32) {
    %c0_i32 = arith.constant 0 : i32
    %c0_i32_0 = arith.constant 0 : i32
    %c0_i32_1 = arith.constant 0 : i32
    return %c0_i32, %c0_i32_0 : i32, i32
  }
  func.func @transform_12(%arg0: i32) -> (i32, i32) {
    %c0_i32 = arith.constant 0 : i32
    %c0_i32_0 = arith.constant 0 : i32
    %c0_i32_1 = arith.constant 0 : i32
    return %c0_i32, %c0_i32_0 : i32, i32
  }
  func.func @transform_13(%arg0: i32) -> (i32, i32) {
    %c0_i32 = arith.constant 0 : i32
    %c0_i32_0 = arith.constant 0 : i32
    %c0_i32_1 = arith.constant 0 : i32
    return %c0_i32, %c0_i32_0 : i32, i32
  }
  func.func @transform_14(%arg0: i32) -> (i32, i32) {
    %c0_i32 = arith.constant 0 : i32
    %c0_i32_0 = arith.constant 0 : i32
    %c0_i32_1 = arith.constant 0 : i32
    return %c0_i32, %c0_i32_0 : i32, i32
  }
  func.func @transform_15(%arg0: i32) -> (i32, i32) {
    %c0_i32 = arith.constant 0 : i32
    %c0_i32_0 = arith.constant 0 : i32
    %c0_i32_1 = arith.constant 0 : i32
    return %c0_i32, %c0_i32_0 : i32, i32
  }
  func.func @transform_16(%arg0: i32) -> (i32, i32) {
    %c0_i32 = arith.constant 0 : i32
    %c0_i32_0 = arith.constant 0 : i32
    %c0_i32_1 = arith.constant 0 : i32
    return %c0_i32, %c0_i32_0 : i32, i32
  }
  func.func @transform_17(%arg0: i32) -> (i32, i32) {
    %c0_i32 = arith.constant 0 : i32
    %c0_i32_0 = arith.constant 0 : i32
    %c0_i32_1 = arith.constant 0 : i32
    return %c0_i32, %c0_i32_0 : i32, i32
  }
  func.func @transform_18(%arg0: i32) -> (i32, i32) {
    %c0_i32 = arith.constant 0 : i32
    %c0_i32_0 = arith.constant 0 : i32
    %c0_i32_1 = arith.constant 0 : i32
    return %c0_i32, %c0_i32_0 : i32, i32
  }
  func.func @transform_19(%arg0: i32) -> (i32, i32) {
    %c0_i32 = arith.constant 0 : i32
    %c0_i32_0 = arith.constant 0 : i32
    %c0_i32_1 = arith.constant 0 : i32
    return %c0_i32, %c0_i32_0 : i32, i32
  }
  func.func @transform_20(%arg0: i32) -> (i32, i32) {
    %c0_i32 = arith.constant 0 : i32
    %c0_i32_0 = arith.constant 0 : i32
    %c0_i32_1 = arith.constant 0 : i32
    return %c0_i32, %c0_i32_0 : i32, i32
  }
  func.func @transform_21(%arg0: i32) -> (i32, i32) {
    %c0_i32 = arith.constant 0 : i32
    %c0_i32_0 = arith.constant 0 : i32
    %c0_i32_1 = arith.constant 0 : i32
    return %c0_i32, %c0_i32_0 : i32, i32
  }
  func.func @transform_22(%arg0: i32) -> (i32, i32) {
    %c0_i32 = arith.constant 0 : i32
    %c0_i32_0 = arith.constant 0 : i32
    %c0_i32_1 = arith.constant 0 : i32
    return %c0_i32, %c0_i32_0 : i32, i32
  }
  func.func @transform_23(%arg0: i32) -> (i32, i32) {
    %c0_i32 = arith.constant 0 : i32
    %c0_i32_0 = arith.constant 0 : i32
    %c0_i32_1 = arith.constant 0 : i32
    return %c0_i32, %c0_i32_0 : i32, i32
  }
  func.func @transform_24(%arg0: i32) -> (i32, i32) {
    %c0_i32 = arith.constant 0 : i32
    %c0_i32_0 = arith.constant 0 : i32
    %c0_i32_1 = arith.constant 0 : i32
    return %c0_i32, %c0_i32_0 : i32, i32
  }
  func.func @transform_25(%arg0: i32) -> (i32, i32) {
    %c0_i32 = arith.constant 0 : i32
    %c0_i32_0 = arith.constant 0 : i32
    %c0_i32_1 = arith.constant 0 : i32
    return %c0_i32, %c0_i32_0 : i32, i32
  }
  func.func @transform_26(%arg0: i32) -> (i32, i32) {
    %c0_i32 = arith.constant 0 : i32
    %c0_i32_0 = arith.constant 0 : i32
    %c0_i32_1 = arith.constant 0 : i32
    return %c0_i32, %c0_i32_0 : i32, i32
  }
  func.func @transform_27(%arg0: i32) -> (i32, i32) {
    %c0_i32 = arith.constant 0 : i32
    %c0_i32_0 = arith.constant 0 : i32
    %c0_i32_1 = arith.constant 0 : i32
    return %c0_i32, %c0_i32_0 : i32, i32
  }
  func.func @transform_28(%arg0: i32) -> (i32, i32) {
    %c0_i32 = arith.constant 0 : i32
    %c0_i32_0 = arith.constant 0 : i32
    %c0_i32_1 = arith.constant 0 : i32
    return %c0_i32, %c0_i32_0 : i32, i32
  }
  func.func @transform_29(%arg0: i32) -> (i32, i32) {
    %c0_i32 = arith.constant 0 : i32
    %c0_i32_0 = arith.constant 0 : i32
    %c0_i32_1 = arith.constant 0 : i32
    return %c0_i32, %c0_i32_0 : i32, i32
  }
  func.func @transform_30(%arg0: i32) -> (i32, i32) {
    %c0_i32 = arith.constant 0 : i32
    %c0_i32_0 = arith.constant 0 : i32
    %c0_i32_1 = arith.constant 0 : i32
    return %c0_i32, %c0_i32_0 : i32, i32
  }
  func.func @transform_31(%arg0: i32) -> (i32, i32) {
    %c0_i32 = arith.constant 0 : i32
    %c0_i32_0 = arith.constant 0 : i32
    %c0_i32_1 = arith.constant 0 : i32
    return %c0_i32, %c0_i32_0 : i32, i32
  }
  func.func @transform_32(%arg0: i32) -> (i32, i32) {
    %c0_i32 = arith.constant 0 : i32
    %c0_i32_0 = arith.constant 0 : i32
    %c0_i32_1 = arith.constant 0 : i32
    return %c0_i32, %c0_i32_0 : i32, i32
  }
  func.func @transform_33(%arg0: i32) -> (i32, i32) {
    %c0_i32 = arith.constant 0 : i32
    %c0_i32_0 = arith.constant 0 : i32
    %c0_i32_1 = arith.constant 0 : i32
    return %c0_i32, %c0_i32_0 : i32, i32
  }
  func.func @transform_34(%arg0: i32) -> (i32, i32) {
    %c0_i32 = arith.constant 0 : i32
    %c0_i32_0 = arith.constant 0 : i32
    %c0_i32_1 = arith.constant 0 : i32
    return %c0_i32, %c0_i32_0 : i32, i32
  }
  func.func @transform_35(%arg0: i32) -> (i32, i32) {
    %c0_i32 = arith.constant 0 : i32
    %c0_i32_0 = arith.constant 0 : i32
    %c0_i32_1 = arith.constant 0 : i32
    return %c0_i32, %c0_i32_0 : i32, i32
  }
  func.func @transform_36(%arg0: i32) -> (i32, i32) {
    %c0_i32 = arith.constant 0 : i32
    %c0_i32_0 = arith.constant 0 : i32
    %c0_i32_1 = arith.constant 0 : i32
    return %c0_i32, %c0_i32_0 : i32, i32
  }
  func.func @transform_37(%arg0: i32) -> (i32, i32) {
    %c0_i32 = arith.constant 0 : i32
    %c0_i32_0 = arith.constant 0 : i32
    %c0_i32_1 = arith.constant 0 : i32
    return %c0_i32, %c0_i32_0 : i32, i32
  }
  func.func @transform_38(%arg0: i32) -> (i32, i32) {
    %c0_i32 = arith.constant 0 : i32
    %c0_i32_0 = arith.constant 0 : i32
    %c0_i32_1 = arith.constant 0 : i32
    return %c0_i32, %c0_i32_0 : i32, i32
  }
  func.func @transform_39(%arg0: i32) -> (i32, i32) {
    %c0_i32 = arith.constant 0 : i32
    %c0_i32_0 = arith.constant 0 : i32
    %c0_i32_1 = arith.constant 0 : i32
    return %c0_i32, %c0_i32_0 : i32, i32
  }
  func.func @transform_40(%arg0: i32) -> (i32, i32) {
    %c0_i32 = arith.constant 0 : i32
    %c0_i32_0 = arith.constant 0 : i32
    %c0_i32_1 = arith.constant 0 : i32
    return %c0_i32, %c0_i32_0 : i32, i32
  }
  func.func @transform_41(%arg0: i32) -> (i32, i32) {
    %c0_i32 = arith.constant 0 : i32
    %c0_i32_0 = arith.constant 0 : i32
    %c0_i32_1 = arith.constant 0 : i32
    return %c0_i32, %c0_i32_0 : i32, i32
  }
  func.func @transform_42(%arg0: i32) -> (i32, i32) {
    %c0_i32 = arith.constant 0 : i32
    %c0_i32_0 = arith.constant 0 : i32
    %c0_i32_1 = arith.constant 0 : i32
    return %c0_i32, %c0_i32_0 : i32, i32
  }
  func.func @transform_43(%arg0: i32) -> (i32, i32) {
    %c0_i32 = arith.constant 0 : i32
    %c0_i32_0 = arith.constant 0 : i32
    %c0_i32_1 = arith.constant 0 : i32
    return %c0_i32, %c0_i32_0 : i32, i32
  }
  func.func @transform_44(%arg0: i32) -> (i32, i32) {
    %c0_i32 = arith.constant 0 : i32
    %c0_i32_0 = arith.constant 0 : i32
    %c0_i32_1 = arith.constant 0 : i32
    return %c0_i32, %c0_i32_0 : i32, i32
  }
  func.func @transform_45(%arg0: i32) -> (i32, i32) {
    %c0_i32 = arith.constant 0 : i32
    %c0_i32_0 = arith.constant 0 : i32
    %c0_i32_1 = arith.constant 0 : i32
    return %c0_i32, %c0_i32_0 : i32, i32
  }
  func.func @transform_46(%arg0: i32) -> (i32, i32) {
    %c0_i32 = arith.constant 0 : i32
    %c0_i32_0 = arith.constant 0 : i32
    %c0_i32_1 = arith.constant 0 : i32
    return %c0_i32, %c0_i32_0 : i32, i32
  }
  func.func @transform_47(%arg0: i32) -> (i32, i32) {
    %c0_i32 = arith.constant 0 : i32
    %c0_i32_0 = arith.constant 0 : i32
    %c0_i32_1 = arith.constant 0 : i32
    return %c0_i32, %c0_i32_0 : i32, i32
  }
  func.func @transform_48(%arg0: i32) -> (i32, i32) {
    %c0_i32 = arith.constant 0 : i32
    %c0_i32_0 = arith.constant 0 : i32
    %c0_i32_1 = arith.constant 0 : i32
    return %c0_i32, %c0_i32_0 : i32, i32
  }
  func.func @transform_49(%arg0: i32) -> (i32, i32) {
    %c0_i32 = arith.constant 0 : i32
    %c0_i32_0 = arith.constant 0 : i32
    %c0_i32_1 = arith.constant 0 : i32
    return %c0_i32, %c0_i32_0 : i32, i32
  }
  func.func @transform_50(%arg0: i32) -> (i32, i32) {
    %c0_i32 = arith.constant 0 : i32
    %c0_i32_0 = arith.constant 0 : i32
    %c0_i32_1 = arith.constant 0 : i32
    return %c0_i32, %c0_i32_0 : i32, i32
  }
  func.func @transform_51(%arg0: i32) -> (i32, i32) {
    %c0_i32 = arith.constant 0 : i32
    %c0_i32_0 = arith.constant 0 : i32
    %c0_i32_1 = arith.constant 0 : i32
    return %c0_i32, %c0_i32_0 : i32, i32
  }
  func.func @transform_52(%arg0: i32) -> (i32, i32) {
    %c0_i32 = arith.constant 0 : i32
    %c0_i32_0 = arith.constant 0 : i32
    %c0_i32_1 = arith.constant 0 : i32
    return %c0_i32, %c0_i32_0 : i32, i32
  }
  func.func @transform_53(%arg0: i32) -> (i32, i32) {
    %c0_i32 = arith.constant 0 : i32
    %c0_i32_0 = arith.constant 0 : i32
    %c0_i32_1 = arith.constant 0 : i32
    return %c0_i32, %c0_i32_0 : i32, i32
  }
  func.func @transform_54(%arg0: i32) -> (i32, i32) {
    %c0_i32 = arith.constant 0 : i32
    %c0_i32_0 = arith.constant 0 : i32
    %c0_i32_1 = arith.constant 0 : i32
    return %c0_i32, %c0_i32_0 : i32, i32
  }
  func.func @transform_55(%arg0: i32) -> (i32, i32) {
    %c0_i32 = arith.constant 0 : i32
    %c0_i32_0 = arith.constant 0 : i32
    %c0_i32_1 = arith.constant 0 : i32
    return %c0_i32, %c0_i32_0 : i32, i32
  }
  func.func @transform_56(%arg0: i32) -> (i32, i32) {
    %c0_i32 = arith.constant 0 : i32
    %c0_i32_0 = arith.constant 0 : i32
    %c0_i32_1 = arith.constant 0 : i32
    return %c0_i32, %c0_i32_0 : i32, i32
  }
  func.func @transform_57(%arg0: i32) -> (i32, i32) {
    %c0_i32 = arith.constant 0 : i32
    %c0_i32_0 = arith.constant 0 : i32
    %c0_i32_1 = arith.constant 0 : i32
    return %c0_i32, %c0_i32_0 : i32, i32
  }
  func.func @transform_58(%arg0: i32) -> (i32, i32) {
    %c0_i32 = arith.constant 0 : i32
    %c0_i32_0 = arith.constant 0 : i32
    %c0_i32_1 = arith.constant 0 : i32
    return %c0_i32, %c0_i32_0 : i32, i32
  }
  func.func @transform_59(%arg0: i32) -> (i32, i32) {
    %c0_i32 = arith.constant 0 : i32
    %c0_i32_0 = arith.constant 0 : i32
    %c0_i32_1 = arith.constant 0 : i32
    return %c0_i32, %c0_i32_0 : i32, i32
  }
  func.func @transform_60(%arg0: i32) -> (i32, i32) {
    %c0_i32 = arith.constant 0 : i32
    %c0_i32_0 = arith.constant 0 : i32
    %c0_i32_1 = arith.constant 0 : i32
    return %c0_i32, %c0_i32_0 : i32, i32
  }
  func.func @transform_61(%arg0: i32) -> (i32, i32) {
    %c0_i32 = arith.constant 0 : i32
    %c0_i32_0 = arith.constant 0 : i32
    %c0_i32_1 = arith.constant 0 : i32
    return %c0_i32, %c0_i32_0 : i32, i32
  }
  func.func @transform_62(%arg0: i32) -> (i32, i32) {
    %c0_i32 = arith.constant 0 : i32
    %c0_i32_0 = arith.constant 0 : i32
    %c0_i32_1 = arith.constant 0 : i32
    return %c0_i32, %c0_i32_0 : i32, i32
  }
  func.func @transform_63(%arg0: i32) -> (i32, i32) {
    %c0_i32 = arith.constant 0 : i32
    %c0_i32_0 = arith.constant 0 : i32
    %c0_i32_1 = arith.constant 0 : i32
    return %c0_i32, %c0_i32_0 : i32, i32
  }
  func.func @transform_64(%arg0: i32) -> (i32, i32) {
    %c0_i32 = arith.constant 0 : i32
    %c0_i32_0 = arith.constant 0 : i32
    %c0_i32_1 = arith.constant 0 : i32
    return %c0_i32, %c0_i32_0 : i32, i32
  }
  func.func @transform_65(%arg0: i32) -> (i32, i32) {
    %c0_i32 = arith.constant 0 : i32
    %c0_i32_0 = arith.constant 0 : i32
    %c0_i32_1 = arith.constant 0 : i32
    return %c0_i32, %c0_i32_0 : i32, i32
  }
  func.func @transform_66(%arg0: i32) -> (i32, i32) {
    %c0_i32 = arith.constant 0 : i32
    %c0_i32_0 = arith.constant 0 : i32
    %c0_i32_1 = arith.constant 0 : i32
    return %c0_i32, %c0_i32_0 : i32, i32
  }
  func.func @transform_67(%arg0: i32) -> (i32, i32) {
    %c0_i32 = arith.constant 0 : i32
    %c0_i32_0 = arith.constant 0 : i32
    %c0_i32_1 = arith.constant 0 : i32
    return %c0_i32, %c0_i32_0 : i32, i32
  }
  func.func @transform_68(%arg0: i32) -> (i32, i32) {
    %c0_i32 = arith.constant 0 : i32
    %c0_i32_0 = arith.constant 0 : i32
    %c0_i32_1 = arith.constant 0 : i32
    return %c0_i32, %c0_i32_0 : i32, i32
  }
  func.func @transform_69(%arg0: i32) -> (i32, i32) {
    %c0_i32 = arith.constant 0 : i32
    %c0_i32_0 = arith.constant 0 : i32
    %c0_i32_1 = arith.constant 0 : i32
    return %c0_i32, %c0_i32_0 : i32, i32
  }
  func.func @transform_70(%arg0: i32) -> (i32, i32) {
    %c0_i32 = arith.constant 0 : i32
    %c0_i32_0 = arith.constant 0 : i32
    %c0_i32_1 = arith.constant 0 : i32
    return %c0_i32, %c0_i32_0 : i32, i32
  }
  func.func @transform_71(%arg0: i32) -> (i32, i32) {
    %c0_i32 = arith.constant 0 : i32
    %c0_i32_0 = arith.constant 0 : i32
    %c0_i32_1 = arith.constant 0 : i32
    return %c0_i32, %c0_i32_0 : i32, i32
  }
  func.func @transform_72(%arg0: i32) -> (i32, i32) {
    %c0_i32 = arith.constant 0 : i32
    %c0_i32_0 = arith.constant 0 : i32
    %c0_i32_1 = arith.constant 0 : i32
    return %c0_i32, %c0_i32_0 : i32, i32
  }
  func.func @transform_73(%arg0: i32) -> (i32, i32) {
    %c0_i32 = arith.constant 0 : i32
    %c0_i32_0 = arith.constant 0 : i32
    %c0_i32_1 = arith.constant 0 : i32
    return %c0_i32, %c0_i32_0 : i32, i32
  }
  func.func @transform_74(%arg0: i32) -> (i32, i32) {
    %c0_i32 = arith.constant 0 : i32
    %c0_i32_0 = arith.constant 0 : i32
    %c0_i32_1 = arith.constant 0 : i32
    return %c0_i32, %c0_i32_0 : i32, i32
  }
  func.func @transform_75(%arg0: i32) -> (i32, i32) {
    %c0_i32 = arith.constant 0 : i32
    %c0_i32_0 = arith.constant 0 : i32
    %c0_i32_1 = arith.constant 0 : i32
    return %c0_i32, %c0_i32_0 : i32, i32
  }
  func.func @transform_76(%arg0: i32) -> (i32, i32) {
    %c0_i32 = arith.constant 0 : i32
    %c0_i32_0 = arith.constant 0 : i32
    %c0_i32_1 = arith.constant 0 : i32
    return %c0_i32, %c0_i32_0 : i32, i32
  }
  func.func @transform_77(%arg0: i32) -> (i32, i32) {
    %c0_i32 = arith.constant 0 : i32
    %c0_i32_0 = arith.constant 0 : i32
    %c0_i32_1 = arith.constant 0 : i32
    return %c0_i32, %c0_i32_0 : i32, i32
  }
  func.func @transform_78(%arg0: i32) -> (i32, i32) {
    %c0_i32 = arith.constant 0 : i32
    %c0_i32_0 = arith.constant 0 : i32
    %c0_i32_1 = arith.constant 0 : i32
    return %c0_i32, %c0_i32_0 : i32, i32
  }
  func.func @transform_79(%arg0: i32) -> (i32, i32) {
    %c0_i32 = arith.constant 0 : i32
    %c0_i32_0 = arith.constant 0 : i32
    %c0_i32_1 = arith.constant 0 : i32
    return %c0_i32, %c0_i32_0 : i32, i32
  }
  func.func @transform_80(%arg0: i32) -> (i32, i32) {
    %c0_i32 = arith.constant 0 : i32
    %c0_i32_0 = arith.constant 0 : i32
    %c0_i32_1 = arith.constant 0 : i32
    return %c0_i32, %c0_i32_0 : i32, i32
  }
  func.func @transform_81(%arg0: i32) -> (i32, i32) {
    %c0_i32 = arith.constant 0 : i32
    %c0_i32_0 = arith.constant 0 : i32
    %c0_i32_1 = arith.constant 0 : i32
    return %c0_i32, %c0_i32_0 : i32, i32
  }
  func.func @transform_82(%arg0: i32) -> (i32, i32) {
    %c0_i32 = arith.constant 0 : i32
    %c0_i32_0 = arith.constant 0 : i32
    %c0_i32_1 = arith.constant 0 : i32
    return %c0_i32, %c0_i32_0 : i32, i32
  }
  func.func @transform_83(%arg0: i32) -> (i32, i32) {
    %c0_i32 = arith.constant 0 : i32
    %c0_i32_0 = arith.constant 0 : i32
    %c0_i32_1 = arith.constant 0 : i32
    return %c0_i32, %c0_i32_0 : i32, i32
  }
}

</mosaic_0001>

<bundles_post_ra>
// kernel: informer_forward.1
= control target key start
LH: loop header
LB: loop body
LE: loop exit
PB: predicated region body
PF: predicated region fallthrough
CT: control target
= control target key end

     0   :  { %s4724_s6 = smov 1   ;;  %s4725_s10 = smov 2   ;;  %s6042_s0 = inlined_call_operand.smem [shape: u32[84], index: -1, kind: input, shape index: {}] }
   0x1   :  { %s4858_s5 = sld [smem:[%s6042_s0]]   ;;  %s4726_s14 = smov 3  }
   0x2   :  { %s4863_s9 = sld [smem:[%s6042_s0 + %s4724_s6]]   ;;  %s4727_s18 = smov 4  }
   0x3   :  { %s4868_s13 = sld [smem:[%s6042_s0 + %s4725_s10]]   ;;  %s4728_s22 = smov 5  }
   0x4   :  { %s4873_s17 = sld [smem:[%s6042_s0 + %s4726_s14]]   ;;  %s4729_s26 = smov 6  }
   0x5   :  { %s4878_s21 = sld [smem:[%s6042_s0 + %s4727_s18]]   ;;  %s4730_s30 = smov 7  }
   0x6   :  { %s4883_s25 = sld [smem:[%s6042_s0 + %s4728_s22]]   ;;  %s4731_s4 = smov 8  }
   0x7   :  { %6100 = sst [smem:[#allocation84_spill]] %s4858_s5  ;;  %s4732_s10 = smov 9  }
   0x8   :  { %6101 = sst [smem:[#allocation85_spill]] %s4863_s9  ;;  %s4733_s15 = smov 10  }
   0x9   :  { %6102 = sst [smem:[#allocation86_spill]] %s4868_s13  ;;  %s4734_s20 = smov 11  }
   0xa   :  { %6103 = sst [smem:[#allocation87_spill]] %s4873_s17  ;;  %s4736_s1 = smov 13  }
   0xb   :  { %6104 = sst [smem:[#allocation88_spill]] %s4878_s21  ;;  %s4737_s7 = smov 14  }
   0xc   :  { %6105 = sst [smem:[#allocation89_spill]] %s4883_s25  ;;  %s4739_s22 = smov 16  }
   0xd   :  { %s4888_s29 = sld [smem:[%s6042_s0 + %s4729_s26]]   ;;  %s4735_s26 = smov 12  }
   0xe   :  { %s4893_s3 = sld [smem:[%s6042_s0 + %s4730_s30]]   ;;  %s4740_s28 = smov 17  }
   0xf   :  { %s4898_s8 = sld [smem:[%s6042_s0 + %s4731_s4]]  }
  0x10   :  { %s4903_s14 = sld [smem:[%s6042_s0 + %s4732_s10]]  }
  0x11   :  { %s4908_s19 = sld [smem:[%s6042_s0 + %s4733_s15]]   ;;  %s4738_s15 = smov 15  }
  0x12   :  { %s4913_s24 = sld [smem:[%s6042_s0 + %s4734_s20]]  }
  0x13   :  { %6106 = sst [smem:[#allocation90_spill]] %s4888_s29 }
  0x14   :  { %6107 = sst [smem:[#allocation91_spill]] %s4893_s3 }
  0x15   :  { %s4918_s30 = sld [smem:[%s6042_s0 + %s4735_s26]]  }
  0x16   :  { %6108 = sst [smem:[#allocation92_spill]] %s4903_s14 }
  0x17   :  { %s4923_s6 = sld [smem:[%s6042_s0 + %s4736_s1]]  }
  0x18   :  { %6109 = sst [smem:[#allocation93_spill]] %s4913_s24 }
  0x19   :  { %s4928_s12 = sld [smem:[%s6042_s0 + %s4737_s7]]   ;;  %s4741_s7 = smov 18  }
  0x1a   :  { %s4933_s20 = sld [smem:[%s6042_s0 + %s4738_s15]]   ;;  %s4742_s15 = smov 19  }
  0x1b   :  { %6110 = sst [smem:[#allocation94_spill]] %s4918_s30 }
  0x1c   :  { %s4938_s27 = sld [smem:[%s6042_s0 + %s4739_s22]]   ;;  %s4743_s22 = smov 20  }
  0x1d   :  { %6111 = sst [smem:[#allocation95_spill]] %s4923_s6 }
  0x1e   :  { %s4943_s4 = sld [smem:[%s6042_s0 + %s4740_s28]]   ;;  %s4744_s28 = smov 21  }
  0x1f   :  { %6112 = sst [smem:[#allocation96_spill]] %s4928_s12 }
  0x20   :  { %6113 = sst [smem:[#allocation97_spill]] %s4933_s20 }
  0x21   :  { %s4948_s12 = sld [smem:[%s6042_s0 + %s4741_s7]]   ;;  %s4745_s7 = smov 22  }
  0x22   :  { %6114 = sst [smem:[#allocation98_spill]] %s4938_s27 }
  0x23   :  { %s4953_s30 = sld [smem:[%s6042_s0 + %s4742_s15]]   ;;  %s4746_s15 = smov 23  }
  0x24   :  { %6115 = sst [smem:[#allocation99_spill]] %s4943_s4 }
  0x25   :  { %s4958_s25 = sld [smem:[%s6042_s0 + %s4743_s22]]   ;;  %s4747_s22 = smov 24  }
  0x26   :  { %s4963_s4 = sld [smem:[%s6042_s0 + %s4744_s28]]   ;;  %s4748_s28 = smov 25  }
  0x27   :  { %6116 = sst [smem:[#allocation100_spill]] %s4948_s12 }
  0x28   :  { %s4968_s12 = sld [smem:[%s6042_s0 + %s4745_s7]]   ;;  %s4749_s7 = smov 26  }
  0x29   :  { %6117 = sst [smem:[#allocation101_spill]] %s4953_s30 }
  0x2a   :  { %s4973_s30 = sld [smem:[%s6042_s0 + %s4746_s15]]   ;;  %s4750_s15 = smov 27  }
  0x2b   :  { %6118 = sst [smem:[#allocation102_spill]] %s4958_s25 }
  0x2c   :  { %6119 = sst [smem:[#allocation103_spill]] %s4963_s4 }
  0x2d   :  { %s4978_s25 = sld [smem:[%s6042_s0 + %s4747_s22]]   ;;  %s4751_s22 = smov 28  }
  0x2e   :  { %6120 = sst [smem:[#allocation104_spill]] %s4968_s12 }
  0x2f   :  { %s4983_s4 = sld [smem:[%s6042_s0 + %s4748_s28]]   ;;  %s4752_s28 = smov 29  }
  0x30   :  { %6121 = sst [smem:[#allocation105_spill]] %s4973_s30 }
  0x31   :  { %s4988_s12 = sld [smem:[%s6042_s0 + %s4749_s7]]   ;;  %s4753_s7 = smov 30  }
  0x32   :  { %s4993_s30 = sld [smem:[%s6042_s0 + %s4750_s15]]   ;;  %s4754_s15 = smov 31  }
  0x33   :  { %6122 = sst [smem:[#allocation106_spill]] %s4978_s25 }
  0x34   :  { %s4998_s25 = sld [smem:[%s6042_s0 + %s4751_s22]]   ;;  %s4755_s22 = smov 32  }
  0x35   :  { %6123 = sst [smem:[#allocation107_spill]] %s4983_s4 }
  0x36   :  { %s5003_s4 = sld [smem:[%s6042_s0 + %s4752_s28]]   ;;  %s4756_s28 = smov 33  }
  0x37   :  { %6124 = sst [smem:[#allocation108_spill]] %s4988_s12 }
  0x38   :  { %6125 = sst [smem:[#allocation109_spill]] %s4993_s30 }
  0x39   :  { %s5008_s12 = sld [smem:[%s6042_s0 + %s4753_s7]]   ;;  %s4757_s7 = smov 34  }
  0x3a   :  { %s5013_s30 = sld [smem:[%s6042_s0 + %s4754_s15]]   ;;  %s4758_s15 = smov 35  }
  0x3b   :  { %s5018_s17 = sld [smem:[%s6042_s0 + %s4755_s22]]   ;;  %s4759_s22 = smov 36  }
  0x3c   :  { %6126 = sst [smem:[#allocation110_spill]] %s5003_s4 }
  0x3d   :  { %s5023_s27 = sld [smem:[%s6042_s0 + %s4756_s28]]   ;;  %s4760_s28 = smov 37  }
  0x3e   :  { %s5028_s9 = sld [smem:[%s6042_s0 + %s4757_s7]]   ;;  %s4761_s7 = smov 38  }
  0x3f   :  { %s5033_s6 = sld [smem:[%s6042_s0 + %s4758_s15]]   ;;  %s4762_s15 = smov 39  }
  0x40   :  { %6127 = sst [smem:[#allocation111_spill]] %s5013_s30 }
  0x41   :  { %s5038_s24 = sld [smem:[%s6042_s0 + %s4759_s22]]   ;;  %s4763_s22 = smov 40  }
  0x42   :  { %s5043_s21 = sld [smem:[%s6042_s0 + %s4760_s28]]   ;;  %s4764_s28 = smov 41  }
  0x43   :  { %6128 = sst [smem:[#allocation112_spill]] %s5023_s27 }
  0x44   :  { %s5048_s13 = sld [smem:[%s6042_s0 + %s4761_s7]]   ;;  %s4765_s7 = smov 42  }
  0x45   :  { %6129 = sst [smem:[#allocation113_spill]] %s5033_s6 }
  0x46   :  { %s5053_s29 = sld [smem:[%s6042_s0 + %s4762_s15]]   ;;  %s4766_s15 = smov 43  }
  0x47   :  { %s5058_s5 = sld [smem:[%s6042_s0 + %s4763_s22]]   ;;  %s4767_s22 = smov 44  }
  0x48   :  { %6130 = sst [smem:[#allocation114_spill]] %s5043_s21 }
  0x49   :  { %s5063_s21 = sld [smem:[%s6042_s0 + %s4764_s28]]   ;;  %s4768_s28 = smov 45  }
  0x4a   :  { %6131 = sst [smem:[#allocation115_spill]] %s5048_s13 }
  0x4b   :  { %s5068_s13 = sld [smem:[%s6042_s0 + %s4765_s7]]   ;;  %s4769_s7 = smov 46  }
  0x4c   :  { %6132 = sst [smem:[#allocation116_spill]] %s5053_s29 }
  0x4d   :  { %6133 = sst [smem:[#allocation117_spill]] %s5058_s5 }
  0x4e   :  { %s5073_s29 = sld [smem:[%s6042_s0 + %s4766_s15]]   ;;  %s4770_s15 = smov 47  }
  0x4f   :  { %6134 = sst [smem:[#allocation118_spill]] %s5063_s21 }
  0x50   :  { %s5078_s5 = sld [smem:[%s6042_s0 + %s4767_s22]]   ;;  %s4771_s22 = smov 48  }
  0x51   :  { %6135 = sst [smem:[#allocation119_spill]] %s5068_s13 }
  0x52   :  { %s5083_s21 = sld [smem:[%s6042_s0 + %s4768_s28]]   ;;  %s4772_s28 = smov 49  }
  0x53   :  { %s5088_s13 = sld [smem:[%s6042_s0 + %s4769_s7]]   ;;  %s4773_s7 = smov 50  }
  0x54   :  { %6136 = sst [smem:[#allocation120_spill]] %s5073_s29 }
  0x55   :  { %s5093_s29 = sld [smem:[%s6042_s0 + %s4770_s15]]   ;;  %s4774_s15 = smov 51  }
  0x56   :  { %s5098_s6 = sld [smem:[%s6042_s0 + %s4771_s22]]   ;;  %s4775_s22 = smov 52  }
  0x57   :  { %s5113_s27 = sld [smem:[%s6042_s0 + %s4774_s15]]   ;;  %s4778_s15 = smov 55  }
  0x58   :  { %6137 = sst [smem:[#allocation121_spill]] %s5083_s21 }
  0x59   :  { %6138 = sst [smem:[#allocation122_spill]] %s5088_s13 }
  0x5a   :  { %s5103_s21 = sld [smem:[%s6042_s0 + %s4772_s28]]   ;;  %s4776_s28 = smov 53  }
  0x5b   :  { %s5108_s13 = sld [smem:[%s6042_s0 + %s4773_s7]]   ;;  %s4777_s7 = smov 54  }
  0x5c   :  { %6139 = sst [smem:[#allocation123_spill]] %s5098_s6 }
  0x5d   :  { %6141 = sst [smem:[#allocation125_spill]] %s5113_s27 }
  0x5e   :  { %s5118_s6 = sld [smem:[%s6042_s0 + %s4775_s22]]   ;;  %s4779_s22 = smov 56  }
  0x5f   :  { %s5123_s30 = sld [smem:[%s6042_s0 + %s4776_s28]]   ;;  %s4780_s28 = smov 57  }
  0x60   :  { %s5133_s27 = sld [smem:[%s6042_s0 + %s4778_s15]]   ;;  %s4782_s15 = smov 59  }
  0x61   :  { %6140 = sst [smem:[#allocation124_spill]] %s5108_s13 }
  0x62   :  { %s5128_s13 = sld [smem:[%s6042_s0 + %s4777_s7]]   ;;  %s4781_s7 = smov 58  }
  0x63   :  { %s5153_s4 = sld [smem:[%s6042_s0 + %s4782_s15]]   ;;  %s4786_s15 = smov 63  }
  0x64   :  { %6142 = sst [smem:[#allocation126_spill]] %s5118_s6 }
  0x65   :  { %6143 = sst [smem:[#allocation127_spill]] %s5123_s30 }
  0x66   :  { %s5138_s6 = sld [smem:[%s6042_s0 + %s4779_s22]]   ;;  %s4783_s22 = smov 60  }
  0x67   :  { %s5143_s30 = sld [smem:[%s6042_s0 + %s4780_s28]]   ;;  %s4784_s28 = smov 61  }
  0x68   :  { %6144 = sst [smem:[#allocation128_spill]] %s5128_s13 }
  0x69   :  { %s5148_s13 = sld [smem:[%s6042_s0 + %s4781_s7]]   ;;  %s4785_s7 = smov 62  }
  0x6a   :  { %s5163_s20 = sld [smem:[%s6042_s0 + %s4784_s28]]   ;;  %s4788_s28 = smov 65  }
  0x6b   :  { %s5173_s14 = sld [smem:[%s6042_s0 + %s4786_s15]]   ;;  %s4790_s15 = smov 67  }
  0x6c   :  { %6145 = sst [smem:[#allocation129_spill]] %s5138_s6 }
  0x6d   :  { %s5158_s6 = sld [smem:[%s6042_s0 + %s4783_s22]]   ;;  %s4787_s22 = smov 64  }
  0x6e   :  { %s5193_s3 = sld [smem:[%s6042_s0 + %s4790_s15]]   ;;  %s4794_s15 = smov 71  }
  0x6f   :  { %6146 = sst [smem:[#allocation130_spill]] %s5148_s13 }
  0x70   :  { %6148 = sst [smem:[#allocation132_spill]] %s5163_s20 }
  0x71   :  { %s5168_s13 = sld [smem:[%s6042_s0 + %s4785_s7]]   ;;  %s4789_s7 = smov 66  }
  0x72   :  { %s5183_s20 = sld [smem:[%s6042_s0 + %s4788_s28]]   ;;  %s4792_s28 = smov 69  }
  0x73   :  { %6147 = sst [smem:[#allocation131_spill]] %s5158_s6 }
  0x74   :  { %s5178_s6 = sld [smem:[%s6042_s0 + %s4787_s22]]   ;;  %s4791_s22 = smov 68  }
  0x75   :  { %6153 = sst [smem:[#allocation137_spill]] %s5193_s3 }
  0x76   :  { %s5213_s3 = sld [smem:[%s6042_s0 + %s4794_s15]]   ;;  %s4798_s15 = smov 75  }
  0x77   :  { %6149 = sst [smem:[#allocation133_spill]] %s5168_s13 }
  0x78   :  { %6151 = sst [smem:[#allocation135_spill]] %s5183_s20 }
  0x79   :  { %s5188_s13 = sld [smem:[%s6042_s0 + %s4789_s7]]   ;;  %s4793_s7 = smov 70  }
  0x7a   :  { %6150 = sst [smem:[#allocation134_spill]] %s5178_s6 }
  0x7b   :  { %s5198_s6 = sld [smem:[%s6042_s0 + %s4791_s22]]   ;;  %s4795_s22 = smov 72  }
  0x7c   :  { %s5203_s20 = sld [smem:[%s6042_s0 + %s4792_s28]]   ;;  %s4796_s28 = smov 73  }
  0x7d   :  { %6157 = sst [smem:[#allocation141_spill]] %s5213_s3 }
  0x7e   :  { %s5233_s3 = sld [smem:[%s6042_s0 + %s4798_s15]]   ;;  %s4802_s15 = smov 79  }
  0x7f   :  { %6152 = sst [smem:[#allocation136_spill]] %s5188_s13 }
  0x80   :  { %s5208_s13 = sld [smem:[%s6042_s0 + %s4793_s7]]   ;;  %s4797_s7 = smov 74  }
  0x81   :  { %6154 = sst [smem:[#allocation138_spill]] %s5198_s6 }
  0x82   :  { %6155 = sst [smem:[#allocation139_spill]] %s5203_s20 }
  0x83   :  { %s5218_s6 = sld [smem:[%s6042_s0 + %s4795_s22]]   ;;  %s4799_s22 = smov 76  }
  0x84   :  { %s5223_s20 = sld [smem:[%s6042_s0 + %s4796_s28]]   ;;  %s4800_s28 = smov 77  }
  0x85   :  { %6161 = sst [smem:[#allocation145_spill]] %s5233_s3 }
  0x86   :  { %6156 = sst [smem:[#allocation140_spill]] %s5208_s13 }
  0x87   :  { %s5228_s13 = sld [smem:[%s6042_s0 + %s4797_s7]]   ;;  %s4801_s7 = smov 78  }
  0x88   :  { %s5253_s3 = sld [smem:[%s6042_s0 + %s4802_s15]]   ;;  %s4806_s15 = smov 83  }
  0x89   :  { %6158 = sst [smem:[#allocation142_spill]] %s5218_s6 }
  0x8a   :  { %6159 = sst [smem:[#allocation143_spill]] %s5223_s20 }
  0x8b   :  { %s5238_s6 = sld [smem:[%s6042_s0 + %s4799_s22]]   ;;  %s4803_s22 = smov 80  }
  0x8c   :  { %s5243_s20 = sld [smem:[%s6042_s0 + %s4800_s28]]   ;;  %s4804_s28 = smov 81  }
  0x8d   :  { %6160 = sst [smem:[#allocation144_spill]] %s5228_s13 }
  0x8e   :  { %s5248_s13 = sld [smem:[%s6042_s0 + %s4801_s7]]   ;;  %s4805_s7 = smov 82  }
  0x8f   :  { %6165 = sst [smem:[#allocation149_spill]] %s5253_s3 }
  0x90   :  { %s5273_s3 = sld [smem:[%s6042_s0 + %s4806_s15]]  }
  0x91   :  { %6162 = sst [smem:[#allocation146_spill]] %s5238_s6 }
  0x92   :  { %6163 = sst [smem:[#allocation147_spill]] %s5243_s20 }
  0x93   :  { %s5258_s6 = sld [smem:[%s6042_s0 + %s4803_s22]]  }
  0x94   :  { %6164 = sst [smem:[#allocation148_spill]] %s5248_s13 }
  0x95   :  { %s5263_s20 = sld [smem:[%s6042_s0 + %s4804_s28]]  }
  0x96   :  { %s5268_s13 = sld [smem:[%s6042_s0 + %s4805_s7]]  }
  0x97   :  { %172 = vsyncpa [#allocation3], 0 }
  0x98   :  { %173 = vsyncpa [#allocation5], 0 }
  0x99   :  { %174 = vsyncpa [#allocation8], 0 }
  0x9a   :  { %175 = vsyncpa [#allocation11], 0 }
  0x9b   :  { %176 = vsyncpa [#allocation14], 0 }
  0x9c   :  { %177 = vsyncpa [#allocation17], 0 }
  0x9d   :  { %178 = vsyncpa [#allocation20], 0 }
  0x9e   :  { %179 = vsyncpa [#allocation23], 0 }
  0x9f   :  { %180 = vsyncpa [#allocation26], 0 }
  0xa0   :  { %181 = vsyncpa [#allocation29], 0 }
  0xa1   :  { %182 = vsyncpa [#allocation32], 0 }
  0xa2   :  { %183 = vsyncpa [#allocation35], 0 }
  0xa3   :  { %184 = vsyncpa [#allocation38], 0 }
  0xa4   :  { %185 = vsyncpa [#allocation41], 0 }
  0xa5   :  { %186 = vsyncpa [#allocation44], 0 }
  0xa6   :  { %187 = vsyncpa [#allocation47], 0 }
  0xa7   :  { %188 = vsyncpa [#allocation50], 0 }
  0xa8   :  { %189 = vsyncpa [#allocation53], 0 }
  0xa9   :  { %190 = vsyncpa [#allocation56], 0 }
  0xaa   :  { %191 = vsyncpa [#allocation59], 0 }
  0xab   :  { %192 = vsyncpa [#allocation62], 0  ;;  %s224_s0 = sshll.u32 %s4898_s8, 4  ;;  %s4807_s22 = smov [#allocation4]   ;;  %s225_s0 = int_to_ptr.hbm [resolvable:$true] %s224_s0 }
  0xac   :  { %s226_s23 = sshll.u32 %s4807_s22, 4  ;;  %s250_s26 = sshll.u32 %s4908_s19, 4  ;;  %s227_s23 = int_to_ptr.vmem [resolvable:$true] %s226_s23  ;;  %s251_s26 = int_to_ptr.hbm [resolvable:$true] %s250_s26 }
  0xad   :  { %s3722_s28 = sshra.s32 %s225_s0, 4  ;;  %s3726_s2 = scalar_lea.hbm %s4898_s8, 16  ;;  %s3723_s28 = int_to_ptr.hbm [resolvable:$true] %s3722_s28 }
  0xae   :  { %s3724_s1 = scalar_lea.hbm %s3723_s28, 16  ;;  %p3727_p1 = scmp.lt.s32.totalorder %s3723_s28, %s4898_s8 }
  0xaf   :  { %p3725_p0 = scmp.ne.s32.totalorder %s3723_s28, %s3724_s1  ;;  %p3728_p2 = scmp.lt.s32.totalorder %s3726_s2, %s3724_s1 }
  0xb1   :  { %p3729_p3 = por %p3728_p2, %p3727_p1 }
  0xb3   :  { %p3730_p4 = pnand %p3729_p3, %p3725_p0 }
  0xb5   :  { %3733 = shalt.err (!%p3730_p4)
}
  0xb6   :  { %s4808_s7 = smov 128   ;;  %s4809_s10 = smov 8  }
  0xb7   :  { %232 = dma.hbm_to_vmem [thread:$0]  %s225_s0, 256, %s227_s23, [#allocation5], %s4808_s7, %s4808_s7, %s4809_s10  }
  0xb8   :  { %s4810_s11 = smov [#allocation7]   ;;  %s309_s16 = sshll.u32 %s4998_s25, 4  ;;  %s310_s16 = int_to_ptr.hbm [resolvable:$true] %s309_s16 }
  0xb9   :  { %s252_s15 = sshll.u32 %s4810_s11, 4  ;;  %s3746_s8 = sshra.s32 %s251_s26, 4  ;;  %s253_s15 = int_to_ptr.vmem [resolvable:$true] %s252_s15  ;;  %s3747_s8 = int_to_ptr.hbm [resolvable:$true] %s3746_s8 }
  0xba   :  { %s3748_s18 = scalar_lea.hbm %s3747_s8, 16  ;;  %s3750_s22 = scalar_lea.hbm %s4908_s19, 16 }
  0xbb   :  { %p3749_p5 = scmp.ne.s32.totalorder %s3747_s8, %s3748_s18  ;;  %p3751_p6 = scmp.lt.s32.totalorder %s3747_s8, %s4908_s19 }
  0xbc   :  { %p3752_p7 = scmp.lt.s32.totalorder %s3750_s22, %s3748_s18 }
  0xbe   :  { %p3753_p8 = por %p3752_p7, %p3751_p6 }
  0xc0   :  { %p3754_p9 = pnand %p3753_p8, %p3749_p5 }
  0xc2   :  { %3757 = shalt.err (!%p3754_p9)
}
  0xc3   :  { %258 = dma.hbm_to_vmem [thread:$0]  %s251_s26, 256, %s253_s15, [#allocation8], %s4808_s7, %s4808_s7, %s4809_s10  }
  0xc4   :  { %s331_s0 = sshll.u32 %s5008_s12, 4  ;;  %s4811_s23 = smov [#allocation10]   ;;  %s332_s0 = int_to_ptr.hbm [resolvable:$true] %s331_s0 }
  0xc5   :  { %s311_s28 = sshll.u32 %s4811_s23, 4  ;;  %s3770_s1 = sshra.s32 %s310_s16, 4  ;;  %s312_s28 = int_to_ptr.vmem [resolvable:$true] %s311_s28  ;;  %s3771_s1 = int_to_ptr.hbm [resolvable:$true] %s3770_s1 }
  0xc6   :  { %s3772_s2 = scalar_lea.hbm %s3771_s1, 1  ;;  %s3774_s19 = scalar_lea.hbm %s4998_s25, 1 }
  0xc7   :  { %p3773_p10 = scmp.ne.s32.totalorder %s3771_s1, %s3772_s2  ;;  %p3775_p11 = scmp.lt.s32.totalorder %s3771_s1, %s4998_s25 }
  0xc8   :  { %p3776_p12 = scmp.lt.s32.totalorder %s3774_s19, %s3772_s2 }
  0xca   :  { %p3777_p13 = por %p3776_p12, %p3775_p11 }
  0xcc   :  { %p3778_p0 = pnand %p3777_p13, %p3773_p10 }
  0xce   :  { %3781 = shalt.err (!%p3778_p0)
}
  0xcf   :  { %314 = dma.hbm_to_vmem [thread:$0]  %s310_s16, 16, %s312_s28, [#allocation11]  }
  0xd0   :  { %s4812_s26 = smov [#allocation13]   ;;  %s353_s15 = sshll.u32 %s5018_s17, 4  ;;  %s354_s15 = int_to_ptr.hbm [resolvable:$true] %s353_s15 }
  0xd1   :  { %s333_s11 = sshll.u32 %s4812_s26, 4  ;;  %s3794_s8 = sshra.s32 %s332_s0, 4  ;;  %s334_s11 = int_to_ptr.vmem [resolvable:$true] %s333_s11  ;;  %s3795_s8 = int_to_ptr.hbm [resolvable:$true] %s3794_s8 }
  0xd2   :  { %s3796_s18 = scalar_lea.hbm %s3795_s8, 1  ;;  %s3798_s22 = scalar_lea.hbm %s5008_s12, 1 }
  0xd3   :  { %p3797_p1 = scmp.ne.s32.totalorder %s3795_s8, %s3796_s18  ;;  %p3799_p2 = scmp.lt.s32.totalorder %s3795_s8, %s5008_s12 }
  0xd4   :  { %p3800_p3 = scmp.lt.s32.totalorder %s3798_s22, %s3796_s18 }
  0xd6   :  { %p3801_p4 = por %p3800_p3, %p3799_p2 }
  0xd8   :  { %p3802_p5 = pnand %p3801_p4, %p3797_p1 }
  0xda   :  { %3805 = shalt.err (!%p3802_p5)
}
  0xdb   :  { %336 = dma.hbm_to_vmem [thread:$0]  %s332_s0, 16, %s334_s11, [#allocation14]  }
  0xdc   :  { %s375_s25 = sshll.u32 %s5028_s9, 4  ;;  %s4813_s16 = smov [#allocation16]   ;;  %s376_s25 = int_to_ptr.hbm [resolvable:$true] %s375_s25 }
  0xdd   :  { %s355_s23 = sshll.u32 %s4813_s16, 4  ;;  %s3818_s28 = sshra.s32 %s354_s15, 4  ;;  %s356_s23 = int_to_ptr.vmem [resolvable:$true] %s355_s23  ;;  %s3819_s28 = int_to_ptr.hbm [resolvable:$true] %s3818_s28 }
  0xde   :  { %s3820_s1 = scalar_lea.hbm %s3819_s28, 1  ;;  %s3822_s2 = scalar_lea.hbm %s5018_s17, 1 }
  0xdf   :  { %p3821_p6 = scmp.ne.s32.totalorder %s3819_s28, %s3820_s1  ;;  %p3823_p7 = scmp.lt.s32.totalorder %s3819_s28, %s5018_s17 }
  0xe0   :  { %p3824_p8 = scmp.lt.s32.totalorder %s3822_s2, %s3820_s1 }
  0xe2   :  { %p3825_p9 = por %p3824_p8, %p3823_p7 }
  0xe4   :  { %p3826_p10 = pnand %p3825_p9, %p3821_p6 }
  0xe6   :  { %3829 = shalt.err (!%p3826_p10)
}
  0xe7   :  { %358 = dma.hbm_to_vmem [thread:$0]  %s354_s15, 16, %s356_s23, [#allocation17]  }
  0xe8   :  { %s4814_s12 = smov [#allocation19]   ;;  %s397_s19 = sshll.u32 %s5038_s24, 4  ;;  %s398_s19 = int_to_ptr.hbm [resolvable:$true] %s397_s19 }
  0xe9   :  { %s377_s0 = sshll.u32 %s4814_s12, 4  ;;  %s3842_s26 = sshra.s32 %s376_s25, 4  ;;  %s378_s0 = int_to_ptr.vmem [resolvable:$true] %s377_s0  ;;  %s3843_s26 = int_to_ptr.hbm [resolvable:$true] %s3842_s26 }
  0xea   :  { %s3844_s11 = scalar_lea.hbm %s3843_s26, 1  ;;  %s3846_s8 = scalar_lea.hbm %s5028_s9, 1 }
  0xeb   :  { %p3845_p11 = scmp.ne.s32.totalorder %s3843_s26, %s3844_s11  ;;  %p3847_p12 = scmp.lt.s32.totalorder %s3843_s26, %s5028_s9 }
  0xec   :  { %p3848_p13 = scmp.lt.s32.totalorder %s3846_s8, %s3844_s11 }
  0xee   :  { %p3849_p0 = por %p3848_p13, %p3847_p12 }
  0xf0   :  { %p3850_p1 = pnand %p3849_p0, %p3845_p11 }
  0xf2   :  { %3853 = shalt.err (!%p3850_p1)
}
  0xf3   :  { %380 = dma.hbm_to_vmem [thread:$0]  %s376_s25, 16, %s378_s0, [#allocation20]  }
  0xf4   :  { %s431_s17 = sshll.u32 %s5078_s5, 4  ;;  %s4815_s15 = smov [#allocation22]   ;;  %s432_s17 = int_to_ptr.hbm [resolvable:$true] %s431_s17 }
  0xf5   :  { %s399_s18 = sshll.u32 %s4815_s15, 4  ;;  %s3866_s22 = sshra.s32 %s398_s19, 4  ;;  %s400_s18 = int_to_ptr.vmem [resolvable:$true] %s399_s18  ;;  %s3867_s22 = int_to_ptr.hbm [resolvable:$true] %s3866_s22 }
  0xf6   :  { %s3868_s16 = scalar_lea.hbm %s3867_s22, 1  ;;  %s3870_s23 = scalar_lea.hbm %s5038_s24, 1 }
  0xf7   :  { %p3869_p2 = scmp.ne.s32.totalorder %s3867_s22, %s3868_s16  ;;  %p3871_p3 = scmp.lt.s32.totalorder %s3867_s22, %s5038_s24 }
  0xf8   :  { %p3872_p4 = scmp.lt.s32.totalorder %s3870_s23, %s3868_s16 }
  0xfa   :  { %p3873_p5 = por %p3872_p4, %p3871_p3 }
  0xfc   :  { %p3874_p6 = pnand %p3873_p5, %p3869_p2 }
  0xfe   :  { %3877 = shalt.err (!%p3874_p6)
}
  0xff   :  { %402 = dma.hbm_to_vmem [thread:$0]  %s398_s19, 16, %s400_s18, [#allocation23]  }
 0x100   :  { %s4816_s9 = smov [#allocation25]   ;;  %s457_s28 = sshll.u32 %s5093_s29, 4  ;;  %s458_s28 = int_to_ptr.hbm [resolvable:$true] %s457_s28 }
 0x101   :  { %s433_s25 = sshll.u32 %s4816_s9, 4  ;;  %s3890_s1 = sshra.s32 %s432_s17, 4  ;;  %s434_s25 = int_to_ptr.vmem [resolvable:$true] %s433_s25  ;;  %s3891_s1 = int_to_ptr.hbm [resolvable:$true] %s3890_s1 }
 0x102   :  { %s3892_s2 = scalar_lea.hbm %s3891_s1, 1  ;;  %s3894_s12 = scalar_lea.hbm %s5078_s5, 1 }
 0x103   :  { %p3893_p7 = scmp.ne.s32.totalorder %s3891_s1, %s3892_s2  ;;  %p3895_p8 = scmp.lt.s32.totalorder %s3891_s1, %s5078_s5 }
 0x104   :  { %p3896_p9 = scmp.lt.s32.totalorder %s3894_s12, %s3892_s2 }
 0x106   :  { %p3897_p10 = por %p3896_p9, %p3895_p8 }
 0x108   :  { %p3898_p11 = pnand %p3897_p10, %p3893_p7 }
 0x10a   :  { %3901 = shalt.err (!%p3898_p11)
}
 0x10b   :  { %436 = dma.hbm_to_vmem [thread:$0]  %s432_s17, 16, %s434_s25, [#allocation26]  }
 0x10c   :  { %s479_s24 = sshll.u32 %s5103_s21, 4  ;;  %s4817_s0 = smov [#allocation28]   ;;  %s480_s24 = int_to_ptr.hbm [resolvable:$true] %s479_s24 }
 0x10d   :  { %s459_s19 = sshll.u32 %s4817_s0, 4  ;;  %s3914_s26 = sshra.s32 %s458_s28, 4  ;;  %s460_s19 = int_to_ptr.vmem [resolvable:$true] %s459_s19  ;;  %s3915_s26 = int_to_ptr.hbm [resolvable:$true] %s3914_s26 }
 0x10e   :  { %s3916_s11 = scalar_lea.hbm %s3915_s26, 1  ;;  %s3918_s8 = scalar_lea.hbm %s5093_s29, 1 }
 0x10f   :  { %p3917_p12 = scmp.ne.s32.totalorder %s3915_s26, %s3916_s11  ;;  %p3919_p13 = scmp.lt.s32.totalorder %s3915_s26, %s5093_s29 }
 0x110   :  { %p3920_p0 = scmp.lt.s32.totalorder %s3918_s8, %s3916_s11 }
 0x112   :  { %p3921_p1 = por %p3920_p0, %p3919_p13 }
 0x114   :  { %p3922_p2 = pnand %p3921_p1, %p3917_p12 }
 0x116   :  { %3925 = shalt.err (!%p3922_p2)
}
 0x117   :  { %462 = dma.hbm_to_vmem [thread:$0]  %s458_s28, 16, %s460_s19, [#allocation29]  }
 0x118   :  { %s4818_s5 = smov [#allocation31]   ;;  %s509_s15 = sshll.u32 %s5133_s27, 4  ;;  %s510_s15 = int_to_ptr.hbm [resolvable:$true] %s509_s15 }
 0x119   :  { %s481_s17 = sshll.u32 %s4818_s5, 4  ;;  %s3938_s18 = sshra.s32 %s480_s24, 4  ;;  %s482_s17 = int_to_ptr.vmem [resolvable:$true] %s481_s17  ;;  %s3939_s18 = int_to_ptr.hbm [resolvable:$true] %s3938_s18 }
 0x11a   :  { %s3940_s22 = scalar_lea.hbm %s3939_s18, 1  ;;  %s3942_s16 = scalar_lea.hbm %s5103_s21, 1 }
 0x11b   :  { %p3941_p3 = scmp.ne.s32.totalorder %s3939_s18, %s3940_s22  ;;  %p3943_p4 = scmp.lt.s32.totalorder %s3939_s18, %s5103_s21 }
 0x11c   :  { %p3944_p5 = scmp.lt.s32.totalorder %s3942_s16, %s3940_s22 }
 0x11e   :  { %p3945_p6 = por %p3944_p5, %p3943_p4 }
 0x120   :  { %p3946_p7 = pnand %p3945_p6, %p3941_p3 }
 0x122   :  { %3949 = shalt.err (!%p3946_p7)
}
 0x123   :  { %484 = dma.hbm_to_vmem [thread:$0]  %s480_s24, 16, %s482_s17, [#allocation32]  }
 0x124   :  { %s531_s29 = sshll.u32 %s5143_s30, 4  ;;  %s4819_s23 = smov [#allocation34]   ;;  %s532_s29 = int_to_ptr.hbm [resolvable:$true] %s531_s29 }
 0x125   :  { %s511_s9 = sshll.u32 %s4819_s23, 4  ;;  %s3962_s25 = sshra.s32 %s510_s15, 4  ;;  %s512_s9 = int_to_ptr.vmem [resolvable:$true] %s511_s9  ;;  %s3963_s25 = int_to_ptr.hbm [resolvable:$true] %s3962_s25 }
 0x126   :  { %s3964_s28 = scalar_lea.hbm %s3963_s25, 1  ;;  %s3966_s1 = scalar_lea.hbm %s5133_s27, 1 }
 0x127   :  { %p3965_p8 = scmp.ne.s32.totalorder %s3963_s25, %s3964_s28  ;;  %p3967_p9 = scmp.lt.s32.totalorder %s3963_s25, %s5133_s27 }
 0x128   :  { %p3968_p10 = scmp.lt.s32.totalorder %s3966_s1, %s3964_s28 }
 0x12a   :  { %p3969_p11 = por %p3968_p10, %p3967_p9 }
 0x12c   :  { %p3970_p12 = pnand %p3969_p11, %p3965_p8 }
 0x12e   :  { %3973 = shalt.err (!%p3970_p12)
}
 0x12f   :  { %514 = dma.hbm_to_vmem [thread:$0]  %s510_s15, 16, %s512_s9, [#allocation35]  }
 0x130   :  { %s4820_s21 = smov [#allocation37]   ;;  %s553_s12 = sshll.u32 %s5153_s4, 4  ;;  %s554_s12 = int_to_ptr.hbm [resolvable:$true] %s553_s12 }
 0x131   :  { %s533_s2 = sshll.u32 %s4820_s21, 4  ;;  %s3986_s24 = sshra.s32 %s532_s29, 4  ;;  %s534_s2 = int_to_ptr.vmem [resolvable:$true] %s533_s2  ;;  %s3987_s24 = int_to_ptr.hbm [resolvable:$true] %s3986_s24 }
 0x132   :  { %s3988_s0 = scalar_lea.hbm %s3987_s24, 1  ;;  %s3990_s19 = scalar_lea.hbm %s5143_s30, 1 }
 0x133   :  { %p3989_p13 = scmp.ne.s32.totalorder %s3987_s24, %s3988_s0  ;;  %p3991_p0 = scmp.lt.s32.totalorder %s3987_s24, %s5143_s30 }
 0x134   :  { %p3992_p1 = scmp.lt.s32.totalorder %s3990_s19, %s3988_s0 }
 0x136   :  { %p3993_p2 = por %p3992_p1, %p3991_p0 }
 0x138   :  { %p3994_p3 = pnand %p3993_p2, %p3989_p13 }
 0x13a   :  { %3997 = shalt.err (!%p3994_p3)
}
 0x13b   :  { %536 = dma.hbm_to_vmem [thread:$0]  %s532_s29, 16, %s534_s2, [#allocation38]  }
 0x13c   :  { %s579_s27 = sshll.u32 %s5173_s14, 4  ;;  %s4821_s26 = smov [#allocation40]   ;;  %s580_s27 = int_to_ptr.hbm [resolvable:$true] %s579_s27 }
 0x13d   :  { %s555_s11 = sshll.u32 %s4821_s26, 4  ;;  %s4010_s8 = sshra.s32 %s554_s12, 4  ;;  %s556_s11 = int_to_ptr.vmem [resolvable:$true] %s555_s11  ;;  %s4011_s8 = int_to_ptr.hbm [resolvable:$true] %s4010_s8 }
 0x13e   :  { %s4012_s5 = scalar_lea.hbm %s4011_s8, 1  ;;  %s4014_s17 = scalar_lea.hbm %s5153_s4, 1 }
 0x13f   :  { %p4013_p4 = scmp.ne.s32.totalorder %s4011_s8, %s4012_s5  ;;  %p4015_p5 = scmp.lt.s32.totalorder %s4011_s8, %s5153_s4 }
 0x140   :  { %p4016_p6 = scmp.lt.s32.totalorder %s4014_s17, %s4012_s5 }
 0x142   :  { %p4017_p7 = por %p4016_p6, %p4015_p5 }
 0x144   :  { %p4018_p8 = pnand %p4017_p7, %p4013_p4 }
 0x146   :  { %4021 = shalt.err (!%p4018_p8)
}
 0x147   :  { %558 = dma.hbm_to_vmem [thread:$0]  %s554_s12, 16, %s556_s11, [#allocation41]  }
 0x148   :  { %s6166_s30 = sld [smem:[#allocation135_spill]]  ;;  %s4822_s15 = smov [#allocation43]  }
 0x149   :  { %s581_s18 = sshll.u32 %s4822_s15, 4  ;;  %s4034_s16 = sshra.s32 %s580_s27, 4  ;;  %s582_s18 = int_to_ptr.vmem [resolvable:$true] %s581_s18  ;;  %s4035_s16 = int_to_ptr.hbm [resolvable:$true] %s4034_s16 }
 0x14a   :  { %s4036_s29 = scalar_lea.hbm %s4035_s16, 1  ;;  %s4038_s23 = scalar_lea.hbm %s5173_s14, 1 }
 0x14b   :  { %p4037_p9 = scmp.ne.s32.totalorder %s4035_s16, %s4036_s29  ;;  %p4039_p10 = scmp.lt.s32.totalorder %s4035_s16, %s5173_s14 }
 0x14c   :  { %p4040_p11 = scmp.lt.s32.totalorder %s4038_s23, %s4036_s29 }
 0x14e   :  { %s601_s22 = sshll.u32 %s6166_s30, 4  ;;  %p4041_p12 = por %p4040_p11, %p4039_p10  ;;  %s602_s22 = int_to_ptr.hbm [resolvable:$true] %s601_s22 }
 0x150   :  { %p4042_p13 = pnand %p4041_p12, %p4037_p9 }
 0x152   :  { %4045 = shalt.err (!%p4042_p13)
}
 0x153   :  { %584 = dma.hbm_to_vmem [thread:$0]  %s580_s27, 16, %s582_s18, [#allocation44]  }
 0x154   :  { %s6167_s4 = sld [smem:[#allocation141_spill]]  ;;  %s4823_s25 = smov [#allocation46]  }
 0x155   :  { %s603_s28 = sshll.u32 %s4823_s25, 4  ;;  %s4058_s1 = sshra.s32 %s602_s22, 4  ;;  %s604_s28 = int_to_ptr.vmem [resolvable:$true] %s603_s28  ;;  %s4059_s1 = int_to_ptr.hbm [resolvable:$true] %s4058_s1 }
 0x156   :  { %s4060_s21 = scalar_lea.hbm %s4059_s1, 1  ;;  %s4062_s2 = scalar_lea.hbm %s6166_s30, 1 }
 0x157   :  { %p4061_p0 = scmp.ne.s32.totalorder %s4059_s1, %s4060_s21  ;;  %p4063_p1 = scmp.lt.s32.totalorder %s4059_s1, %s6166_s30 }
 0x158   :  { %p4064_p2 = scmp.lt.s32.totalorder %s4062_s2, %s4060_s21 }
 0x15a   :  { %s631_s9 = sshll.u32 %s6167_s4, 4  ;;  %p4065_p3 = por %p4064_p2, %p4063_p1  ;;  %s632_s9 = int_to_ptr.hbm [resolvable:$true] %s631_s9 }
 0x15c   :  { %p4066_p4 = pnand %p4065_p3, %p4061_p0 }
 0x15e   :  { %4069 = shalt.err (!%p4066_p4)
}
 0x15f   :  { %606 = dma.hbm_to_vmem [thread:$0]  %s602_s22, 16, %s604_s28, [#allocation47]  }
 0x160   :  { %s6168_s14 = sld [smem:[#allocation143_spill]]  ;;  %s4824_s12 = smov [#allocation49]  }
 0x161   :  { %s633_s24 = sshll.u32 %s4824_s12, 4  ;;  %s4082_s19 = sshra.s32 %s632_s9, 4  ;;  %s634_s24 = int_to_ptr.vmem [resolvable:$true] %s633_s24  ;;  %s4083_s19 = int_to_ptr.hbm [resolvable:$true] %s4082_s19 }
 0x162   :  { %s4084_s27 = scalar_lea.hbm %s4083_s19, 1  ;;  %s4086_s26 = scalar_lea.hbm %s6167_s4, 1 }
 0x163   :  { %p4085_p5 = scmp.ne.s32.totalorder %s4083_s19, %s4084_s27  ;;  %p4087_p6 = scmp.lt.s32.totalorder %s4083_s19, %s6167_s4 }
 0x164   :  { %p4088_p7 = scmp.lt.s32.totalorder %s4086_s26, %s4084_s27 }
 0x166   :  { %s653_s0 = sshll.u32 %s6168_s14, 4  ;;  %p4089_p8 = por %p4088_p7, %p4087_p6  ;;  %s654_s0 = int_to_ptr.hbm [resolvable:$true] %s653_s0 }
 0x168   :  { %p4090_p9 = pnand %p4089_p8, %p4085_p5 }
 0x16a   :  { %4093 = shalt.err (!%p4090_p9)
}
 0x16b   :  { %636 = dma.hbm_to_vmem [thread:$0]  %s632_s9, 16, %s634_s24, [#allocation50]  }
 0x16c   :  { %s6169_s11 = sld [smem:[#allocation145_spill]]  ;;  %s4825_s5 = smov [#allocation52]  }
 0x16d   :  { %s655_s17 = sshll.u32 %s4825_s5, 4  ;;  %s4106_s30 = sshra.s32 %s654_s0, 4  ;;  %s656_s17 = int_to_ptr.vmem [resolvable:$true] %s655_s17  ;;  %s4107_s30 = int_to_ptr.hbm [resolvable:$true] %s4106_s30 }
 0x16e   :  { %s4108_s15 = scalar_lea.hbm %s4107_s30, 1  ;;  %s4110_s18 = scalar_lea.hbm %s6168_s14, 1 }
 0x16f   :  { %p4109_p10 = scmp.ne.s32.totalorder %s4107_s30, %s4108_s15  ;;  %p4111_p11 = scmp.lt.s32.totalorder %s4107_s30, %s6168_s14 }
 0x170   :  { %p4112_p12 = scmp.lt.s32.totalorder %s4110_s18, %s4108_s15 }
 0x172   :  { %s675_s8 = sshll.u32 %s6169_s11, 4  ;;  %p4113_p13 = por %p4112_p12, %p4111_p11  ;;  %s676_s8 = int_to_ptr.hbm [resolvable:$true] %s675_s8 }
 0x174   :  { %p4114_p0 = pnand %p4113_p13, %p4109_p10 }
 0x176   :  { %4117 = shalt.err (!%p4114_p0)
}
 0x177   :  { %658 = dma.hbm_to_vmem [thread:$0]  %s654_s0, 16, %s656_s17, [#allocation53]  }
 0x178   :  { %s6170_s22 = sld [smem:[#allocation149_spill]]  ;;  %s4826_s16 = smov [#allocation55]  }
 0x179   :  { %s677_s29 = sshll.u32 %s4826_s16, 4  ;;  %s4130_s4 = sshra.s32 %s676_s8, 4  ;;  %s678_s29 = int_to_ptr.vmem [resolvable:$true] %s677_s29  ;;  %s4131_s4 = int_to_ptr.hbm [resolvable:$true] %s4130_s4 }
 0x17a   :  { %s4132_s9 = scalar_lea.hbm %s4131_s4, 1  ;;  %s4134_s25 = scalar_lea.hbm %s6169_s11, 1 }
 0x17b   :  { %p4133_p1 = scmp.ne.s32.totalorder %s4131_s4, %s4132_s9  ;;  %p4135_p2 = scmp.lt.s32.totalorder %s4131_s4, %s6169_s11 }
 0x17c   :  { %p4136_p3 = scmp.lt.s32.totalorder %s4134_s25, %s4132_s9 }
 0x17e   :  { %s701_s23 = sshll.u32 %s6170_s22, 4  ;;  %p4137_p4 = por %p4136_p3, %p4135_p2  ;;  %s702_s23 = int_to_ptr.hbm [resolvable:$true] %s701_s23 }
 0x180   :  { %p4138_p5 = pnand %p4137_p4, %p4133_p1 }
 0x182   :  { %4141 = shalt.err (!%p4138_p5)
}
 0x183   :  { %680 = dma.hbm_to_vmem [thread:$0]  %s676_s8, 16, %s678_s29, [#allocation56]  }
 0x184   :  { %s6171_s28 = sld [smem:[#allocation91_spill]]  ;;  %s4827_s21 = smov [#allocation58]  }
 0x185   :  { %s703_s2 = sshll.u32 %s4827_s21, 4  ;;  %s4154_s14 = sshra.s32 %s702_s23, 4  ;;  %s704_s2 = int_to_ptr.vmem [resolvable:$true] %s703_s2  ;;  %s4155_s14 = int_to_ptr.hbm [resolvable:$true] %s4154_s14 }
 0x186   :  { %s4156_s12 = scalar_lea.hbm %s4155_s14, 1  ;;  %s4158_s24 = scalar_lea.hbm %s6170_s22, 1 }
 0x187   :  { %p4157_p6 = scmp.ne.s32.totalorder %s4155_s14, %s4156_s12  ;;  %p4159_p7 = scmp.lt.s32.totalorder %s4155_s14, %s6170_s22 }
 0x188   :  { %p4160_p8 = scmp.lt.s32.totalorder %s4158_s24, %s4156_s12 }
 0x18a   :  { %s211_s1 = sshll.u32 %s6171_s28, 4  ;;  %p4161_p9 = por %p4160_p8, %p4159_p7  ;;  %s5337_s1 = int_to_ptr.hbm [resolvable:$true] %s211_s1 }
 0x18c   :  { %p4162_p10 = pnand %p4161_p9, %p4157_p6 }
 0x18e   :  { %4165 = shalt.err (!%p4162_p10)
}
 0x18f   :  { %706 = dma.hbm_to_vmem [thread:$0]  %s702_s23, 16, %s704_s2, [#allocation59]  }
 0x190   :  { %s6172_s0 = sld [smem:[#allocation92_spill]]  ;;  %s4828_s19 = smov [#allocation2]  }
 0x191   :  { %s213_s27 = sshll.u32 %s4828_s19, 4  ;;  %s4178_s11 = sshra.s32 %s5337_s1, 4  ;;  %s214_s27 = int_to_ptr.vmem [resolvable:$true] %s213_s27  ;;  %s4179_s11 = int_to_ptr.hbm [resolvable:$true] %s4178_s11 }
 0x192   :  { %s4180_s8 = scalar_lea.hbm %s4179_s11, 16  ;;  %s4182_s5 = scalar_lea.hbm %s6171_s28, 16 }
 0x193   :  { %p4181_p11 = scmp.ne.s32.totalorder %s4179_s11, %s4180_s8  ;;  %p4183_p12 = scmp.lt.s32.totalorder %s4179_s11, %s6171_s28 }
 0x194   :  { %p4184_p13 = scmp.lt.s32.totalorder %s4182_s5, %s4180_s8 }
 0x196   :  { %s237_s26 = sshll.u32 %s6172_s0, 4  ;;  %p4185_p0 = por %p4184_p13, %p4183_p12  ;;  %s5342_s26 = int_to_ptr.hbm [resolvable:$true] %s237_s26 }
 0x198   :  { %p4186_p1 = pnand %p4185_p0, %p4181_p11 }
 0x19a   :  { %4189 = shalt.err (!%p4186_p1)
}
 0x19b   :  { %s6173_s17 = sld [smem:[#allocation97_spill]]  ;;  %s4829_s15 = smov [#allocation6]  }
 0x19c   :  { %219 = dma.hbm_to_vmem [thread:$0]  %s5337_s1, 256, %s214_s27, [#allocation3], %s4808_s7, %s4808_s7, %s4809_s10  }
 0x19d   :  { %s239_s18 = sshll.u32 %s4829_s15, 4  ;;  %s4202_s22 = sshra.s32 %s5342_s26, 4  ;;  %s240_s18 = int_to_ptr.vmem [resolvable:$true] %s239_s18  ;;  %s4203_s22 = int_to_ptr.hbm [resolvable:$true] %s4202_s22 }
 0x19e   :  { %s4204_s16 = scalar_lea.hbm %s4203_s22, 16  ;;  %s4206_s29 = scalar_lea.hbm %s6172_s0, 16 }
 0x19f   :  { %p4205_p2 = scmp.ne.s32.totalorder %s4203_s22, %s4204_s16  ;;  %p4207_p3 = scmp.lt.s32.totalorder %s4203_s22, %s6172_s0 }
 0x1a0   :  { %p4208_p4 = scmp.lt.s32.totalorder %s4206_s29, %s4204_s16 }
 0x1a1   :  { %s271_s30 = sshll.u32 %s6173_s17, 4  ;;  %s5352_s30 = int_to_ptr.hbm [resolvable:$true] %s271_s30 }
 0x1a2   :  { %p4209_p5 = por %p4208_p4, %p4207_p3 }
 0x1a4   :  { %p4210_p6 = pnand %p4209_p5, %p4205_p2 }
 0x1a6   :  { %4213 = shalt.err (!%p4210_p6)
}
 0x1a7   :  { %s6174_s23 = sld [smem:[#allocation110_spill]]  ;;  %s4830_s4 = smov [#allocation9]  }
 0x1a8   :  { %245 = dma.hbm_to_vmem [thread:$0]  %s5342_s26, 256, %s240_s18, [#allocation5], %s4808_s7, %s4808_s7, %s4809_s10  }
 0x1a9   :  { %s273_s9 = sshll.u32 %s4830_s4, 4  ;;  %s4226_s28 = sshra.s32 %s5352_s30, 4  ;;  %s274_s9 = int_to_ptr.vmem [resolvable:$true] %s273_s9  ;;  %s4227_s28 = int_to_ptr.hbm [resolvable:$true] %s4226_s28 }
 0x1aa   :  { %s4228_s1 = scalar_lea.hbm %s4227_s28, 16  ;;  %s4230_s21 = scalar_lea.hbm %s6173_s17, 16 }
 0x1ab   :  { %p4229_p7 = scmp.ne.s32.totalorder %s4227_s28, %s4228_s1  ;;  %p4231_p8 = scmp.lt.s32.totalorder %s4227_s28, %s6173_s17 }
 0x1ac   :  { %p4232_p9 = scmp.lt.s32.totalorder %s4230_s21, %s4228_s1 }
 0x1ad   :  { %s320_s25 = sshll.u32 %s6174_s23, 4  ;;  %s321_s25 = int_to_ptr.hbm [resolvable:$true] %s320_s25 }
 0x1ae   :  { %p4233_p10 = por %p4232_p9, %p4231_p8 }
 0x1b0   :  { %p4234_p11 = pnand %p4233_p10, %p4229_p7 }
 0x1b2   :  { %4237 = shalt.err (!%p4234_p11)
}
 0x1b3   :  { %s6175_s2 = sld [smem:[#allocation111_spill]]  ;;  %s4831_s12 = smov [#allocation12]  }
 0x1b4   :  { %279 = dma.hbm_to_vmem [thread:$0]  %s5352_s30, 256, %s274_s9, [#allocation8], %s4808_s7, %s4808_s7, %s4809_s10  }
 0x1b5   :  { %s322_s24 = sshll.u32 %s4831_s12, 4  ;;  %s4250_s0 = sshra.s32 %s321_s25, 4  ;;  %s323_s24 = int_to_ptr.vmem [resolvable:$true] %s322_s24  ;;  %s4251_s0 = int_to_ptr.hbm [resolvable:$true] %s4250_s0 }
 0x1b6   :  { %s4252_s19 = scalar_lea.hbm %s4251_s0, 1  ;;  %s4254_s27 = scalar_lea.hbm %s6174_s23, 1 }
 0x1b7   :  { %p4253_p12 = scmp.ne.s32.totalorder %s4251_s0, %s4252_s19  ;;  %p4255_p13 = scmp.lt.s32.totalorder %s4251_s0, %s6174_s23 }
 0x1b8   :  { %p4256_p0 = scmp.lt.s32.totalorder %s4254_s27, %s4252_s19 }
 0x1b9   :  { %s342_s14 = sshll.u32 %s6175_s2, 4  ;;  %s343_s14 = int_to_ptr.hbm [resolvable:$true] %s342_s14 }
 0x1ba   :  { %p4257_p1 = por %p4256_p0, %p4255_p13 }
 0x1bc   :  { %p4258_p2 = pnand %p4257_p1, %p4253_p12 }
 0x1be   :  { %4261 = shalt.err (!%p4258_p2)
}
 0x1bf   :  { %325 = dma.hbm_to_vmem [thread:$0]  %s321_s25, 16, %s323_s24, [#allocation11]  }
 0x1c0   :  { %s6176_s26 = sld [smem:[#allocation112_spill]]  ;;  %s4832_s11 = smov [#allocation15]  }
 0x1c1   :  { %s344_s8 = sshll.u32 %s4832_s11, 4  ;;  %s4274_s17 = sshra.s32 %s343_s14, 4  ;;  %s345_s8 = int_to_ptr.vmem [resolvable:$true] %s344_s8  ;;  %s4275_s17 = int_to_ptr.hbm [resolvable:$true] %s4274_s17 }
 0x1c2   :  { %s4276_s30 = scalar_lea.hbm %s4275_s17, 1  ;;  %s4278_s15 = scalar_lea.hbm %s6175_s2, 1 }
 0x1c3   :  { %p4277_p3 = scmp.ne.s32.totalorder %s4275_s17, %s4276_s30  ;;  %p4279_p4 = scmp.lt.s32.totalorder %s4275_s17, %s6175_s2 }
 0x1c4   :  { %p4280_p5 = scmp.lt.s32.totalorder %s4278_s15, %s4276_s30 }
 0x1c6   :  { %s364_s5 = sshll.u32 %s6176_s26, 4  ;;  %p4281_p6 = por %p4280_p5, %p4279_p4  ;;  %s365_s5 = int_to_ptr.hbm [resolvable:$true] %s364_s5 }
 0x1c8   :  { %p4282_p7 = pnand %p4281_p6, %p4277_p3 }
 0x1ca   :  { %4285 = shalt.err (!%p4282_p7)
}
 0x1cb   :  { %347 = dma.hbm_to_vmem [thread:$0]  %s343_s14, 16, %s345_s8, [#allocation14]  }
 0x1cc   :  { %s6177_s18 = sld [smem:[#allocation113_spill]]  ;;  %s4833_s16 = smov [#allocation18]  }
 0x1cd   :  { %s366_s29 = sshll.u32 %s4833_s16, 4  ;;  %s4298_s23 = sshra.s32 %s365_s5, 4  ;;  %s367_s29 = int_to_ptr.vmem [resolvable:$true] %s366_s29  ;;  %s4299_s23 = int_to_ptr.hbm [resolvable:$true] %s4298_s23 }
 0x1ce   :  { %s4300_s4 = scalar_lea.hbm %s4299_s23, 1  ;;  %s4302_s9 = scalar_lea.hbm %s6176_s26, 1 }
 0x1cf   :  { %p4301_p8 = scmp.ne.s32.totalorder %s4299_s23, %s4300_s4  ;;  %p4303_p9 = scmp.lt.s32.totalorder %s4299_s23, %s6176_s26 }
 0x1d0   :  { %p4304_p10 = scmp.lt.s32.totalorder %s4302_s9, %s4300_s4 }
 0x1d2   :  { %s386_s22 = sshll.u32 %s6177_s18, 4  ;;  %p4305_p11 = por %p4304_p10, %p4303_p9  ;;  %s387_s22 = int_to_ptr.hbm [resolvable:$true] %s386_s22 }
 0x1d4   :  { %p4306_p12 = pnand %p4305_p11, %p4301_p8 }
 0x1d6   :  { %4309 = shalt.err (!%p4306_p12)
}
 0x1d7   :  { %369 = dma.hbm_to_vmem [thread:$0]  %s365_s5, 16, %s367_s29, [#allocation17]  }
 0x1d8   :  { %s6178_s25 = sld [smem:[#allocation120_spill]]  ;;  %s4834_s28 = smov [#allocation21]  }
 0x1d9   :  { %s388_s1 = sshll.u32 %s4834_s28, 4  ;;  %s4322_s2 = sshra.s32 %s387_s22, 4  ;;  %s389_s1 = int_to_ptr.vmem [resolvable:$true] %s388_s1  ;;  %s4323_s2 = int_to_ptr.hbm [resolvable:$true] %s4322_s2 }
 0x1da   :  { %s4324_s14 = scalar_lea.hbm %s4323_s2, 1  ;;  %s4326_s12 = scalar_lea.hbm %s6177_s18, 1 }
 0x1db   :  { %p4325_p13 = scmp.ne.s32.totalorder %s4323_s2, %s4324_s14  ;;  %p4327_p0 = scmp.lt.s32.totalorder %s4323_s2, %s6177_s18 }
 0x1dc   :  { %p4328_p1 = scmp.lt.s32.totalorder %s4326_s12, %s4324_s14 }
 0x1de   :  { %s420_s21 = sshll.u32 %s6178_s25, 4  ;;  %p4329_p2 = por %p4328_p1, %p4327_p0  ;;  %s421_s21 = int_to_ptr.hbm [resolvable:$true] %s420_s21 }
 0x1e0   :  { %p4330_p3 = pnand %p4329_p2, %p4325_p13 }
 0x1e2   :  { %4333 = shalt.err (!%p4330_p3)
}
 0x1e3   :  { %391 = dma.hbm_to_vmem [thread:$0]  %s387_s22, 16, %s389_s1, [#allocation20]  }
 0x1e4   :  { %s6179_s24 = sld [smem:[#allocation121_spill]]  ;;  %s4835_s19 = smov [#allocation24]  }
 0x1e5   :  { %s422_s27 = sshll.u32 %s4835_s19, 4  ;;  %s4346_s26 = sshra.s32 %s421_s21, 4  ;;  %s423_s27 = int_to_ptr.vmem [resolvable:$true] %s422_s27  ;;  %s4347_s26 = int_to_ptr.hbm [resolvable:$true] %s4346_s26 }
 0x1e6   :  { %s4348_s11 = scalar_lea.hbm %s4347_s26, 1  ;;  %s4350_s8 = scalar_lea.hbm %s6178_s25, 1 }
 0x1e7   :  { %p4349_p4 = scmp.ne.s32.totalorder %s4347_s26, %s4348_s11  ;;  %p4351_p5 = scmp.lt.s32.totalorder %s4347_s26, %s6178_s25 }
 0x1e8   :  { %p4352_p6 = scmp.lt.s32.totalorder %s4350_s8, %s4348_s11 }
 0x1ea   :  { %s441_s0 = sshll.u32 %s6179_s24, 4  ;;  %p4353_p7 = por %p4352_p6, %p4351_p5  ;;  %s5382_s0 = int_to_ptr.hbm [resolvable:$true] %s441_s0 }
 0x1ec   :  { %p4354_p8 = pnand %p4353_p7, %p4349_p4 }
 0x1ee   :  { %4357 = shalt.err (!%p4354_p8)
}
 0x1ef   :  { %425 = dma.hbm_to_vmem [thread:$0]  %s421_s21, 16, %s423_s27, [#allocation23]  }
 0x1f0   :  { %s6180_s5 = sld [smem:[#allocation123_spill]]  ;;  %s4836_s17 = smov [#allocation27]  }
 0x1f1   :  { %s443_s30 = sshll.u32 %s4836_s17, 4  ;;  %s4370_s18 = sshra.s32 %s5382_s0, 4  ;;  %s444_s30 = int_to_ptr.vmem [resolvable:$true] %s443_s30  ;;  %s4371_s18 = int_to_ptr.hbm [resolvable:$true] %s4370_s18 }
 0x1f2   :  { %s4372_s22 = scalar_lea.hbm %s4371_s18, 16  ;;  %s4374_s16 = scalar_lea.hbm %s6179_s24, 16 }
 0x1f3   :  { %p4373_p9 = scmp.ne.s32.totalorder %s4371_s18, %s4372_s22  ;;  %p4375_p10 = scmp.lt.s32.totalorder %s4371_s18, %s6179_s24 }
 0x1f4   :  { %p4376_p11 = scmp.lt.s32.totalorder %s4374_s16, %s4372_s22 }
 0x1f6   :  { %s468_s15 = sshll.u32 %s6180_s5, 4  ;;  %p4377_p12 = por %p4376_p11, %p4375_p10  ;;  %s469_s15 = int_to_ptr.hbm [resolvable:$true] %s468_s15 }
 0x1f8   :  { %p4378_p13 = pnand %p4377_p12, %p4373_p9 }
 0x1fa   :  { %4381 = shalt.err (!%p4378_p13)
}
 0x1fb   :  { %s6181_s29 = sld [smem:[#allocation124_spill]]  ;;  %s4837_s4 = smov [#allocation30]  }
 0x1fc   :  { %449 = dma.hbm_to_vmem [thread:$0]  %s5382_s0, 256, %s444_s30, [#allocation26], %s4808_s7, %s4808_s7, %s4809_s10  }
 0x1fd   :  { %s470_s9 = sshll.u32 %s4837_s4, 4  ;;  %s4394_s25 = sshra.s32 %s469_s15, 4  ;;  %s471_s9 = int_to_ptr.vmem [resolvable:$true] %s470_s9  ;;  %s4395_s25 = int_to_ptr.hbm [resolvable:$true] %s4394_s25 }
 0x1fe   :  { %s4396_s28 = scalar_lea.hbm %s4395_s25, 1  ;;  %s4398_s1 = scalar_lea.hbm %s6180_s5, 1 }
 0x1ff   :  { %p4397_p0 = scmp.ne.s32.totalorder %s4395_s25, %s4396_s28  ;;  %p4399_p1 = scmp.lt.s32.totalorder %s4395_s25, %s6180_s5 }
 0x200   :  { %p4400_p2 = scmp.lt.s32.totalorder %s4398_s1, %s4396_s28 }
 0x201   :  { %s490_s23 = sshll.u32 %s6181_s29, 4  ;;  %s491_s23 = int_to_ptr.hbm [resolvable:$true] %s490_s23 }
 0x202   :  { %p4401_p3 = por %p4400_p2, %p4399_p1 }
 0x204   :  { %p4402_p4 = pnand %p4401_p3, %p4397_p0 }
 0x206   :  { %4405 = shalt.err (!%p4402_p4)
}
 0x207   :  { %473 = dma.hbm_to_vmem [thread:$0]  %s469_s15, 16, %s471_s9, [#allocation29]  }
 0x208   :  { %s6182_s21 = sld [smem:[#allocation129_spill]]  ;;  %s4838_s7 = smov [#allocation33]  }
 0x209   :  { %s492_s10 = sshll.u32 %s4838_s7, 4  ;;  %s4418_s14 = sshra.s32 %s491_s23, 4  ;;  %s493_s10 = int_to_ptr.vmem [resolvable:$true] %s492_s10  ;;  %s4419_s14 = int_to_ptr.hbm [resolvable:$true] %s4418_s14 }
 0x20a   :  { %s4420_s12 = scalar_lea.hbm %s4419_s14, 1  ;;  %s4422_s24 = scalar_lea.hbm %s6181_s29, 1 }
 0x20b   :  { %p4421_p5 = scmp.ne.s32.totalorder %s4419_s14, %s4420_s12  ;;  %p4423_p6 = scmp.lt.s32.totalorder %s4419_s14, %s6181_s29 }
 0x20c   :  { %p4424_p7 = scmp.lt.s32.totalorder %s4422_s24, %s4420_s12 }
 0x20e   :  { %s520_s2 = sshll.u32 %s6182_s21, 4  ;;  %p4425_p8 = por %p4424_p7, %p4423_p6  ;;  %s521_s2 = int_to_ptr.hbm [resolvable:$true] %s520_s2 }
 0x210   :  { %p4426_p9 = pnand %p4425_p8, %p4421_p5 }
 0x212   :  { %4429 = shalt.err (!%p4426_p9)
}
 0x213   :  { %495 = dma.hbm_to_vmem [thread:$0]  %s491_s23, 16, %s493_s10, [#allocation32]  }
 0x214   :  { %s6183_s0 = sld [smem:[#allocation130_spill]]  ;;  %s4839_s27 = smov [#allocation36]  }
 0x215   :  { %s522_s26 = sshll.u32 %s4839_s27, 4  ;;  %s4442_s11 = sshra.s32 %s521_s2, 4  ;;  %s523_s26 = int_to_ptr.vmem [resolvable:$true] %s522_s26  ;;  %s4443_s11 = int_to_ptr.hbm [resolvable:$true] %s4442_s11 }
 0x216   :  { %s4444_s8 = scalar_lea.hbm %s4443_s11, 1  ;;  %s4446_s5 = scalar_lea.hbm %s6182_s21, 1 }
 0x217   :  { %p4445_p10 = scmp.ne.s32.totalorder %s4443_s11, %s4444_s8  ;;  %p4447_p11 = scmp.lt.s32.totalorder %s4443_s11, %s6182_s21 }
 0x218   :  { %p4448_p12 = scmp.lt.s32.totalorder %s4446_s5, %s4444_s8 }
 0x21a   :  { %s542_s19 = sshll.u32 %s6183_s0, 4  ;;  %p4449_p13 = por %p4448_p12, %p4447_p11  ;;  %s543_s19 = int_to_ptr.hbm [resolvable:$true] %s542_s19 }
 0x21c   :  { %p4450_p0 = pnand %p4449_p13, %p4445_p10 }
 0x21e   :  { %4453 = shalt.err (!%p4450_p0)
}
 0x21f   :  { %525 = dma.hbm_to_vmem [thread:$0]  %s521_s2, 16, %s523_s26, [#allocation35]  }
 0x220   :  { %s6184_s17 = sld [smem:[#allocation131_spill]]  ;;  %s4840_s30 = smov [#allocation39]  }
 0x221   :  { %s544_s15 = sshll.u32 %s4840_s30, 4  ;;  %s4466_s22 = sshra.s32 %s543_s19, 4  ;;  %s545_s15 = int_to_ptr.vmem [resolvable:$true] %s544_s15  ;;  %s4467_s22 = int_to_ptr.hbm [resolvable:$true] %s4466_s22 }
 0x222   :  { %s4468_s16 = scalar_lea.hbm %s4467_s22, 1  ;;  %s4470_s29 = scalar_lea.hbm %s6183_s0, 1 }
 0x223   :  { %p4469_p1 = scmp.ne.s32.totalorder %s4467_s22, %s4468_s16  ;;  %p4471_p2 = scmp.lt.s32.totalorder %s4467_s22, %s6183_s0 }
 0x224   :  { %p4472_p3 = scmp.lt.s32.totalorder %s4470_s29, %s4468_s16 }
 0x226   :  { %s564_s18 = sshll.u32 %s6184_s17, 4  ;;  %p4473_p4 = por %p4472_p3, %p4471_p2  ;;  %s565_s18 = int_to_ptr.hbm [resolvable:$true] %s564_s18 }
 0x228   :  { %p4474_p5 = pnand %p4473_p4, %p4469_p1 }
 0x22a   :  { %4477 = shalt.err (!%p4474_p5)
}
 0x22b   :  { %547 = dma.hbm_to_vmem [thread:$0]  %s543_s19, 16, %s545_s15, [#allocation38]  }
 0x22c   :  { %s6185_s23 = sld [smem:[#allocation134_spill]]  ;;  %s4841_s9 = smov [#allocation42]  }
 0x22d   :  { %s566_s25 = sshll.u32 %s4841_s9, 4  ;;  %s4490_s28 = sshra.s32 %s565_s18, 4  ;;  %s567_s25 = int_to_ptr.vmem [resolvable:$true] %s566_s25  ;;  %s4491_s28 = int_to_ptr.hbm [resolvable:$true] %s4490_s28 }
 0x22e   :  { %s4492_s1 = scalar_lea.hbm %s4491_s28, 1  ;;  %s4494_s21 = scalar_lea.hbm %s6184_s17, 1 }
 0x22f   :  { %p4493_p6 = scmp.ne.s32.totalorder %s4491_s28, %s4492_s1  ;;  %p4495_p7 = scmp.lt.s32.totalorder %s4491_s28, %s6184_s17 }
 0x230   :  { %p4496_p8 = scmp.lt.s32.totalorder %s4494_s21, %s4492_s1 }
 0x232   :  { %s590_s4 = sshll.u32 %s6185_s23, 4  ;;  %p4497_p9 = por %p4496_p8, %p4495_p7  ;;  %s591_s4 = int_to_ptr.hbm [resolvable:$true] %s590_s4 }
 0x234   :  { %p4498_p10 = pnand %p4497_p9, %p4493_p6 }
 0x236   :  { %4501 = shalt.err (!%p4498_p10)
}
 0x237   :  { %569 = dma.hbm_to_vmem [thread:$0]  %s565_s18, 16, %s567_s25, [#allocation41]  }
 0x238   :  { %s6186_s7 = sld [smem:[#allocation136_spill]]  ;;  %s4842_s10 = smov [#allocation45]  }
 0x239   :  { %s592_s2 = sshll.u32 %s4842_s10, 4  ;;  %s4514_s12 = sshra.s32 %s591_s4, 4  ;;  %s593_s2 = int_to_ptr.vmem [resolvable:$true] %s592_s2  ;;  %s4515_s12 = int_to_ptr.hbm [resolvable:$true] %s4514_s12 }
 0x23a   :  { %s4516_s24 = scalar_lea.hbm %s4515_s12, 1  ;;  %s4518_s0 = scalar_lea.hbm %s6185_s23, 1 }
 0x23b   :  { %p4517_p11 = scmp.ne.s32.totalorder %s4515_s12, %s4516_s24  ;;  %p4519_p12 = scmp.lt.s32.totalorder %s4515_s12, %s6185_s23 }
 0x23c   :  { %p4520_p13 = scmp.lt.s32.totalorder %s4518_s0, %s4516_s24 }
 0x23e   :  { %s612_s14 = sshll.u32 %s6186_s7, 4  ;;  %p4521_p0 = por %p4520_p13, %p4519_p12  ;;  %s613_s14 = int_to_ptr.hbm [resolvable:$true] %s612_s14 }
 0x240   :  { %p4522_p1 = pnand %p4521_p0, %p4517_p11 }
 0x242   :  { %4525 = shalt.err (!%p4522_p1)
}
 0x243   :  { %595 = dma.hbm_to_vmem [thread:$0]  %s591_s4, 16, %s593_s2, [#allocation44]  }
 0x244   :  { %s6187_s19 = sld [smem:[#allocation142_spill]]  ;;  %s4843_s26 = smov [#allocation48]  }
 0x245   :  { %s614_s11 = sshll.u32 %s4843_s26, 4  ;;  %s4538_s8 = sshra.s32 %s613_s14, 4  ;;  %s615_s11 = int_to_ptr.vmem [resolvable:$true] %s614_s11  ;;  %s4539_s8 = int_to_ptr.hbm [resolvable:$true] %s4538_s8 }
 0x246   :  { %s4540_s5 = scalar_lea.hbm %s4539_s8, 1  ;;  %s4542_s17 = scalar_lea.hbm %s6186_s7, 1 }
 0x247   :  { %p4541_p2 = scmp.ne.s32.totalorder %s4539_s8, %s4540_s5  ;;  %p4543_p3 = scmp.lt.s32.totalorder %s4539_s8, %s6186_s7 }
 0x248   :  { %p4544_p4 = scmp.lt.s32.totalorder %s4542_s17, %s4540_s5 }
 0x24a   :  { %s642_s27 = sshll.u32 %s6187_s19, 4  ;;  %p4545_p5 = por %p4544_p4, %p4543_p3  ;;  %s643_s27 = int_to_ptr.hbm [resolvable:$true] %s642_s27 }
 0x24c   :  { %p4546_p6 = pnand %p4545_p5, %p4541_p2 }
 0x24e   :  { %4549 = shalt.err (!%p4546_p6)
}
 0x24f   :  { %617 = dma.hbm_to_vmem [thread:$0]  %s613_s14, 16, %s615_s11, [#allocation47]  }
 0x250   :  { %s6188_s30 = sld [smem:[#allocation144_spill]]  ;;  %s4844_s15 = smov [#allocation51]  }
 0x251   :  { %s644_s18 = sshll.u32 %s4844_s15, 4  ;;  %s4562_s16 = sshra.s32 %s643_s27, 4  ;;  %s645_s18 = int_to_ptr.vmem [resolvable:$true] %s644_s18  ;;  %s4563_s16 = int_to_ptr.hbm [resolvable:$true] %s4562_s16 }
 0x252   :  { %s4564_s29 = scalar_lea.hbm %s4563_s16, 1  ;;  %s4566_s23 = scalar_lea.hbm %s6187_s19, 1 }
 0x253   :  { %p4565_p7 = scmp.ne.s32.totalorder %s4563_s16, %s4564_s29  ;;  %p4567_p8 = scmp.lt.s32.totalorder %s4563_s16, %s6187_s19 }
 0x254   :  { %p4568_p9 = scmp.lt.s32.totalorder %s4566_s23, %s4564_s29 }
 0x256   :  { %s664_s22 = sshll.u32 %s6188_s30, 4  ;;  %p4569_p10 = por %p4568_p9, %p4567_p8  ;;  %s665_s22 = int_to_ptr.hbm [resolvable:$true] %s664_s22 }
 0x258   :  { %p4570_p11 = pnand %p4569_p10, %p4565_p7 }
 0x25a   :  { %4573 = shalt.err (!%p4570_p11)
}
 0x25b   :  { %647 = dma.hbm_to_vmem [thread:$0]  %s643_s27, 16, %s645_s18, [#allocation50]  }
 0x25c   :  { %s6189_s4 = sld [smem:[#allocation146_spill]]  ;;  %s4845_s25 = smov [#allocation54]  }
 0x25d   :  { %s666_s28 = sshll.u32 %s4845_s25, 4  ;;  %s4586_s1 = sshra.s32 %s665_s22, 4  ;;  %s667_s28 = int_to_ptr.vmem [resolvable:$true] %s666_s28  ;;  %s4587_s1 = int_to_ptr.hbm [resolvable:$true] %s4586_s1 }
 0x25e   :  { %s4588_s21 = scalar_lea.hbm %s4587_s1, 1  ;;  %s4590_s7 = scalar_lea.hbm %s6188_s30, 1 }
 0x25f   :  { %p4589_p12 = scmp.ne.s32.totalorder %s4587_s1, %s4588_s21  ;;  %p4591_p13 = scmp.lt.s32.totalorder %s4587_s1, %s6188_s30 }
 0x260   :  { %p4592_p0 = scmp.lt.s32.totalorder %s4590_s7, %s4588_s21 }
 0x262   :  { %s686_s9 = sshll.u32 %s6189_s4, 4  ;;  %p4593_p1 = por %p4592_p0, %p4591_p13  ;;  %s687_s9 = int_to_ptr.hbm [resolvable:$true] %s686_s9 }
 0x264   :  { %p4594_p2 = pnand %p4593_p1, %p4589_p12 }
 0x266   :  { %4597 = shalt.err (!%p4594_p2)
}
 0x267   :  { %669 = dma.hbm_to_vmem [thread:$0]  %s665_s22, 16, %s667_s28, [#allocation53]  }
 0x268   :  { %s4846_s10 = smov [#allocation57]   ;;  %s712_s14 = sshll.u32 %s5258_s6, 4  ;;  %s713_s14 = int_to_ptr.hbm [resolvable:$true] %s712_s14 }
 0x269   :  { %s688_s2 = sshll.u32 %s4846_s10, 4  ;;  %s4610_s12 = sshra.s32 %s687_s9, 4  ;;  %s689_s2 = int_to_ptr.vmem [resolvable:$true] %s688_s2  ;;  %s4611_s12 = int_to_ptr.hbm [resolvable:$true] %s4610_s12 }
 0x26a   :  { %s4612_s24 = scalar_lea.hbm %s4611_s12, 1  ;;  %s4614_s0 = scalar_lea.hbm %s6189_s4, 1 }
 0x26b   :  { %p4613_p3 = scmp.ne.s32.totalorder %s4611_s12, %s4612_s24  ;;  %p4615_p4 = scmp.lt.s32.totalorder %s4611_s12, %s6189_s4 }
 0x26c   :  { %p4616_p5 = scmp.lt.s32.totalorder %s4614_s0, %s4612_s24 }
 0x26e   :  { %p4617_p6 = por %p4616_p5, %p4615_p4 }
 0x270   :  { %p4618_p7 = pnand %p4617_p6, %p4613_p3 }
 0x272   :  { %4621 = shalt.err (!%p4618_p7)
}
 0x273   :  { %691 = dma.hbm_to_vmem [thread:$0]  %s687_s9, 16, %s689_s2, [#allocation56]  }
 0x274   :  { %s723_s19 = sshll.u32 %s5263_s20, 4  ;;  %s4847_s27 = smov [#allocation60]   ;;  %s724_s19 = int_to_ptr.hbm [resolvable:$true] %s723_s19 }
 0x275   :  { %s714_s26 = sshll.u32 %s4847_s27, 4  ;;  %s4634_s11 = sshra.s32 %s713_s14, 4  ;;  %s715_s26 = int_to_ptr.vmem [resolvable:$true] %s714_s26  ;;  %s4635_s11 = int_to_ptr.hbm [resolvable:$true] %s4634_s11 }
 0x276   :  { %s4636_s8 = scalar_lea.hbm %s4635_s11, 1  ;;  %s4638_s5 = scalar_lea.hbm %s5258_s6, 1 }
 0x277   :  { %p4637_p8 = scmp.ne.s32.totalorder %s4635_s11, %s4636_s8  ;;  %p4639_p9 = scmp.lt.s32.totalorder %s4635_s11, %s5258_s6 }
 0x278   :  { %p4640_p10 = scmp.lt.s32.totalorder %s4638_s5, %s4636_s8 }
 0x27a   :  { %p4641_p11 = por %p4640_p10, %p4639_p9 }
 0x27c   :  { %p4642_p12 = pnand %p4641_p11, %p4637_p8 }
 0x27e   :  { %4645 = shalt.err (!%p4642_p12)
}
 0x27f   :  { %717 = dma.hbm_to_vmem [thread:$0]  %s713_s14, 16, %s715_s26, [#allocation59]  }
 0x280   :  { %s4848_s17 = smov [#allocation61]   ;;  %s4658_s15 = sshra.s32 %s724_s19, 4  ;;  %s4659_s15 = int_to_ptr.hbm [resolvable:$true] %s4658_s15 }
 0x281   :  { %s725_s30 = sshll.u32 %s4848_s17, 4  ;;  %s4660_s18 = scalar_lea.hbm %s4659_s15, 1  ;;  %s726_s30 = int_to_ptr.vmem [resolvable:$true] %s725_s30 }
 0x282   :  { %p4661_p13 = scmp.ne.s32.totalorder %s4659_s15, %s4660_s18  ;;  %s4662_s22 = scalar_lea.hbm %s5263_s20, 1 }
 0x283   :  { %p4663_p0 = scmp.lt.s32.totalorder %s4659_s15, %s5263_s20  ;;  %p4664_p1 = scmp.lt.s32.totalorder %s4662_s22, %s4660_s18 }
 0x285   :  { %p4665_p2 = por %p4664_p1, %p4663_p0 }
 0x287   :  { %p4666_p3 = pnand %p4665_p2, %p4661_p13 }
 0x289   :  { %4669 = shalt.err (!%p4666_p3)
}
 0x28a   :  { %728 = dma.hbm_to_vmem [thread:$0]  %s724_s19, 16, %s726_s30, [#allocation62]  }
 0x28b   :  { %4682 = dma.done.wait [#allocation3], 256  }
 0x28c   :  { %4683 = vsyncadd [#allocation3], 4294967040 }
 0x28d   :  { %4684 = dma.done.wait [#allocation5], 512  }
 0x28e   :  { %4685 = vsyncadd [#allocation5], 4294966784 }
 0x28f   :  { %4686 = dma.done.wait [#allocation8], 512  }
 0x290   :  { %4687 = vsyncadd [#allocation8], 4294966784 }
 0x291   :  { %4688 = dma.done.wait [#allocation11], 32  }
 0x292   :  { %4689 = vsyncadd [#allocation11], 4294967264 }
 0x293   :  { %4690 = dma.done.wait [#allocation14], 32  }
 0x294   :  { %4691 = vsyncadd [#allocation14], 4294967264 }
 0x295   :  { %4692 = dma.done.wait [#allocation17], 32  }
 0x296   :  { %4693 = vsyncadd [#allocation17], 4294967264 }
 0x297   :  { %4694 = dma.done.wait [#allocation20], 32  }
 0x298   :  { %4695 = vsyncadd [#allocation20], 4294967264 }
 0x299   :  { %4696 = dma.done.wait [#allocation23], 32  }
 0x29a   :  { %4697 = vsyncadd [#allocation23], 4294967264 }
 0x29b   :  { %4698 = dma.done.wait [#allocation26], 272  }
 0x29c   :  { %4699 = vsyncadd [#allocation26], 4294967024 }
 0x29d   :  { %4700 = dma.done.wait [#allocation29], 32  }
 0x29e   :  { %4701 = vsyncadd [#allocation29], 4294967264 }
 0x29f   :  { %4702 = dma.done.wait [#allocation32], 32  }
 0x2a0   :  { %4703 = vsyncadd [#allocation32], 4294967264 }
 0x2a1   :  { %4704 = dma.done.wait [#allocation35], 32  }
 0x2a2   :  { %4705 = vsyncadd [#allocation35], 4294967264 }
 0x2a3   :  { %4706 = dma.done.wait [#allocation38], 32  }
 0x2a4   :  { %4707 = vsyncadd [#allocation38], 4294967264 }
 0x2a5   :  { %4708 = dma.done.wait [#allocation41], 32  }
 0x2a6   :  { %4709 = vsyncadd [#allocation41], 4294967264 }
 0x2a7   :  { %4710 = dma.done.wait [#allocation44], 32  }
 0x2a8   :  { %4711 = vsyncadd [#allocation44], 4294967264 }
 0x2a9   :  { %4712 = dma.done.wait [#allocation47], 32  }
 0x2aa   :  { %4713 = vsyncadd [#allocation47], 4294967264 }
 0x2ab   :  { %4714 = dma.done.wait [#allocation50], 32  }
 0x2ac   :  { %4715 = vsyncadd [#allocation50], 4294967264 }
 0x2ad   :  { %4716 = dma.done.wait [#allocation53], 32  }
 0x2ae   :  { %4717 = vsyncadd [#allocation53], 4294967264 }
 0x2af   :  { %4718 = dma.done.wait [#allocation56], 32  }
 0x2b0   :  { %4719 = vsyncadd [#allocation56], 4294967264 }
 0x2b1   :  { %4720 = dma.done.wait [#allocation59], 32  }
 0x2b2   :  { %4721 = vsyncadd [#allocation59], 4294967264 }
 0x2b3   :  { %4722 = dma.done.wait [#allocation62], 16  }
 0x2b4   :  { %4723 = vsyncadd [#allocation62], 4294967280  ;;  %s6190_s6 = sld [smem:[#allocation84_spill]]  ;;  %vm901_vm0 = vcmask 130048   ;;  %v1087_v6 = vld [vmem:[#allocation27 + $0x8] sm:$0xf] }
 0x2b5   :  { %s6191_s20 = sld [smem:[#allocation90_spill]]  ;;  %vm1098_vm1 = vcmask 1043456   ;;  %v1086_v8 = vld [vmem:[#allocation27] sm:$0xff]  ;;  %vm1091_vm2 = vcmask 31744   ;;  %vm1125_vm7 = vcmask 97280   ;;  %vm1170_vm8 = vcmask 261120  }
 0x2b6   :  { %s6192_s16 = sld [smem:[#allocation122_spill]]  ;;  %v897_v25 = vld [vmem:[#allocation2] sm:$0xff]  ;;  %v898_v35 = vld [vmem:[#allocation2 + $0x8] sm:$0xff]  ;;  %vm1345_vm9 = vcmask 523264  }
 0x2b7   :  { %s6193_s29 = sld [smem:[#allocation86_spill]] }
 0x2b8   :  { %s6194_s23 = sld [smem:[#allocation125_spill]] }
 0x2b9   :  { %s6195_s4 = sld [smem:[#allocation127_spill]] }
 0x2ba   :  { %v5430_v0 = vld [vmem:[%s6190_s6 + $0x8] sm:$0xff]  ;;  %v5433_v1 = vld [vmem:[%s6190_s6] sm:$0xff]  ;;  %s6196_s9 = sld [smem:[#allocation128_spill]] }
 0x2bb   :  { %v895_v2 = vld [vmem:[%s6191_s20] sm:$0xff]  ;;  %922 = vmatpush.msra.mxu0 %v5430_v0  ;;  %3451 = vmatpush.msra.mxu3 %v5430_v0  ;;  %v900_v3 = vmul.f32 %v5430_v0, %v5430_v0  ;;  %v899_v4 = vmul.f32 %v5433_v1, %v5433_v1  ;;  %v896_v5 = vld [vmem:[%s6191_s20 + $0x8] sm:$0xff]  ;;  %s6197_s25 = sld [smem:[#allocation88_spill]] }
 0x2bc   :  { %1008 = vmatpush.msra.mxu2 %v5430_v0  ;;  %v1090_v7 = vld [vmem:[%s6192_s16] sm:$0xf]  ;;  %s6198_s28 = sld [smem:[#allocation93_spill]] }
 0x2bd   :  { %923 = vmatpush.msra.mxu0 %v5433_v1  ;;  %945 = vmatpush.msra.mxu1 %v900_v3  ;;  %v1088_v9 = vld [vmem:[%s6193_s29] sm:$0xff]  ;;  %v1089_v18 = vld [vmem:[%s6193_s29 + $0x8] sm:$0xff]  ;;  %s6199_s1 = sld [smem:[#allocation95_spill]] }
 0x2be   :  { %3329 = vmatmul.msk.f32.vlgmr.msra.gmra.mxu0 %vm901_vm0, %v895_v2  ;;  %3452 = vmatpush.msra.mxu3 %v5433_v1  ;;  %v1203_v26 = vld [vmem:[%s6194_s23 + $0x18] sm:$0xff]  ;;  %v1202_v28 = vld [vmem:[%s6194_s23 + $0x10] sm:$0xff]  ;;  %v1201_v32 = vld [vmem:[%s6194_s23 + $0x8] sm:$0xff]  ;;  %s6200_s21 = sld [smem:[#allocation126_spill]] }
 0x2bf   :  { %946 = vmatpush.msra.mxu1 %v899_v4  ;;  %3330 = vmatmul.msk.f32.vlgmr.msra.gmra.mxu3 %vm901_vm0, %v896_v5  ;;  %v1165_v29 = vld [vmem:[%s6195_s4 + $0x18] sm:$0xff]  ;;  %v1164_v58 = vld [vmem:[%s6195_s4 + $0x10] sm:$0xff]  ;;  %v1163_v60 = vld [vmem:[%s6195_s4 + $0x8] sm:$0xff]  ;;  %s6201_s7 = sld [smem:[#allocation132_spill]] }
 0x2c0   :  { %3331 = vmatmul.msk.f32.vlgmr.msra.gmra.mxu1 %vm901_vm0, %v895_v2  ;;  %1009 = vmatpush.msra.mxu2 %v5433_v1  ;;  %v1234_v30 = vld [vmem:[%s6196_s9 + $0x18] sm:$0xff]  ;;  %v1233_v59 = vld [vmem:[%s6196_s9 + $0x10] sm:$0xff]  ;;  %v1232_v61 = vld [vmem:[%s6196_s9 + $0x8] sm:$0xff]  ;;  %s6202_s10 = sld [smem:[#allocation133_spill]] }
 0x2c1   :  { %1031 = vmatpush.msrb.mxu3 %v900_v3  ;;  %3340 = vmatpush.msk.msrb.mxu1 %vm1098_vm1, %v1087_v6  ;;  %v1200_v62 = vld [vmem:[%s6194_s23] sm:$0xff]  ;;  %s6203_s2 = sld [smem:[#allocation137_spill]] }
 0x2c2   :  { %3337 = vmatpush.msk.msrb.mxu0 %vm1098_vm1, %v1090_v7  ;;  %3333 = vmatmul.msk.f32.vlgmr.msra.gmra.mxu2 %vm901_vm0, %v897_v25  ;;  %v1162_v63 = vld [vmem:[%s6195_s4] sm:$0xff]  ;;  %s6204_s14 = sld [smem:[#allocation139_spill]] }
 0x2c3   :  { %1032 = vmatpush.msrb.mxu3 %v899_v4  ;;  %1150 = vmatpush.msrb.mxu1 %v1086_v8  ;;  %v1158_v3 = vld [vmem:[%s6197_s25] sm:$0xff]  ;;  %v1159_v8 = vld [vmem:[%s6197_s25 + $0x8] sm:$0xff]  ;;  %s6205_s12 = sld [smem:[#allocation140_spill]] }
 0x2c4   :  { %1189 = vmatpush.msrb.mxu2 %v1165_v29  ;;  %1251 = vmatpush.msra.mxu0 %v1234_v30  ;;  %s6206_s24 = sld [smem:[#allocation85_spill]] }
 0x2c5   :  { %1220 = vmatpush.msra.mxu3 %v1203_v26  ;;  %s6207_s0 = sld [smem:[#allocation138_spill]] }
 0x2c6   :  { %3338 = vmatmul.msk.f32.vlgmr.msrb.gmra.mxu0 %vm1091_vm2, %v1088_v9  ;;  %1190 = vmatpush.msrb.mxu2 %v1164_v58  ;;  %v5571_v58 = vld [vmem:[#allocation4] sm:$0xff]  ;;  %s6208_s19 = sld [smem:[#allocation98_spill]] }
 0x2c7   :  { %3335 = vmatmul.msk.f32.vlgmr.msrb.gmra.mxu3 %vm901_vm0, %v897_v25  ;;  %1252 = vmatpush.msra.mxu0 %v1233_v59  ;;  %s6209_s27 = sld [smem:[#allocation87_spill]] }
 0x2c8   :  { %3332 = vmatmul.msk.f32.gmra.mxu1 %vm901_vm0, %v896_v5  ;;  %1221 = vmatpush.msra.mxu3 %v1202_v28  ;;  %s6210_s26 = sld [smem:[#allocation117_spill]] }
 0x2c9   :  { %1191 = vmatpush.msrb.mxu2 %v1163_v60  ;;  %1253 = vmatpush.msra.mxu0 %v1232_v61  ;;  %s6211_s11 = sld [smem:[#allocation89_spill]] }
 0x2ca   :  { %1222 = vmatpush.msra.mxu3 %v1201_v32  ;;  %3334 = vmatmul.msk.f32.gmra.mxu2 %vm901_vm0, %v898_v35  ;;  %s6212_s8 = sld [smem:[#allocation147_spill]] }
 0x2cb   :  { %1192 = vmatpush.msrb.mxu2 %v1162_v63  ;;  %v5575_v63 = vld [vmem:[#allocation4 + $0x8] sm:$0xff]  ;;  %s6213_s5 = sld [smem:[#allocation116_spill]] }
 0x2cc   :  { %1223 = vmatpush.msra.mxu3 %v1200_v62  ;;  %s6214_s17 = sld [smem:[#allocation148_spill]] }
 0x2cd   :  { %s6215_s30 = sld [smem:[#allocation114_spill]] }
 0x2ce   :  { %3339 = vmatmul.msk.f32.gmra.mxu0 %vm1091_vm2, %v1089_v18  ;;  %s6216_s15 = sld [smem:[#allocation94_spill]] }
 0x2cf   :  { %3336 = vmatmul.msk.f32.gmra.mxu3 %vm901_vm0, %v898_v35  ;;  %s6217_s18 = sld [smem:[#allocation96_spill]] }
 0x2d0   :  { %s6218_s22 = sld [smem:[#allocation115_spill]] }
 0x2d1   :  { %s6219_s6 = sld [smem:[#allocation105_spill]] }
 0x2d2   :  { %s6220_s20 = sld [smem:[#allocation108_spill]] }
 0x2d3   :  { %s6221_s16 = sld [smem:[#allocation107_spill]] }
 0x2d4   :  { %s6222_s29 = sld [smem:[#allocation109_spill]] }
 0x2d5   :  { %s6223_s23 = sld [smem:[#allocation101_spill]] }
 0x2d6   :  { %s6224_s4 = sld [smem:[#allocation104_spill]] }
 0x2d7   :  { %s6226_s25 = sld [smem:[#allocation106_spill]] }
 0x33b   :  { %v5456_v10 = vpop.f32.mrf.mxu0 }
 0x33c   :  { %v954_v11 = vmul.f32 %v5456_v10, %v5456_v10  ;;  %v1074_v50 = vsub.f32 %v5433_v1, %v5456_v10  ;;  %v1231_v1 = vld [vmem:[%s6196_s9] sm:$0xff]  ;;  %s6225_s9 = sld [smem:[#allocation103_spill]] }
 0x33d   :  { %v948_v12 = vpop.f32.mrf.mxu1  ;;  %1254 = vmatpush.msra.mxu0 %v1231_v1 }
 0x33e   :  { %v956_v13 = vsub.f32 %v948_v12, %v954_v11 }
 0x340   :  { %v958_v14 = vmax.f32 %v956_v13, 0.0 }
 0x342   :  { %v960_v15 = vmul.f32 1.1428572, %v958_v14  ;;  %v928_v16 = vpop.f32.mrf.mxu3  ;;  %v3579_v14 = vld [vmem:[#allocation33] ss:$0 sm:$0xff] }
 0x343   :  { %v955_v17 = vmul.f32 %v928_v16, %v928_v16  ;;  %v1075_v55 = vsub.f32 %v5430_v0, %v928_v16  ;;  %v1119_v0 = vpop.f32.mrf.mxu0 }
 0x344   :  { %3620 = vrsqrt.f32 %v960_v15  ;;  %vm969_vm3 = vcmp.eq.f32.partialorder %v960_v15, inf  ;;  %v972_v40 = vand.u32 2147483648, %v960_v15  ;;  %vm971_vm4 = vcmp.eq.f32.partialorder %v960_v15, 0.0 }
 0x345   :  { %v951_v19 = vpop.f32.mrf.mxu1 }
 0x346   :  { %v957_v20 = vsub.f32 %v951_v19, %v955_v17  ;;  %v5506_v17 = vld [vmem:[%s6198_s28 + $0x38] sm:$0xff] }
 0x348   :  { %v959_v21 = vmax.f32 %v957_v20, 0.0  ;;  %v5509_v20 = vld [vmem:[%s6198_s28 + $0x30] sm:$0xff] }
 0x34a   :  { %v3621_v22 = vpop.eup %3620  ;;  %v961_v23 = vmul.f32 1.1428572, %v959_v21  ;;  %v5501_v11 = vpop.f32.mrf.mxu3 }
 0x34b   :  { %v963_v24 = vmul.f32 %v3621_v22, %v960_v15  ;;  %v1122_v6 = vpop.f32.mrf.mxu0 }
 0x34c   :  { %3622 = vrsqrt.f32 %v961_v23  ;;  %vm981_vm5 = vcmp.eq.f32.partialorder %v961_v23, inf  ;;  %v984_v48 = vand.u32 2147483648, %v961_v23  ;;  %vm983_vm6 = vcmp.eq.f32.partialorder %v961_v23, 0.0 }
 0x34d   :  { %v964_v27 = vmul.f32 %v3621_v22, %v963_v24 }
 0x34f   :  { %v965_v31 = vmul.f32 0.5, %v964_v27  ;;  %v5517_v27 = vld [vmem:[%s6198_s28 + $0x20] sm:$0xff] }
 0x351   :  { %v966_v33 = vsub.f32 1.5, %v965_v31  ;;  %v5522_v31 = vld [vmem:[%s6198_s28 + $0x18] sm:$0xff] }
 0x352   :  { %v3623_v34 = vpop.eup %3622  ;;  %v5503_v12 = vpop.f32.mrf.mxu3 }
 0x353   :  { %v967_v36 = vmul.f32 %v3621_v22, %v966_v33  ;;  %v975_v37 = vmul.f32 %v3623_v34, %v961_v23  ;;  %v3581_v22 = vld [vmem:[#allocation28] ss:$0 sm:$0xff] }
 0x354   :  { %v5527_v33 = vld [vmem:[%s6198_s28 + $0x10] sm:$0xff] }
 0x355   :  { %v968_v38 = vmul.f32 %v967_v36, %v960_v15  ;;  %v976_v39 = vmul.f32 %v3623_v34, %v975_v37  ;;  %v5532_v36 = vld [vmem:[%s6198_s28 + $0x8] sm:$0xff] }
 0x357   :  { %v970_v41 = vsel %vm969_vm3, %v960_v15, %v968_v38  ;;  %v977_v42 = vmul.f32 0.5, %v976_v39  ;;  %v5537_v38 = vld [vmem:[%s6198_s28] sm:$0xff] }
 0x358   :  { %v973_v43 = vsel %vm971_vm4, %v972_v40, %v970_v41  ;;  %v5540_v40 = vpop.f32.mrf.mxu2 }
 0x359   :  { %v986_v44 = vadd.f32 1e-08, %v973_v43  ;;  %v978_v45 = vsub.f32 1.5, %v977_v42 }
 0x35b   :  { %3624 = vrcp.f32 %v986_v44  ;;  %v979_v46 = vmul.f32 %v3623_v34, %v978_v45 }
 0x35d   :  { %v980_v47 = vmul.f32 %v979_v46, %v961_v23 }
 0x35f   :  { %v982_v49 = vsel %vm981_vm5, %v961_v23, %v980_v47  ;;  %v5513_v23 = vld [vmem:[%s6198_s28 + $0x28] sm:$0xff] }
 0x360   :  { %v985_v51 = vsel %vm983_vm6, %v984_v48, %v982_v49  ;;  %v5548_v45 = vpop.f32.mrf.mxu2  ;;  %v3580_v49 = vld [vmem:[#allocation31] ss:$0 sm:$0xff] }
 0x361   :  { %v3625_v52 = vpop.eup %3624  ;;  %v987_v53 = vadd.f32 1e-08, %v985_v51 }
 0x362   :  { %v1078_v54 = vmul.f32 %v3625_v52, %v1074_v50 }
 0x363   :  { %3626 = vrcp.f32 %v987_v53 }
 0x364   :  { %3341 = vmatmul.msk.f32.vlgmr.msrb.gmra.mxu1 %vm1125_vm7, %v1078_v54  ;;  %v5560_v54 = vld [vmem:[%s6199_s1 + $0x38] sm:$0xff] }
 0x365   :  { %1380 = vmatpush.msra.mxu2 %v5560_v54 }
 0x369   :  { %v3627_v56 = vpop.eup %3626 }
 0x36a   :  { %v1079_v57 = vmul.f32 %v3627_v56, %v1075_v55  ;;  %v5563_v55 = vld [vmem:[%s6199_s1 + $0x30] sm:$0xff]  ;;  %v5567_v56 = vld [vmem:[%s6199_s1 + $0x28] sm:$0xff] }
 0x36b   :  { %1381 = vmatpush.msra.mxu2 %v5563_v55 }
 0x36c   :  { %3342 = vmatmul.msk.f32.gmra.mxu1 %vm1125_vm7, %v1079_v57 }
 0x36d   :  { %1382 = vmatpush.msra.mxu2 %v5567_v56 }
 0x3e1   :  { %v1152_v2 = vpop.f32.mrf.mxu1 }
 0x3e2   :  { %v1153_v4 = vadd.f32 %v1152_v2, %v1119_v0 }
 0x3e4   :  { %v5484_v5 = vadd.f32 %v1158_v3, %v1153_v4  ;;  %v5580_v3 = vld [vmem:[%s6199_s1 + $0x20] sm:$0xff]  ;;  %v5584_v4 = vld [vmem:[%s6199_s1 + $0x18] sm:$0xff] }
 0x3e5   :  { %1383 = vmatpush.msra.mxu2 %v5580_v3 }
 0x3e6   :  { %3343 = vmatmul.msk.f32.vlgmr.msrb.gmra.mxu2 %vm1170_vm8, %v5484_v5  ;;  %3345 = vmatmul.msk.f32.vlgmr.msra.gmra.mxu3 %vm1170_vm8, %v5484_v5 }
 0x3e7   :  { %3347 = vmatmul.msk.f32.vlgmr.msra.gmra.mxu0 %vm1170_vm8, %v5484_v5  ;;  %1384 = vmatpush.msra.mxu2 %v5584_v4 }
 0x3e9   :  { %v1155_v7 = vpop.f32.mrf.mxu1 }
 0x3ea   :  { %v1156_v9 = vadd.f32 %v1155_v7, %v1122_v6  ;;  %v5587_v6 = vld [vmem:[%s6199_s1 + $0x10] sm:$0xff]  ;;  %v5591_v7 = vld [vmem:[%s6199_s1 + $0x8] sm:$0xff] }
 0x3eb   :  { %1385 = vmatpush.msra.mxu2 %v5587_v6 }
 0x3ec   :  { %v5493_v10 = vadd.f32 %v1159_v8, %v1156_v9  ;;  %v5596_v8 = vld [vmem:[%s6199_s1] sm:$0xff] }
 0x3ed   :  { %1386 = vmatpush.msra.mxu2 %v5591_v7 }
 0x3ee   :  { %3344 = vmatmul.msk.f32.gmra.mxu2 %vm1170_vm8, %v5493_v10  ;;  %3346 = vmatmul.msk.f32.gmra.mxu3 %vm1170_vm8, %v5493_v10 }
 0x3ef   :  { %3348 = vmatmul.msk.f32.gmra.mxu0 %vm1170_vm8, %v5493_v10  ;;  %1387 = vmatpush.msra.mxu2 %v5596_v8 }
 0x464   :  { %v1256_v13 = vpop.f32.mrf.mxu0 }
 0x465   :  { %v1257_v18 = vadd.f32 %v3579_v14, %v1256_v13 }
 0x467   :  { %v1284_v25 = vmul.f32 %v5509_v20, %v1257_v18  ;;  %v1282_v32 = vmul.f32 %v5517_v27, %v1257_v18  ;;  %v1280_v37 = vmul.f32 %v5527_v33, %v1257_v18  ;;  %v1278_v42 = vmul.f32 %v5537_v38, %v1257_v18 }
 0x469   :  { %v1225_v15 = vpop.f32.mrf.mxu3  ;;  %v1194_v48 = vpop.f32.mrf.mxu2 }
 0x46a   :  { %v1226_v29 = vadd.f32 %v3581_v22, %v1225_v15  ;;  %v1195_v51 = vadd.f32 %v3580_v49, %v1194_v48 }
 0x46c   :  { %v1259_v16 = vpop.f32.mrf.mxu0  ;;  %v1276_v35 = vmul.f32 %v5509_v20, %v1226_v29  ;;  %v1274_v43 = vmul.f32 %v5517_v27, %v1226_v29  ;;  %v1272_v46 = vmul.f32 %v5527_v33, %v1226_v29  ;;  %v1270_v50 = vmul.f32 %v5537_v38, %v1226_v29 }
 0x46d   :  { %v1260_v19 = vadd.f32 %v3579_v14, %v1259_v16 }
 0x46f   :  { %v1285_v21 = vmul.f32 %v5506_v17, %v1260_v19  ;;  %v1283_v28 = vmul.f32 %v5513_v23, %v1260_v19  ;;  %v1281_v34 = vmul.f32 %v5522_v31, %v1260_v19  ;;  %v1279_v39 = vmul.f32 %v5532_v36, %v1260_v19 }
 0x471   :  { %1413 = vmatpush.msrb.mxu3 %v1285_v21  ;;  %v1228_v24 = vpop.f32.mrf.mxu3  ;;  %v1197_v52 = vpop.f32.mrf.mxu2 }
 0x472   :  { %v1229_v26 = vadd.f32 %v3581_v22, %v1228_v24  ;;  %v1198_v53 = vadd.f32 %v3580_v49, %v1197_v52  ;;  %v1431_v22 = vld [vmem:[%s6200_s21 + $0x18] sm:$0xff]  ;;  %v1430_v24 = vld [vmem:[%s6200_s21 + $0x10] sm:$0xff] }
 0x473   :  { %1414 = vmatpush.msrb.mxu3 %v1284_v25  ;;  %1454 = vmatpush.msrb.mxu0 %v1431_v22  ;;  %v1429_v25 = vld [vmem:[%s6200_s21 + $0x8] sm:$0xff] }
 0x474   :  { %v1277_v30 = vmul.f32 %v5506_v17, %v1229_v26  ;;  %v1275_v41 = vmul.f32 %v5513_v23, %v1229_v26  ;;  %v1273_v44 = vmul.f32 %v5522_v31, %v1229_v26  ;;  %v1271_v47 = vmul.f32 %v5532_v36, %v1229_v26  ;;  %v1428_v26 = vld [vmem:[%s6200_s21] sm:$0xff]  ;;  %s6229_s21 = sld [smem:[#allocation119_spill]] }
 0x475   :  { %1415 = vmatpush.msrb.mxu3 %v1283_v28  ;;  %1455 = vmatpush.msrb.mxu0 %v1430_v24 }
 0x476   :  { %3349 = vmatpush.xpose.msk.msra.mxu1 %vm1170_vm8, %v1277_v30 }
 0x477   :  { %1416 = vmatpush.msrb.mxu3 %v1282_v32  ;;  %1456 = vmatpush.msrb.mxu0 %v1429_v25 }
 0x479   :  { %1417 = vmatpush.msrb.mxu3 %v1281_v34  ;;  %1457 = vmatpush.msrb.mxu0 %v1428_v26  ;;  %v1576_v26 = vld [vmem:[%s6202_s10 + $0x38] sm:$0xff] }
 0x47a   :  { %3350 = vmatpush.xpose.msk.msra.mxu1 %vm1170_vm8, %v1276_v35 }
 0x47b   :  { %1418 = vmatpush.msrb.mxu3 %v1280_v37 }
 0x47d   :  { %1419 = vmatpush.msrb.mxu3 %v1279_v39 }
 0x47e   :  { %3351 = vmatpush.xpose.msk.msra.mxu1 %vm1170_vm8, %v1275_v41  ;;  %v3582_v41 = vld [vmem:[#allocation30] ss:$0 sm:$0xff] }
 0x47f   :  { %1420 = vmatpush.msrb.mxu3 %v1278_v42 }
 0x481   :  { %1595 = vmatpush.msra.mxu3 %v1576_v26 }
 0x482   :  { %3352 = vmatpush.xpose.msk.msra.mxu1 %vm1170_vm8, %v1274_v43 }
 0x486   :  { %3353 = vmatpush.xpose.msk.msra.mxu1 %vm1170_vm8, %v1273_v44 }
 0x48a   :  { %3354 = vmatpush.xpose.msk.msra.mxu1 %vm1170_vm8, %v1272_v46 }
 0x48e   :  { %3355 = vmatpush.xpose.msk.msra.mxu1 %vm1170_vm8, %v1271_v47 }
 0x492   :  { %3356 = vmatpush.xpose.msk.msra.mxu1 %vm1170_vm8, %v1270_v50 }
 0x495   :  { %3357 = vmatmul.msk.f32.vlgmr.msra.gmra.mxu1 %vm1170_vm8, %v1195_v51  ;;  %v4849_v51 = vmov 32.0  }
 0x49d   :  { %3358 = vmatmul.msk.f32.gmra.mxu1 %vm1170_vm8, %v1198_v53 }
 0x512   :  { %v1333_v57 = vpop.f32.mrf.mxu1 }
 0x513   :  { %v1339_v59 = vmul.f32 0.35355338, %v1333_v57 }
 0x515   :  { %v1343_v60 = vadd.f32 %v5571_v58, %v1339_v59 }
 0x517   :  { %v1346_v61 = vsel %vm1345_vm9, %v1343_v60, -inf }
 0x518   :  { %1347 = vmax.xlane.f32.xlu0 %v1346_v61 }
 0x51a   :  { %v1336_v62 = vpop.f32.mrf.mxu1 }
 0x51b   :  { %v1340_v1 = vmul.f32 0.35355338, %v1336_v62 }
 0x51d   :  { %v1344_v0 = vadd.f32 %v5575_v63, %v1340_v1 }
 0x51f   :  { %v1349_v2 = vsel %vm1345_vm9, %v1344_v0, -inf }
 0x520   :  { %1350 = vmax.xlane.f32.xlu0 %v1349_v2 }
 0x58b   :  { %v1348_v9 = vpop.xlane.xlu0 %1347 }
 0x58c   :  { %v1352_v13 = vsub.f32 %v1343_v60, %v1348_v9 }
 0x58e   :  { %v1354_v14 = vmul.f32 1.442695, %v1352_v13 }
 0x590   :  { %3628 = vpow2.f32 %v1354_v14 }
 0x593   :  { %v1351_v15 = vpop.xlane.xlu0 %1350 }
 0x594   :  { %v1353_v16 = vsub.f32 %v1344_v0, %v1351_v15 }
 0x596   :  { %v3629_v18 = vpop.eup %3628  ;;  %v1356_v19 = vmul.f32 1.442695, %v1353_v16  ;;  %v1533_v16 = vld [vmem:[%s6201_s7 + $0x18] sm:$0xff] }
 0x597   :  { %3359 = vmatmul.msk.f32.vlgmr.msra.gmra.mxu2 %vm1345_vm9, %v3629_v18 }
 0x598   :  { %3630 = vpow2.f32 %v1356_v19  ;;  %1556 = vmatpush.msrb.mxu2 %v1533_v16  ;;  %v1531_v19 = vld [vmem:[%s6201_s7 + $0x8] sm:$0xff]  ;;  %v3585_v16 = vld [vmem:[#allocation34] ss:$0 sm:$0xff] }
 0x59e   :  { %v3631_v21 = vpop.eup %3630 }
 0x59f   :  { %3360 = vmatmul.msk.f32.gmra.mxu2 %vm1345_vm9, %v3631_v21 }
 0x61a   :  { %v1389_v28 = vpop.f32.mrf.mxu2 }
 0x61b   :  { %3632 = vrcp.f32 %v1389_v28  ;;  %v1575_v28 = vld [vmem:[%s6202_s10 + $0x30] sm:$0xff] }
 0x61c   :  { %1596 = vmatpush.msra.mxu3 %v1575_v28 }
 0x621   :  { %v3633_v29 = vpop.eup %3632 }
 0x622   :  { %v1397_v30 = vmul.f32 %v3633_v29, %v3629_v18  ;;  %v1392_v32 = vpop.f32.mrf.mxu2  ;;  %v1532_v18 = vld [vmem:[%s6201_s7 + $0x10] sm:$0xff]  ;;  %v1574_v29 = vld [vmem:[%s6202_s10 + $0x28] sm:$0xff] }
 0x623   :  { %3634 = vrcp.f32 %v1392_v32  ;;  %1557 = vmatpush.msrb.mxu2 %v1532_v18  ;;  %1597 = vmatpush.msra.mxu3 %v1574_v29 }
 0x624   :  { %3361 = vmatmul.msk.f32.vlgmr.msrb.gmra.mxu3 %vm1345_vm9, %v1397_v30  ;;  %3636 = vrcp.f32 %v4849_v51 }
 0x625   :  { %1558 = vmatpush.msrb.mxu2 %v1531_v19 }
 0x629   :  { %v3635_v34 = vpop.eup %3634 }
 0x62a   :  { %v1398_v35 = vmul.f32 %v3635_v34, %v3631_v21  ;;  %v3637_v52 = vpop.eup %3636  ;;  %v1530_v21 = vld [vmem:[%s6201_s7] sm:$0xff]  ;;  %s6230_s7 = sld [smem:[#allocation99_spill]] }
 0x62b   :  { %v1476_v53 = vmul.f32 32.0, %v3637_v52  ;;  %vm1480_vm10 = vweird.f32 %v3637_v52  ;;  %1559 = vmatpush.msrb.mxu2 %v1530_v21  ;;  %v1573_v34 = vld [vmem:[%s6202_s10 + $0x20] sm:$0xff] }
 0x62c   :  { %3362 = vmatmul.msk.f32.gmra.mxu3 %vm1345_vm9, %v1398_v35 }
 0x62d   :  { %v1477_v57 = vsub.f32 1.0, %v1476_v53  ;;  %1598 = vmatpush.msra.mxu3 %v1573_v34 }
 0x62f   :  { %v1478_v59 = vmul.f32 %v3637_v52, %v1477_v57  ;;  %v3584_v57 = vld [vmem:[#allocation37] ss:$0 sm:$0xff] }
 0x631   :  { %v1479_v60 = vadd.f32 %v3637_v52, %v1478_v59 }
 0x6a7   :  { %v1422_v37 = vpop.f32.mrf.mxu3 }
 0x6a8   :  { %3363 = vmatmul.msk.f32.vlgmr.msrb.gmra.mxu0 %vm1170_vm8, %v1422_v37 }
 0x6af   :  { %v1425_v39 = vpop.f32.mrf.mxu3 }
 0x6b0   :  { %3364 = vmatmul.msk.f32.gmra.mxu0 %vm1170_vm8, %v1425_v39  ;;  %v1572_v39 = vld [vmem:[%s6202_s10 + $0x18] sm:$0xff] }
 0x6b1   :  { %1599 = vmatpush.msra.mxu3 %v1572_v39 }
 0x725   :  { %v1459_v42 = vpop.f32.mrf.mxu0 }
 0x726   :  { %v1460_v43 = vadd.f32 %v3582_v41, %v1459_v42  ;;  %v1571_v42 = vld [vmem:[%s6202_s10 + $0x10] sm:$0xff] }
 0x727   :  { %1600 = vmatpush.msra.mxu3 %v1571_v42 }
 0x728   :  { %v1465_v44 = vadd.f32 %v1460_v43, %v5484_v5  ;;  %v5613_v5 = vsel %vm1480_vm10, %v3637_v52, %v1479_v60 }
 0x72a   :  { %v1469_v46 = vsel %vm1170_vm8, %v1465_v44, 0.0 }
 0x72b   :  { %1470 = vadd.xlane.f32.xlu1 %v1469_v46 }
 0x72d   :  { %v1462_v47 = vpop.f32.mrf.mxu0 }
 0x72e   :  { %v1463_v48 = vadd.f32 %v3582_v41, %v1462_v47 }
 0x730   :  { %v1466_v49 = vadd.f32 %v1463_v48, %v5493_v10 }
 0x732   :  { %v1472_v50 = vsel %vm1170_vm8, %v1466_v49, 0.0 }
 0x733   :  { %1473 = vadd.xlane.f32.xlu1 %v1472_v50  ;;  %v3583_v50 = vld [vmem:[#allocation39] ss:$0 sm:$0xff] }
 0x79e   :  { %v1471_v61 = vpop.xlane.xlu1 %1470 }
 0x79f   :  { %v1482_v62 = vmul.f32 %v5613_v5, %v1471_v61 }
 0x7a1   :  { %v1484_v10 = vsub.f32 %v1465_v44, %v1482_v62 }
 0x7a3   :  { %v1486_v1 = vmul.f32 %v1484_v10, %v1484_v10 }
 0x7a5   :  { %v1488_v0 = vsel %vm1170_vm8, %v1486_v1, 0.0 }
 0x7a6   :  { %1489 = vadd.xlane.f32.xlu2 %v1488_v0  ;;  %v1474_v2 = vpop.xlane.xlu1 %1473 }
 0x7a7   :  { %v1483_v9 = vmul.f32 %v5613_v5, %v1474_v2 }
 0x7a9   :  { %v1485_v13 = vsub.f32 %v1466_v49, %v1483_v9 }
 0x7ab   :  { %v1487_v14 = vmul.f32 %v1485_v13, %v1485_v13 }
 0x7ad   :  { %v1491_v15 = vsel %vm1170_vm8, %v1487_v14, 0.0 }
 0x7ae   :  { %1492 = vadd.xlane.f32.xlu2 %v1491_v15  ;;  %v1569_v15 = vld [vmem:[%s6202_s10] sm:$0xff] }
 0x819   :  { %v1490_v22 = vpop.xlane.xlu2 %1489 }
 0x81a   :  { %v1494_v24 = vmul.f32 %v1490_v22, %v5613_v5 }
 0x81c   :  { %v1496_v25 = vadd.f32 1e-05, %v1494_v24 }
 0x81e   :  { %3638 = vrsqrt.f32 %v1496_v25  ;;  %vm1504_vm12 = vweird.f32 %v1496_v25 }
 0x821   :  { %v1493_v30 = vpop.xlane.xlu2 %1492 }
 0x822   :  { %v1495_v32 = vmul.f32 %v1493_v30, %v5613_v5 }
 0x824   :  { %v3639_v35 = vpop.eup %3638  ;;  %v1497_v37 = vadd.f32 1e-05, %v1495_v32 }
 0x825   :  { %v1499_v41 = vmul.f32 %v3639_v35, %v1496_v25  ;;  %vm1505_vm11 = vweird.f32 %v3639_v35 }
 0x826   :  { %3640 = vrsqrt.f32 %v1497_v37  ;;  %vm1506_vm13 = vmor %vm1504_vm12, %vm1505_vm11  ;;  %vm1514_vm15 = vweird.f32 %v1497_v37 }
 0x827   :  { %v1500_v43 = vmul.f32 %v3639_v35, %v1499_v41 }
 0x829   :  { %v1501_v44 = vmul.f32 0.5, %v1500_v43 }
 0x82b   :  { %v1502_v46 = vsub.f32 1.5, %v1501_v44 }
 0x82c   :  { %v3641_v47 = vpop.eup %3640 }
 0x82d   :  { %v1503_v48 = vmul.f32 %v3639_v35, %v1502_v46  ;;  %v1509_v49 = vmul.f32 %v3641_v47, %v1497_v37  ;;  %vm1515_vm14 = vweird.f32 %v3641_v47 }
 0x82e   :  { %vm1516_vm0 = vmor %vm1514_vm15, %vm1515_vm14 }
 0x82f   :  { %v1507_v51 = vsel %vm1506_vm13, %v3639_v35, %v1503_v48  ;;  %v1510_v52 = vmul.f32 %v3641_v47, %v1509_v49 }
 0x830   :  { %v1518_v53 = vmul.f32 %v1507_v51, %v1484_v10  ;;  %v1570_v10 = vld [vmem:[%s6202_s10 + $0x8] sm:$0xff]  ;;  %v1708_v51 = vld [vmem:[%s6203_s2 + $0x18] sm:$0xff]  ;;  %s6231_s10 = sld [smem:[#allocation100_spill]] }
 0x831   :  { %v1511_v59 = vmul.f32 0.5, %v1510_v52  ;;  %1601 = vmatpush.msra.mxu3 %v1570_v10  ;;  %v1671_v52 = vld [vmem:[%s6204_s14 + $0x18] sm:$0xff]  ;;  %1725 = vmatpush.msrb.mxu1 %v1708_v51 }
 0x832   :  { %v1523_v60 = vmul.f32 %v3583_v50, %v1518_v53  ;;  %v1739_v53 = vld [vmem:[%s6205_s12 + $0x18] sm:$0xff]  ;;  %1694 = vmatpush.msra.mxu0 %v1671_v52 }
 0x833   :  { %v1512_v61 = vsub.f32 1.5, %v1511_v59  ;;  %1602 = vmatpush.msra.mxu3 %v1569_v15  ;;  %1756 = vmatpush.msra.mxu2 %v1739_v53  ;;  %v1670_v59 = vld [vmem:[%s6204_s14 + $0x10] sm:$0xff] }
 0x834   :  { %v1528_v62 = vadd.f32 %v3584_v57, %v1523_v60  ;;  %v1738_v60 = vld [vmem:[%s6205_s12 + $0x10] sm:$0xff]  ;;  %1695 = vmatpush.msra.mxu0 %v1670_v59 }
 0x835   :  { %v1513_v1 = vmul.f32 %v3641_v47, %v1512_v61  ;;  %v1706_v61 = vld [vmem:[%s6203_s2 + $0x8] sm:$0xff]  ;;  %1757 = vmatpush.msra.mxu2 %v1738_v60 }
 0x836   :  { %3365 = vmatmul.msk.f32.vlgmr.msrb.gmra.mxu2 %vm1170_vm8, %v1528_v62 }
 0x837   :  { %v1517_v0 = vsel %vm1516_vm0, %v3641_v47, %v1513_v1  ;;  %v1737_v1 = vld [vmem:[%s6205_s12 + $0x8] sm:$0xff] }
 0x838   :  { %v1519_v2 = vmul.f32 %v1517_v0, %v1485_v13  ;;  %v3586_v13 = vld [vmem:[#allocation36] ss:$0 sm:$0xff]  ;;  %1758 = vmatpush.msra.mxu2 %v1737_v1 }
 0x839   :  { %v1705_v0 = vld [vmem:[%s6203_s2] sm:$0xff] }
 0x83a   :  { %v1524_v9 = vmul.f32 %v3583_v50, %v1519_v2  ;;  %v1668_v2 = vld [vmem:[%s6204_s14] sm:$0xff] }
 0x83c   :  { %v1529_v14 = vadd.f32 %v3584_v57, %v1524_v9  ;;  %v1707_v57 = vld [vmem:[%s6203_s2 + $0x10] sm:$0xff]  ;;  %v1736_v9 = vld [vmem:[%s6205_s12] sm:$0xff] }
 0x83d   :  { %1726 = vmatpush.msrb.mxu1 %v1707_v57  ;;  %1759 = vmatpush.msra.mxu2 %v1736_v9 }
 0x83e   :  { %3366 = vmatmul.msk.f32.gmra.mxu2 %vm1170_vm8, %v1529_v14 }
 0x83f   :  { %1727 = vmatpush.msrb.mxu1 %v1706_v61  ;;  %v3591_v61 = vld [vmem:[#allocation48] ss:$0 sm:$0xff] }
 0x841   :  { %1728 = vmatpush.msrb.mxu1 %v1705_v0 }
 0x8b9   :  { %v1561_v18 = vpop.f32.mrf.mxu2 }
 0x8ba   :  { %v1562_v19 = vadd.f32 %v3585_v16, %v1561_v18 }
 0x8bc   :  { %v1567_v21 = vmax.f32 %v1562_v19, 0.0 }
 0x8be   :  { %3367 = vmatmul.msk.f32.vlgmr.msra.gmra.mxu3 %vm1345_vm9, %v1567_v21 }
 0x8c1   :  { %v1564_v22 = vpop.f32.mrf.mxu2 }
 0x8c2   :  { %v1565_v24 = vadd.f32 %v3585_v16, %v1564_v22 }
 0x8c4   :  { %v1568_v25 = vmax.f32 %v1565_v24, 0.0 }
 0x8c6   :  { %3368 = vmatmul.msk.f32.gmra.mxu3 %vm1345_vm9, %v1568_v25  ;;  %v3587_v25 = vld [vmem:[#allocation42] ss:$0 sm:$0xff] }
 0x941   :  { %v1604_v26 = vpop.f32.mrf.mxu3 }
 0x942   :  { %v1605_v28 = vadd.f32 %v3586_v13, %v1604_v26  ;;  %v3588_v26 = vld [vmem:[#allocation40] ss:$0 sm:$0xff] }
 0x944   :  { %v1610_v29 = vadd.f32 %v1605_v28, %v1528_v62  ;;  %v1669_v62 = vld [vmem:[%s6204_s14 + $0x8] sm:$0xff] }
 0x945   :  { %1696 = vmatpush.msra.mxu0 %v1669_v62 }
 0x946   :  { %v1614_v30 = vsel %vm1170_vm8, %v1610_v29, 0.0 }
 0x947   :  { %1615 = vadd.xlane.f32.xlu0 %v1614_v30  ;;  %1697 = vmatpush.msra.mxu0 %v1668_v2 }
 0x949   :  { %v1607_v32 = vpop.f32.mrf.mxu3  ;;  %1866 = vmatpush.msrb.mxu0 %v5560_v54 }
 0x94a   :  { %v1608_v34 = vadd.f32 %v3586_v13, %v1607_v32 }
 0x94b   :  { %1867 = vmatpush.msrb.mxu0 %v5563_v55 }
 0x94c   :  { %v1611_v35 = vadd.f32 %v1608_v34, %v1529_v14 }
 0x94d   :  { %1868 = vmatpush.msrb.mxu0 %v5567_v56 }
 0x94e   :  { %v1617_v37 = vsel %vm1170_vm8, %v1611_v35, 0.0 }
 0x94f   :  { %1618 = vadd.xlane.f32.xlu1 %v1617_v37  ;;  %1869 = vmatpush.msrb.mxu0 %v5580_v3 }
 0x951   :  { %1870 = vmatpush.msrb.mxu0 %v5584_v4 }
 0x953   :  { %1871 = vmatpush.msrb.mxu0 %v5587_v6 }
 0x955   :  { %1872 = vmatpush.msrb.mxu0 %v5591_v7 }
 0x957   :  { %1873 = vmatpush.msrb.mxu0 %v5596_v8 }
 0x9ba   :  { %v1616_v39 = vpop.xlane.xlu0 %1615 }
 0x9bb   :  { %v1620_v41 = vmul.f32 %v1616_v39, %v5613_v5 }
 0x9bd   :  { %v5640_v42 = vsub.f32 %v1610_v29, %v1620_v41  ;;  %v1040_v41 = vmul.f32 %v5540_v40, %v5540_v40 }
 0x9bf   :  { %v1624_v43 = vmul.f32 %v5640_v42, %v5640_v42 }
 0x9c1   :  { %v1626_v44 = vsel %vm1170_vm8, %v1624_v43, 0.0 }
 0x9c2   :  { %1627 = vadd.xlane.f32.xlu2 %v1626_v44  ;;  %v1619_v46 = vpop.xlane.xlu1 %1618  ;;  %v1041_v44 = vmul.f32 %v5548_v45, %v5548_v45 }
 0x9c3   :  { %v1621_v47 = vmul.f32 %v1619_v46, %v5613_v5 }
 0x9c5   :  { %v5646_v48 = vsub.f32 %v1611_v35, %v1621_v47 }
 0x9c7   :  { %v1625_v49 = vmul.f32 %v5646_v48, %v5646_v48 }
 0x9c9   :  { %v1629_v50 = vsel %vm1170_vm8, %v1625_v49, 0.0 }
 0x9ca   :  { %1630 = vadd.xlane.f32.xlu0 %v1629_v50  ;;  %v3590_v50 = vld [vmem:[#allocation43] ss:$0 sm:$0xff] }
 0xa35   :  { %v1628_v14 = vpop.xlane.xlu2 %1627 }
 0xa36   :  { %v1632_v10 = vmul.f32 %v1628_v14, %v5613_v5 }
 0xa38   :  { %v1634_v15 = vadd.f32 1e-05, %v1632_v10 }
 0xa3a   :  { %3642 = vrsqrt.f32 %v1634_v15  ;;  %vm1642_vm4 = vweird.f32 %v1634_v15 }
 0xa3d   :  { %v1631_v16 = vpop.xlane.xlu0 %1630 }
 0xa3e   :  { %v1633_v18 = vmul.f32 %v1631_v16, %v5613_v5 }
 0xa40   :  { %v3643_v54 = vpop.eup %3642  ;;  %v1635_v19 = vadd.f32 1e-05, %v1633_v18 }
 0xa41   :  { %v1637_v55 = vmul.f32 %v3643_v54, %v1634_v15  ;;  %vm1643_vm3 = vweird.f32 %v3643_v54 }
 0xa42   :  { %3644 = vrsqrt.f32 %v1635_v19  ;;  %vm1644_vm5 = vmor %vm1642_vm4, %vm1643_vm3  ;;  %vm1652_vm10 = vweird.f32 %v1635_v19 }
 0xa43   :  { %v1638_v56 = vmul.f32 %v3643_v54, %v1637_v55 }
 0xa45   :  { %v1639_v21 = vmul.f32 0.5, %v1638_v56 }
 0xa47   :  { %v1640_v22 = vsub.f32 1.5, %v1639_v21 }
 0xa48   :  { %v3645_v3 = vpop.eup %3644 }
 0xa49   :  { %v1641_v24 = vmul.f32 %v3643_v54, %v1640_v22  ;;  %v1647_v4 = vmul.f32 %v3645_v3, %v1635_v19  ;;  %vm1653_vm6 = vweird.f32 %v3645_v3 }
 0xa4a   :  { %vm1654_vm11 = vmor %vm1652_vm10, %vm1653_vm6 }
 0xa4b   :  { %v1645_v6 = vsel %vm1644_vm5, %v3643_v54, %v1641_v24  ;;  %v1648_v13 = vmul.f32 %v3645_v3, %v1647_v4 }
 0xa4c   :  { %v1656_v7 = vmul.f32 %v1645_v6, %v5640_v42  ;;  %v1042_v42 = vsub.f32 %v5501_v11, %v1040_v41 }
 0xa4d   :  { %v1649_v28 = vmul.f32 0.5, %v1648_v13 }
 0xa4e   :  { %v1661_v29 = vmul.f32 %v3587_v25, %v1656_v7  ;;  %v1044_v43 = vmax.f32 %v1042_v42, 0.0 }
 0xa4f   :  { %v1650_v30 = vsub.f32 1.5, %v1649_v28 }
 0xa50   :  { %v5674_v8 = vadd.f32 %v3588_v26, %v1661_v29  ;;  %v5696_v47 = vmul.f32 1.1428572, %v1044_v43  ;;  %v2204_v29 = vld [vmem:[#allocation9 + $0x8] sm:$0xf] }
 0xa51   :  { %v1651_v32 = vmul.f32 %v3645_v3, %v1650_v30 }
 0xa52   :  { %3369 = vmatmul.msk.f32.vlgmr.msra.gmra.mxu0 %vm1170_vm8, %v5674_v8  ;;  %3371 = vmatmul.msk.f32.vlgmr.msrb.gmra.mxu1 %vm1170_vm8, %v5674_v8  ;;  %3646 = vrsqrt.f32 %v5696_v47  ;;  %vm1055_vm12 = vcmp.eq.f32.partialorder %v5696_v47, inf  ;;  %vm1057_vm13 = vcmp.eq.f32.partialorder %v5696_v47, 0.0 }
 0xa53   :  { %v1655_v34 = vsel %vm1654_vm11, %v3645_v3, %v1651_v32  ;;  %3373 = vmatmul.msk.f32.vlgmr.msra.gmra.mxu2 %vm1170_vm8, %v5674_v8 }
 0xa54   :  { %v1657_v35 = vmul.f32 %v1655_v34, %v5646_v48  ;;  %v1043_v48 = vsub.f32 %v5503_v12, %v1041_v44  ;;  %v2203_v34 = vld [vmem:[#allocation9] sm:$0xff] }
 0xa56   :  { %v1662_v37 = vmul.f32 %v3587_v25, %v1657_v35  ;;  %v1045_v49 = vmax.f32 %v1043_v48, 0.0 }
 0xa58   :  { %v5683_v39 = vadd.f32 %v3588_v26, %v1662_v37  ;;  %v5700_v57 = vmul.f32 1.1428572, %v1045_v49  ;;  %v3647_v60 = vpop.eup %3646  ;;  %v3589_v26 = vld [vmem:[#allocation46] ss:$0 sm:$0xff] }
 0xa59   :  { %v1049_v12 = vmul.f32 %v3647_v60, %v5696_v47 }
 0xa5a   :  { %3370 = vmatmul.msk.f32.gmra.mxu0 %vm1170_vm8, %v5683_v39  ;;  %3372 = vmatmul.msk.f32.gmra.mxu1 %vm1170_vm8, %v5683_v39  ;;  %3648 = vrsqrt.f32 %v5700_v57  ;;  %vm1067_vm14 = vcmp.eq.f32.partialorder %v5700_v57, inf  ;;  %v1070_v41 = vand.u32 2147483648, %v5700_v57  ;;  %vm1069_vm15 = vcmp.eq.f32.partialorder %v5700_v57, 0.0 }
 0xa5b   :  { %3374 = vmatmul.msk.f32.gmra.mxu2 %vm1170_vm8, %v5683_v39  ;;  %v1050_v14 = vmul.f32 %v3647_v60, %v1049_v12 }
 0xa5d   :  { %v1051_v54 = vmul.f32 0.5, %v1050_v14 }
 0xa5f   :  { %v1052_v21 = vsub.f32 1.5, %v1051_v54 }
 0xa60   :  { %v3649_v15 = vpop.eup %3648 }
 0xa61   :  { %v1061_v19 = vmul.f32 %v3649_v15, %v5700_v57  ;;  %v1053_v24 = vmul.f32 %v3647_v60, %v1052_v21 }
 0xa63   :  { %v1062_v22 = vmul.f32 %v3649_v15, %v1061_v19  ;;  %v1916_v19 = vld [vmem:[%s6207_s0 + $0x10] sm:$0xff] }
 0xa65   :  { %v1063_v4 = vmul.f32 0.5, %v1062_v22 }
 0xa67   :  { %v1064_v13 = vsub.f32 1.5, %v1063_v4 }
 0xa69   :  { %v1065_v32 = vmul.f32 %v3649_v15, %v1064_v13  ;;  %v2346_v13 = vld [vmem:[%s6210_s26 + $0x10] sm:$0xff] }
 0xa6b   :  { %v1066_v37 = vmul.f32 %v1065_v32, %v5700_v57 }
 0xa6d   :  { %v1068_v43 = vsel %vm1067_vm14, %v5700_v57, %v1066_v37 }
 0xacf   :  { %v1730_v46 = vpop.f32.mrf.mxu1  ;;  %v1699_v7 = vpop.f32.mrf.mxu0 }
 0xad0   :  { %v1731_v59 = vadd.f32 %v3590_v50, %v1730_v46  ;;  %v1071_v46 = vsel %vm1069_vm15, %v1070_v41, %v1068_v43  ;;  %v2272_v43 = vld [vmem:[%s6211_s11] sm:$0xff] }
 0xad1   :  { %v5746_v48 = vadd.f32 1e-08, %v1071_v46 }
 0xad2   :  { %v1773_v1 = vmul.f32 %v1731_v59, %v5509_v20  ;;  %v1771_v55 = vmul.f32 %v1731_v59, %v5517_v27  ;;  %v1767_v28 = vmul.f32 %v1731_v59, %v5537_v38 }
 0xad6   :  { %v1761_v51 = vpop.f32.mrf.mxu2 }
 0xad7   :  { %v1733_v52 = vpop.f32.mrf.mxu1  ;;  %v1762_v0 = vadd.f32 %v3591_v61, %v1761_v51  ;;  %v1702_v42 = vpop.f32.mrf.mxu0 }
 0xad8   :  { %v1734_v53 = vadd.f32 %v3590_v50, %v1733_v52  ;;  %v1703_v44 = vadd.f32 %v3589_v26, %v1702_v42  ;;  %v894_v52 = vld [vmem:[%s6206_s24 + $0x8] sm:$0xff] }
 0xad9   :  { %v1781_v16 = vmul.f32 %v1762_v0, %v5509_v20  ;;  %v1775_v25 = vmul.f32 %v1762_v0, %v5537_v38 }
 0xada   :  { %v1774_v11 = vmul.f32 %v1734_v53, %v5506_v17  ;;  %v1772_v10 = vmul.f32 %v1734_v53, %v5513_v23  ;;  %v1770_v20 = vmul.f32 %v1734_v53, %v5522_v31  ;;  %v1768_v6 = vmul.f32 %v1734_v53, %v5532_v36 }
 0xadb   :  { %v1081_v53 = vsub.f32 %v894_v52, %v5548_v45 }
 0xadc   :  { %3375 = vmatpush.xpose.msk.msrb.mxu3 %vm1170_vm8, %v1774_v11 }
 0xade   :  { %v1764_v62 = vpop.f32.mrf.mxu2 }
 0xadf   :  { %v1765_v2 = vadd.f32 %v3591_v61, %v1764_v62 }
 0xae0   :  { %3376 = vmatpush.xpose.msk.msrb.mxu3 %vm1170_vm8, %v1773_v1 }
 0xae1   :  { %v1782_v9 = vmul.f32 %v1765_v2, %v5506_v17  ;;  %v1780_v18 = vmul.f32 %v1765_v2, %v5513_v23  ;;  %v1779_v17 = vmul.f32 %v1762_v0, %v5517_v27  ;;  %v1778_v56 = vmul.f32 %v1765_v2, %v5522_v31 }
 0xae2   :  { %v1777_v23 = vmul.f32 %v1762_v0, %v5527_v33  ;;  %v1776_v3 = vmul.f32 %v1765_v2, %v5532_v36  ;;  %v1769_v27 = vmul.f32 %v1731_v59, %v5527_v33  ;;  %v1054_v31 = vmul.f32 %v1053_v24, %v5696_v47  ;;  %v2207_v24 = vld [vmem:[%s6208_s19] sm:$0xf] }
 0xae3   :  { %1899 = vmatpush.msra.mxu1 %v1782_v9  ;;  %v1058_v33 = vand.u32 2147483648, %v5696_v47  ;;  %v1700_v36 = vadd.f32 %v3589_v26, %v1699_v7  ;;  %v2345_v7 = vld [vmem:[%s6210_s26 + $0x8] sm:$0xff]  ;;  %v2344_v26 = vld [vmem:[%s6210_s26] sm:$0xff] }
 0xae4   :  { %3377 = vmatpush.xpose.msk.msrb.mxu3 %vm1170_vm8, %v1772_v10  ;;  %v1056_v30 = vsel %vm1055_vm12, %v5696_v47, %v1054_v31  ;;  %v893_v47 = vld [vmem:[%s6206_s24] sm:$0xff]  ;;  %v2206_v31 = vld [vmem:[%s6209_s27 + $0x8] sm:$0xff] }
 0xae5   :  { %1900 = vmatpush.msra.mxu1 %v1781_v16  ;;  %v1059_v35 = vsel %vm1057_vm13, %v1058_v33, %v1056_v30  ;;  %v1080_v49 = vsub.f32 %v893_v47, %v5540_v40  ;;  %v3592_v33 = vld [vmem:[#allocation45] ss:$0 sm:$0xff] }
 0xae6   :  { %v5738_v38 = vadd.f32 1e-08, %v1059_v35 }
 0xae7   :  { %1901 = vmatpush.msra.mxu1 %v1780_v18 }
 0xae8   :  { %3378 = vmatpush.xpose.msk.msrb.mxu3 %vm1170_vm8, %v1771_v55  ;;  %3650 = vrcp.f32 %v5738_v38  ;;  %v1915_v55 = vld [vmem:[%s6207_s0 + $0x8] sm:$0xff] }
 0xae9   :  { %1902 = vmatpush.msra.mxu1 %v1779_v17  ;;  %3652 = vrcp.f32 %v5746_v48  ;;  %v1914_v17 = vld [vmem:[%s6207_s0] sm:$0xff] }
 0xaeb   :  { %1903 = vmatpush.msra.mxu1 %v1778_v56 }
 0xaec   :  { %3379 = vmatpush.xpose.msk.msrb.mxu3 %vm1170_vm8, %v1770_v20 }
 0xaed   :  { %1904 = vmatpush.msra.mxu1 %v1777_v23 }
 0xaee   :  { %v3651_v50 = vpop.eup %3650 }
 0xaef   :  { %1905 = vmatpush.msra.mxu1 %v1776_v3  ;;  %v1084_v51 = vmul.f32 %v3651_v50, %v1080_v49  ;;  %v3653_v57 = vpop.eup %3652  ;;  %v2273_v49 = vld [vmem:[%s6211_s11 + $0x8] sm:$0xff] }
 0xaf0   :  { %3380 = vmatpush.xpose.msk.msrb.mxu3 %vm1170_vm8, %v1769_v27  ;;  %v1085_v59 = vmul.f32 %v3653_v57, %v1081_v53 }
 0xaf1   :  { %1906 = vmatpush.msra.mxu1 %v1775_v25  ;;  %v2205_v25 = vld [vmem:[%s6209_s27] sm:$0xff] }
 0xaf4   :  { %3381 = vmatpush.xpose.msk.msrb.mxu3 %vm1170_vm8, %v1768_v6  ;;  %v2347_v6 = vld [vmem:[%s6210_s26 + $0x18] sm:$0xff] }
 0xaf8   :  { %3382 = vmatpush.xpose.msk.msrb.mxu3 %vm1170_vm8, %v1767_v28 }
 0xafb   :  { %3383 = vmatmul.msk.f32.vlgmr.msrb.gmra.mxu3 %vm1170_vm8, %v1700_v36 }
 0xafc   :  { %3398 = vmatpush.msk.msra.mxu3 %vm1098_vm1, %v2204_v29 }
 0xafe   :  { %2264 = vmatpush.msra.mxu3 %v2203_v34 }
 0xb03   :  { %3384 = vmatmul.msk.f32.gmra.mxu3 %vm1170_vm8, %v1703_v44 }
 0xb0b   :  { %3399 = vmatmul.msk.f32.vlgmr.msra.gmra.mxu3 %vm1125_vm7, %v1084_v51 }
 0xb13   :  { %3400 = vmatmul.msk.f32.gmra.mxu3 %vm1125_vm7, %v1085_v59 }
 0xb7e   :  { %v1830_v11 = vpop.f32.mrf.mxu3 }
 0xb7f   :  { %v1836_v60 = vmul.f32 0.35355338, %v1830_v11 }
 0xb81   :  { %v1838_v61 = vadd.f32 %v1836_v60, %v5571_v58 }
 0xb83   :  { %v1840_v12 = vsel %vm1345_vm9, %v1838_v61, -inf }
 0xb84   :  { %1841 = vmax.xlane.f32.xlu1 %v1840_v12 }
 0xb86   :  { %v1833_v62 = vpop.f32.mrf.mxu3 }
 0xb87   :  { %v1837_v1 = vmul.f32 0.35355338, %v1833_v62 }
 0xb89   :  { %v1839_v0 = vadd.f32 %v1837_v1, %v5575_v63  ;;  %v1917_v63 = vld [vmem:[%s6207_s0 + $0x18] sm:$0xff] }
 0xb8a   :  { %1940 = vmatpush.msrb.mxu2 %v1917_v63  ;;  %v2012_v1 = vld [vmem:[%s6212_s8 + $0x18] sm:$0xff] }
 0xb8b   :  { %v1843_v2 = vsel %vm1345_vm9, %v1839_v0, -inf  ;;  %2035 = vmatpush.msra.mxu0 %v2012_v1 }
 0xb8c   :  { %1844 = vmax.xlane.f32.xlu2 %v1843_v2  ;;  %1941 = vmatpush.msrb.mxu2 %v1916_v19  ;;  %v2010_v2 = vld [vmem:[%s6212_s8 + $0x8] sm:$0xff]  ;;  %v2276_v19 = vld [vmem:[%s6213_s5] sm:$0xff] }
 0xb8e   :  { %1942 = vmatpush.msrb.mxu2 %v1915_v55  ;;  %v2266_v41 = vpop.f32.mrf.mxu3 }
 0xb90   :  { %1943 = vmatpush.msrb.mxu2 %v1914_v17 }
 0xb92   :  { %3395 = vmatpush.msk.msra.mxu2 %vm1098_vm1, %v2207_v24 }
 0xbf7   :  { %v1842_v9 = vpop.xlane.xlu1 %1841 }
 0xbf8   :  { %v1846_v14 = vsub.f32 %v1838_v61, %v1842_v9  ;;  %v2009_v9 = vld [vmem:[%s6212_s8] sm:$0xff] }
 0xbfa   :  { %v1848_v10 = vmul.f32 1.442695, %v1846_v14 }
 0xbfc   :  { %3654 = vpow2.f32 %v1848_v10 }
 0xbff   :  { %v1845_v15 = vpop.xlane.xlu2 %1844 }
 0xc00   :  { %v1847_v58 = vsub.f32 %v1839_v0, %v1845_v15  ;;  %v2011_v0 = vld [vmem:[%s6212_s8 + $0x10] sm:$0xff] }
 0xc01   :  { %2036 = vmatpush.msra.mxu0 %v2011_v0  ;;  %v2381_v0 = vld [vmem:[%s6216_s15 + $0x30] sm:$0xff] }
 0xc02   :  { %v3655_v16 = vpop.eup %3654  ;;  %v1850_v18 = vmul.f32 1.442695, %v1847_v58  ;;  %v2279_v58 = vld [vmem:[%s6213_s5 + $0x18] sm:$0xff] }
 0xc03   :  { %3385 = vmatmul.msk.f32.vlgmr.msrb.gmra.mxu0 %vm1345_vm9, %v3655_v16 }
 0xc04   :  { %3656 = vpow2.f32 %v1850_v18  ;;  %2037 = vmatpush.msra.mxu0 %v2010_v2  ;;  %v2277_v18 = vld [vmem:[%s6213_s5 + $0x8] sm:$0xff] }
 0xc06   :  { %2038 = vmatpush.msra.mxu0 %v2009_v9  ;;  %v2380_v9 = vld [vmem:[%s6216_s15 + $0x28] sm:$0xff] }
 0xc08   :  { %2302 = vmatpush.msrb.mxu0 %v2279_v58 }
 0xc0a   :  { %v3657_v54 = vpop.eup %3656 }
 0xc0b   :  { %3386 = vmatmul.msk.f32.gmra.mxu0 %vm1345_vm9, %v3657_v54 }
 0xc80   :  { %v1875_v56 = vpop.f32.mrf.mxu0 }
 0xc81   :  { %3658 = vrcp.f32 %v1875_v56 }
 0xc87   :  { %v3659_v21 = vpop.eup %3658 }
 0xc88   :  { %v1883_v20 = vmul.f32 %v3659_v21, %v3655_v16  ;;  %v1878_v22 = vpop.f32.mrf.mxu0  ;;  %v2278_v16 = vld [vmem:[%s6213_s5 + $0x10] sm:$0xff] }
 0xc89   :  { %3660 = vrcp.f32 %v1878_v22  ;;  %2303 = vmatpush.msrb.mxu0 %v2278_v16 }
 0xc8a   :  { %3387 = vmatmul.msk.f32.vlgmr.msra.gmra.mxu1 %vm1345_vm9, %v1883_v20 }
 0xc8b   :  { %2304 = vmatpush.msrb.mxu0 %v2277_v18  ;;  %v2378_v18 = vld [vmem:[%s6216_s15 + $0x18] sm:$0xff] }
 0xc8d   :  { %2305 = vmatpush.msrb.mxu0 %v2276_v19  ;;  %v2377_v19 = vld [vmem:[%s6216_s15 + $0x10] sm:$0xff] }
 0xc8f   :  { %v3661_v23 = vpop.eup %3660 }
 0xc90   :  { %v1884_v3 = vmul.f32 %v3661_v23, %v3657_v54 }
 0xc92   :  { %3388 = vmatmul.msk.f32.gmra.mxu1 %vm1345_vm9, %v1884_v3  ;;  %v3594_v3 = vld [vmem:[#allocation54] ss:$0 sm:$0xff] }
 0xd07   :  { %v1908_v27 = vpop.f32.mrf.mxu1 }
 0xd08   :  { %3389 = vmatmul.msk.f32.vlgmr.msrb.gmra.mxu2 %vm1170_vm8, %v1908_v27 }
 0xd09   :  { %2364 = vmatpush.msrb.mxu2 %v2347_v6 }
 0xd0b   :  { %2365 = vmatpush.msrb.mxu2 %v2346_v13 }
 0xd0d   :  { %2366 = vmatpush.msrb.mxu2 %v2345_v7  ;;  %v3595_v7 = vld [vmem:[#allocation52] ss:$0 sm:$0xff] }
 0xd0f   :  { %v1911_v4 = vpop.f32.mrf.mxu1  ;;  %2367 = vmatpush.msrb.mxu2 %v2344_v26  ;;  %v2053_v26 = vld [vmem:[%s6214_s17 + $0x28] sm:$0xff] }
 0xd10   :  { %3390 = vmatmul.msk.f32.gmra.mxu2 %vm1170_vm8, %v1911_v4  ;;  %v2055_v4 = vld [vmem:[%s6214_s17 + $0x38] sm:$0xff] }
 0xd11   :  { %2074 = vmatpush.msrb.mxu1 %v2055_v4 }
 0xd18   :  { %3396 = vmatmul.msk.f32.vlgmr.msra.gmra.mxu2 %vm1091_vm2, %v2205_v25  ;;  %v2054_v25 = vld [vmem:[%s6214_s17 + $0x30] sm:$0xff] }
 0xd19   :  { %2075 = vmatpush.msrb.mxu1 %v2054_v25 }
 0xd1b   :  { %2076 = vmatpush.msrb.mxu1 %v2053_v26 }
 0xd20   :  { %3397 = vmatmul.msk.f32.gmra.mxu2 %vm1091_vm2, %v2206_v31 }
 0xd8b   :  { %v1945_v28 = vpop.f32.mrf.mxu2 }
 0xd8c   :  { %v1946_v29 = vadd.f32 %v3592_v33, %v1945_v28 }
 0xd8e   :  { %v1951_v30 = vadd.f32 %v1946_v29, %v5674_v8  ;;  %v2269_v8 = vpop.f32.mrf.mxu3  ;;  %v2052_v29 = vld [vmem:[%s6214_s17 + $0x20] sm:$0xff] }
 0xd8f   :  { %2077 = vmatpush.msrb.mxu1 %v2052_v29 }
 0xd90   :  { %v1955_v32 = vsel %vm1170_vm8, %v1951_v30, 0.0 }
 0xd91   :  { %1956 = vadd.xlane.f32.xlu0 %v1955_v32 }
 0xd93   :  { %v1948_v36 = vpop.f32.mrf.mxu2 }
 0xd94   :  { %v1949_v34 = vadd.f32 %v3592_v33, %v1948_v36  ;;  %v2051_v36 = vld [vmem:[%s6214_s17 + $0x18] sm:$0xff] }
 0xd95   :  { %2078 = vmatpush.msrb.mxu1 %v2051_v36 }
 0xd96   :  { %v1952_v35 = vadd.f32 %v1949_v34, %v5683_v39 }
 0xd98   :  { %v1958_v37 = vsel %vm1170_vm8, %v1952_v35, 0.0 }
 0xd99   :  { %1959 = vadd.xlane.f32.xlu1 %v1958_v37 }
 0xd9b   :  { %v2234_v42 = vpop.f32.mrf.mxu2 }
 0xd9c   :  { %v2267_v44 = vadd.f32 %v2266_v41, %v2234_v42  ;;  %v2049_v42 = vld [vmem:[%s6214_s17 + $0x8] sm:$0xff] }
 0xd9e   :  { %v5783_v46 = vadd.f32 %v2272_v43, %v2267_v44  ;;  %v2048_v44 = vld [vmem:[%s6214_s17] sm:$0xff] }
 0xda0   :  { %3405 = vmatmul.msk.f32.vlgmr.msrb.gmra.mxu2 %vm1170_vm8, %v5783_v46 }
 0xda3   :  { %v2237_v47 = vpop.f32.mrf.mxu2 }
 0xda4   :  { %v2270_v50 = vadd.f32 %v2269_v8, %v2237_v47  ;;  %v2316_v8 = vld [vmem:[%s6215_s30 + $0x18] sm:$0xff] }
 0xda6   :  { %v5788_v51 = vadd.f32 %v2273_v49, %v2270_v50  ;;  %v2315_v49 = vld [vmem:[%s6215_s30 + $0x10] sm:$0xff]  ;;  %v2314_v50 = vld [vmem:[%s6215_s30 + $0x8] sm:$0xff] }
 0xda8   :  { %3406 = vmatmul.msk.f32.gmra.mxu2 %vm1170_vm8, %v5788_v51 }
 0xe04   :  { %v1957_v39 = vpop.xlane.xlu0 %1956 }
 0xe05   :  { %v1961_v52 = vmul.f32 %v1957_v39, %v5613_v5  ;;  %v2313_v39 = vld [vmem:[%s6215_s30] sm:$0xff] }
 0xe07   :  { %v1963_v53 = vsub.f32 %v1951_v30, %v1961_v52 }
 0xe09   :  { %v1965_v57 = vmul.f32 %v1963_v53, %v1963_v53 }
 0xe0b   :  { %v1967_v59 = vsel %vm1170_vm8, %v1965_v57, 0.0  ;;  %v3596_v57 = vld [vmem:[#allocation49] ss:$0 sm:$0xff] }
 0xe0c   :  { %1968 = vadd.xlane.f32.xlu2 %v1967_v59  ;;  %v1960_v11 = vpop.xlane.xlu1 %1959  ;;  %v3593_v59 = vld [vmem:[#allocation22] ss:$0 sm:$0xff] }
 0xe0d   :  { %v1962_v60 = vmul.f32 %v1960_v11, %v5613_v5 }
 0xe0f   :  { %v5795_v61 = vsub.f32 %v1952_v35, %v1962_v60  ;;  %v2050_v35 = vld [vmem:[%s6214_s17 + $0x10] sm:$0xff] }
 0xe10   :  { %2079 = vmatpush.msrb.mxu1 %v2050_v35 }
 0xe11   :  { %v1966_v12 = vmul.f32 %v5795_v61, %v5795_v61 }
 0xe12   :  { %2080 = vmatpush.msrb.mxu1 %v2049_v42 }
 0xe13   :  { %v1970_v62 = vsel %vm1170_vm8, %v1966_v12, 0.0  ;;  %v2382_v12 = vld [vmem:[%s6216_s15 + $0x38] sm:$0xff] }
 0xe14   :  { %1971 = vadd.xlane.f32.xlu0 %v1970_v62  ;;  %2081 = vmatpush.msrb.mxu1 %v2048_v44 }
 0xe16   :  { %2333 = vmatpush.msra.mxu1 %v2316_v8 }
 0xe18   :  { %2334 = vmatpush.msra.mxu1 %v2315_v49  ;;  %v2477_v49 = vld [vmem:[%s6217_s18 + $0x38] sm:$0xff] }
 0xe1a   :  { %2335 = vmatpush.msra.mxu1 %v2314_v50  ;;  %v2476_v50 = vld [vmem:[%s6217_s18 + $0x30] sm:$0xff] }
 0xe1c   :  { %2336 = vmatpush.msra.mxu1 %v2313_v39  ;;  %v2475_v39 = vld [vmem:[%s6217_s18 + $0x28] sm:$0xff] }
 0xe23   :  { %v2369_v52 = vpop.f32.mrf.mxu2 }
 0xe24   :  { %v2370_v62 = vadd.f32 %v3593_v59, %v2369_v52 }
 0xe7f   :  { %v1969_v14 = vpop.xlane.xlu2 %1968 }
 0xe80   :  { %v1973_v10 = vmul.f32 %v1969_v14, %v5613_v5  ;;  %v2397_v14 = vmul.f32 %v2381_v0, %v2370_v62 }
 0xe82   :  { %v1975_v15 = vadd.f32 1e-05, %v1973_v10  ;;  %v2379_v10 = vld [vmem:[%s6216_s15 + $0x20] sm:$0xff] }
 0xe84   :  { %3662 = vrsqrt.f32 %v1975_v15  ;;  %vm1983_vm7 = vweird.f32 %v1975_v15 }
 0xe87   :  { %v1972_v54 = vpop.xlane.xlu0 %1971 }
 0xe88   :  { %v1974_v63 = vmul.f32 %v1972_v54, %v5613_v5  ;;  %v2395_v54 = vmul.f32 %v2379_v10, %v2370_v62 }
 0xe8a   :  { %v3663_v55 = vpop.eup %3662  ;;  %v1976_v17 = vadd.f32 1e-05, %v1974_v63 }
 0xe8b   :  { %v1978_v56 = vmul.f32 %v3663_v55, %v1975_v15  ;;  %vm1984_vm1 = vweird.f32 %v3663_v55 }
 0xe8c   :  { %3664 = vrsqrt.f32 %v1976_v17  ;;  %vm1985_vm0 = vmor %vm1983_vm7, %vm1984_vm1  ;;  %vm1993_vm4 = vweird.f32 %v1976_v17 }
 0xe8d   :  { %v1979_v21 = vmul.f32 %v3663_v55, %v1978_v56  ;;  %v2393_v56 = vmul.f32 %v2377_v19, %v2370_v62 }
 0xe8f   :  { %v1980_v20 = vmul.f32 0.5, %v1979_v21  ;;  %v2375_v21 = vld [vmem:[%s6216_s15] sm:$0xff] }
 0xe91   :  { %v1981_v22 = vsub.f32 1.5, %v1980_v20 }
 0xe92   :  { %v3665_v23 = vpop.eup %3664 }
 0xe93   :  { %v1982_v24 = vmul.f32 %v3663_v55, %v1981_v22  ;;  %v1988_v27 = vmul.f32 %v3665_v23, %v1976_v17  ;;  %vm1994_vm3 = vweird.f32 %v3665_v23  ;;  %v2376_v17 = vld [vmem:[%s6216_s15 + $0x8] sm:$0xff]  ;;  %v2391_v22 = vmul.f32 %v2375_v21, %v2370_v62 }
 0xe94   :  { %vm1995_vm5 = vmor %vm1993_vm4, %vm1994_vm3 }
 0xe95   :  { %v1986_v31 = vsel %vm1985_vm0, %v3663_v55, %v1982_v24  ;;  %v1989_v6 = vmul.f32 %v3665_v23, %v1988_v27 }
 0xe96   :  { %v1997_v13 = vmul.f32 %v1986_v31, %v1963_v53  ;;  %v2372_v53 = vpop.f32.mrf.mxu2 }
 0xe97   :  { %v1990_v33 = vmul.f32 0.5, %v1989_v6  ;;  %v2373_v11 = vadd.f32 %v3593_v59, %v2372_v53  ;;  %v2454_v53 = vld [vmem:[#allocation6] sm:$0xff] }
 0xe98   :  { %v2002_v28 = vmul.f32 %v3594_v3, %v1997_v13  ;;  %v3599_v13 = vld [vmem:[#allocation18] ss:$0 sm:$0xff] }
 0xe99   :  { %v1991_v30 = vsub.f32 1.5, %v1990_v33  ;;  %v2398_v2 = vmul.f32 %v2382_v12, %v2373_v11  ;;  %v2396_v58 = vmul.f32 %v2380_v9, %v2373_v11  ;;  %v2394_v55 = vmul.f32 %v2378_v18, %v2373_v11 }
 0xe9a   :  { %v5814_v32 = vadd.f32 %v3595_v7, %v2002_v28  ;;  %v2392_v20 = vmul.f32 %v2376_v17, %v2373_v11 }
 0xe9b   :  { %v1992_v34 = vmul.f32 %v3665_v23, %v1991_v30 }
 0xe9c   :  { %3391 = vmatmul.msk.f32.vlgmr.msra.gmra.mxu0 %vm1170_vm8, %v5814_v32 }
 0xe9d   :  { %v1996_v37 = vsel %vm1995_vm5, %v3665_v23, %v1992_v34  ;;  %v3598_v23 = vld [vmem:[#allocation51] ss:$0 sm:$0xff]  ;;  %2492 = vmatpush.msra.mxu0 %v2477_v49 }
 0xe9e   :  { %v1998_v41 = vmul.f32 %v1996_v37, %v5795_v61 }
 0xe9f   :  { %2493 = vmatpush.msra.mxu0 %v2476_v50  ;;  %v2543_v50 = vld [vmem:[%s6218_s22 + $0x18] sm:$0xff] }
 0xea0   :  { %v2003_v43 = vmul.f32 %v3594_v3, %v1998_v41  ;;  %v3597_v41 = vld [vmem:[#allocation21] ss:$0 sm:$0xff]  ;;  %2566 = vmatpush.msra.mxu2 %v2543_v50 }
 0xea1   :  { %2494 = vmatpush.msra.mxu0 %v2475_v39  ;;  %v2542_v39 = vld [vmem:[%s6218_s22 + $0x10] sm:$0xff] }
 0xea2   :  { %v5824_v47 = vadd.f32 %v3595_v7, %v2003_v43  ;;  %2567 = vmatpush.msra.mxu2 %v2542_v39 }
 0xea4   :  { %3392 = vmatmul.msk.f32.gmra.mxu0 %vm1170_vm8, %v5824_v47 }
 0xeac   :  { %3401 = vmatmul.msk.f32.vlgmr.msrb.gmra.mxu0 %vm1170_vm8, %v5783_v46 }
 0xeb4   :  { %3402 = vmatmul.msk.f32.gmra.mxu0 %vm1170_vm8, %v5788_v51 }
 0xf19   :  { %v2040_v60 = vpop.f32.mrf.mxu0 }
 0xf1a   :  { %v2041_v61 = vadd.f32 %v3596_v57, %v2040_v60 }
 0xf1c   :  { %v2046_v1 = vmax.f32 %v2041_v61, 0.0 }
 0xf1e   :  { %3393 = vmatmul.msk.f32.vlgmr.msrb.gmra.mxu1 %vm1345_vm9, %v2046_v1 }
 0xf1f   :  { %2525 = vmatpush.msrb.mxu1 %v2398_v2 }
 0xf21   :  { %2526 = vmatpush.msrb.mxu1 %v2397_v14  ;;  %v2043_v15 = vpop.f32.mrf.mxu0 }
 0xf22   :  { %v2044_v16 = vadd.f32 %v3596_v57, %v2043_v15 }
 0xf23   :  { %2527 = vmatpush.msrb.mxu1 %v2396_v58 }
 0xf24   :  { %v2047_v63 = vmax.f32 %v2044_v16, 0.0  ;;  %v2474_v16 = vld [vmem:[%s6217_s18 + $0x20] sm:$0xff] }
 0xf25   :  { %2528 = vmatpush.msrb.mxu1 %v2395_v54  ;;  %2495 = vmatpush.msra.mxu0 %v2474_v16  ;;  %v2472_v54 = vld [vmem:[%s6217_s18 + $0x10] sm:$0xff] }
 0xf26   :  { %3394 = vmatmul.msk.f32.gmra.mxu1 %vm1345_vm9, %v2047_v63  ;;  %v2471_v63 = vld [vmem:[%s6217_s18 + $0x8] sm:$0xff] }
 0xf27   :  { %2529 = vmatpush.msrb.mxu1 %v2394_v55 }
 0xf29   :  { %2530 = vmatpush.msrb.mxu1 %v2393_v56  ;;  %v2307_v37 = vpop.f32.mrf.mxu0 }
 0xf2a   :  { %v2308_v43 = vadd.f32 %v3597_v41, %v2307_v37 }
 0xf2b   :  { %2531 = vmatpush.msrb.mxu1 %v2392_v20 }
 0xf2d   :  { %2532 = vmatpush.msrb.mxu1 %v2391_v22 }
 0xf2e   :  { %3403 = vmatmul.msk.f32.vlgmr.msra.gmra.mxu1 %vm1170_vm8, %v5783_v46 }
 0xf31   :  { %v2310_v44 = vpop.f32.mrf.mxu0 }
 0xf32   :  { %v2311_v8 = vadd.f32 %v3597_v41, %v2310_v44 }
 0xf36   :  { %3404 = vmatmul.msk.f32.gmra.mxu1 %vm1170_vm8, %v5788_v51 }
 0xf9b   :  { %v2083_v3 = vpop.f32.mrf.mxu1 }
 0xf9c   :  { %v2084_v24 = vadd.f32 %v3598_v23, %v2083_v3 }
 0xf9e   :  { %v2089_v27 = vadd.f32 %v2084_v24, %v5814_v32 }
 0xfa0   :  { %v2093_v4 = vsel %vm1170_vm8, %v2089_v27, 0.0 }
 0xfa1   :  { %2094 = vadd.xlane.f32.xlu0 %v2093_v4 }
 0xfa3   :  { %v2086_v25 = vpop.f32.mrf.mxu1 }
 0xfa4   :  { %v2087_v31 = vadd.f32 %v3598_v23, %v2086_v25 }
 0xfab   :  { %v2338_v6 = vpop.f32.mrf.mxu1 }
 0xfac   :  { %v2339_v33 = vadd.f32 %v3599_v13, %v2338_v6 }
 0xfae   :  { %v2389_v29 = vmul.f32 %v2381_v0, %v2339_v33  ;;  %v2387_v32 = vmul.f32 %v2379_v10, %v2339_v33  ;;  %v2385_v34 = vmul.f32 %v2377_v19, %v2339_v33  ;;  %v2383_v42 = vmul.f32 %v2375_v21, %v2339_v33 }
 0xfaf   :  { %v2090_v0 = vadd.f32 %v2087_v31, %v5824_v47  ;;  %v2470_v47 = vld [vmem:[%s6217_s18] sm:$0xff] }
 0xfb1   :  { %v2096_v10 = vsel %vm1170_vm8, %v2090_v0, 0.0 }
 0xfb3   :  { %v2341_v7 = vpop.f32.mrf.mxu1 }
 0xfb4   :  { %v2342_v26 = vadd.f32 %v3599_v13, %v2341_v7 }
 0xfb6   :  { %v2390_v28 = vmul.f32 %v2382_v12, %v2342_v26  ;;  %v2388_v30 = vmul.f32 %v2380_v9, %v2342_v26  ;;  %v2386_v36 = vmul.f32 %v2378_v18, %v2342_v26  ;;  %v2384_v35 = vmul.f32 %v2376_v17, %v2342_v26  ;;  %v2455_v12 = vld [vmem:[#allocation6 + $0x8] sm:$0xff]  ;;  %v2473_v18 = vld [vmem:[%s6217_s18 + $0x18] sm:$0xff] }
 0xfb7   :  { %2496 = vmatpush.msra.mxu0 %v2473_v18 }
 0xfb8   :  { %3407 = vmatpush.xpose.msk.msrb.mxu3 %vm1170_vm8, %v2390_v28 }
 0xfb9   :  { %2497 = vmatpush.msra.mxu0 %v2472_v54 }
 0xfbb   :  { %2498 = vmatpush.msra.mxu0 %v2471_v63 }
 0xfbc   :  { %3408 = vmatpush.xpose.msk.msrb.mxu3 %vm1170_vm8, %v2389_v29 }
 0xfbd   :  { %2499 = vmatpush.msra.mxu0 %v2470_v47 }
 0xfc0   :  { %3409 = vmatpush.xpose.msk.msrb.mxu3 %vm1170_vm8, %v2388_v30 }
 0xfc4   :  { %3410 = vmatpush.xpose.msk.msrb.mxu3 %vm1170_vm8, %v2387_v32  ;;  %v3600_v32 = vld [vmem:[#allocation57] ss:$0 sm:$0xff] }
 0xfc8   :  { %3411 = vmatpush.xpose.msk.msrb.mxu3 %vm1170_vm8, %v2386_v36 }
 0xfcc   :  { %3412 = vmatpush.xpose.msk.msrb.mxu3 %vm1170_vm8, %v2385_v34 }
 0xfd0   :  { %3413 = vmatpush.xpose.msk.msrb.mxu3 %vm1170_vm8, %v2384_v35  ;;  %v3601_v35 = vld [vmem:[#allocation55] ss:$0 sm:$0xff] }
 0xfd4   :  { %3414 = vmatpush.xpose.msk.msrb.mxu3 %vm1170_vm8, %v2383_v42 }
 0xfd7   :  { %3415 = vmatmul.msk.f32.vlgmr.msrb.gmra.mxu3 %vm1170_vm8, %v2308_v43 }
 0xfdf   :  { %3416 = vmatmul.msk.f32.gmra.mxu3 %vm1170_vm8, %v2311_v8 }
0x1014   :  { %v2095_v60 = vpop.xlane.xlu0 %2094 }
0x1015   :  { %v2099_v62 = vmul.f32 %v2095_v60, %v5613_v5 }
0x1017   :  { %v2101_v9 = vsub.f32 %v2089_v27, %v2099_v62 }
0x1019   :  { %v2103_v15 = vmul.f32 %v2101_v9, %v2101_v9 }
0x101b   :  { %v2105_v58 = vsel %vm1170_vm8, %v2103_v15, 0.0 }
0x105a   :  { %v2446_v52 = vpop.f32.mrf.mxu3 }
0x105b   :  { %v2452_v57 = vmul.f32 0.35355338, %v2446_v52  ;;  %v2541_v52 = vld [vmem:[%s6218_s22 + $0x8] sm:$0xff] }
0x105c   :  { %2568 = vmatpush.msra.mxu2 %v2541_v52 }
0x105d   :  { %v2456_v59 = vadd.f32 %v2454_v53, %v2452_v57  ;;  %v2540_v53 = vld [vmem:[%s6218_s22] sm:$0xff] }
0x105e   :  { %2569 = vmatpush.msra.mxu2 %v2540_v53 }
0x105f   :  { %v2458_v11 = vsel %vm1345_vm9, %v2456_v59, -inf }
0x1060   :  { %2459 = vmax.xlane.f32.xlu1 %v2458_v11 }
0x1062   :  { %v2449_v61 = vpop.f32.mrf.mxu3 }
0x1063   :  { %v2453_v1 = vmul.f32 0.35355338, %v2449_v61 }
0x1065   :  { %v2457_v2 = vadd.f32 %v2455_v12, %v2453_v1 }
0x1067   :  { %v2461_v14 = vsel %vm1345_vm9, %v2457_v2, -inf }
0x1068   :  { %2462 = vmax.xlane.f32.xlu2 %v2461_v14  ;;  %2097 = vadd.xlane.f32.xlu1 %v2096_v10 }
0x1070   :  { %2106 = vadd.xlane.f32.xlu2 %v2105_v58 }
0x10d3   :  { %v2460_v19 = vpop.xlane.xlu1 %2459 }
0x10d4   :  { %v2464_v55 = vsub.f32 %v2456_v59, %v2460_v19 }
0x10d6   :  { %v2466_v17 = vmul.f32 1.442695, %v2464_v55 }
0x10d8   :  { %3666 = vpow2.f32 %v2466_v17  ;;  %v2675_v17 = vld [vmem:[%s6219_s6 + $0x18] sm:$0xff] }
0x10d9   :  { %2698 = vmatpush.msra.mxu1 %v2675_v17 }
0x10db   :  { %v2463_v56 = vpop.xlane.xlu2 %2462  ;;  %v2098_v21 = vpop.xlane.xlu1 %2097 }
0x10dc   :  { %v2465_v20 = vsub.f32 %v2457_v2, %v2463_v56  ;;  %v2100_v22 = vmul.f32 %v2098_v21, %v5613_v5  ;;  %v2712_v56 = vld [vmem:[%s6220_s20 + $0x18] sm:$0xff]  ;;  %v2674_v21 = vld [vmem:[%s6219_s6 + $0x10] sm:$0xff] }
0x10dd   :  { %2729 = vmatpush.msrb.mxu2 %v2712_v56  ;;  %2699 = vmatpush.msra.mxu1 %v2674_v21  ;;  %v2638_v21 = vld [vmem:[%s6221_s16 + $0x18] sm:$0xff] }
0x10de   :  { %v3667_v23 = vpop.eup %3666  ;;  %v2468_v3 = vmul.f32 1.442695, %v2465_v20  ;;  %v2102_v24 = vsub.f32 %v2090_v0, %v2100_v22  ;;  %v2711_v20 = vld [vmem:[%s6220_s20 + $0x10] sm:$0xff]  ;;  %v2673_v22 = vld [vmem:[%s6219_s6 + $0x8] sm:$0xff]  ;;  %2661 = vmatpush.msrb.mxu0 %v2638_v21  ;;  %v3717_v21 = vld [vmem:[%s6198_s28 + $0x20] sm:$0xff] }
0x10df   :  { %3417 = vmatmul.msk.f32.vlgmr.msra.gmra.mxu0 %vm1345_vm9, %v3667_v23  ;;  %2730 = vmatpush.msrb.mxu2 %v2711_v20  ;;  %v2637_v20 = vld [vmem:[%s6221_s16 + $0x10] sm:$0xff] }
0x10e0   :  { %3668 = vpow2.f32 %v2468_v3  ;;  %v2104_v27 = vmul.f32 %v2102_v24, %v2102_v24  ;;  %v2672_v3 = vld [vmem:[%s6219_s6] sm:$0xff]  ;;  %2700 = vmatpush.msra.mxu1 %v2673_v22  ;;  %2662 = vmatpush.msrb.mxu0 %v2637_v20  ;;  %v2636_v22 = vld [vmem:[%s6221_s16 + $0x8] sm:$0xff] }
0x10e2   :  { %v2108_v4 = vsel %vm1170_vm8, %v2104_v27, 0.0  ;;  %2701 = vmatpush.msra.mxu1 %v2672_v3  ;;  %2663 = vmatpush.msrb.mxu0 %v2636_v22  ;;  %v3706_v3 = vld [vmem:[%s6199_s1 + $0x38] sm:$0xff] }
0x10e3   :  { %2109 = vadd.xlane.f32.xlu0 %v2108_v4  ;;  %v2107_v25 = vpop.xlane.xlu2 %2106 }
0x10e4   :  { %v2111_v31 = vmul.f32 %v2107_v25, %v5613_v5 }
0x10e6   :  { %v3669_v6 = vpop.eup %3668  ;;  %v2113_v13 = vadd.f32 1e-05, %v2111_v31 }
0x10e7   :  { %3418 = vmatmul.msk.f32.gmra.mxu0 %vm1345_vm9, %v3669_v6 }
0x10e8   :  { %3670 = vrsqrt.f32 %v2113_v13  ;;  %vm2121_vm10 = vweird.f32 %v2113_v13 }
0x10ee   :  { %v3671_v7 = vpop.eup %3670 }
0x10ef   :  { %v2116_v26 = vmul.f32 %v3671_v7, %v2113_v13  ;;  %vm2122_vm6 = vweird.f32 %v3671_v7 }
0x10f0   :  { %vm2123_vm11 = vmor %vm2121_vm10, %vm2122_vm6 }
0x10f1   :  { %v2117_v33 = vmul.f32 %v3671_v7, %v2116_v26 }
0x10f3   :  { %v2118_v28 = vmul.f32 0.5, %v2117_v33 }
0x10f5   :  { %v2119_v29 = vsub.f32 1.5, %v2118_v28 }
0x10f7   :  { %v2120_v30 = vmul.f32 %v3671_v7, %v2119_v29  ;;  %v3602_v29 = vld [vmem:[#allocation60] ss:$0 sm:$0xff] }
0x10f9   :  { %v2124_v36 = vsel %vm2123_vm11, %v3671_v7, %v2120_v30 }
0x10fa   :  { %v2135_v34 = vmul.f32 %v2124_v36, %v2101_v9  ;;  %v3603_v36 = vld [vmem:[#allocation58] ss:$0 sm:$0xff] }
0x10fc   :  { %v2140_v37 = vmul.f32 %v3600_v32, %v2135_v34 }
0x10fe   :  { %v2145_v41 = vadd.f32 %v3601_v35, %v2140_v37  ;;  %v3604_v37 = vld [vmem:[#allocation19] ss:$0 sm:$0xff] }
0x1100   :  { %v2149_v42 = vsel %vm1170_vm8, %v2145_v41, 0.0 }
0x1101   :  { %2150 = vadd.xlane.f32.xlu1 %v2149_v42 }
0x1156   :  { %v2110_v43 = vpop.xlane.xlu0 %2109 }
0x1157   :  { %v2112_v44 = vmul.f32 %v2110_v43, %v5613_v5 }
0x1159   :  { %v2114_v8 = vadd.f32 1e-05, %v2112_v44 }
0x115b   :  { %3672 = vrsqrt.f32 %v2114_v8  ;;  %vm2131_vm13 = vweird.f32 %v2114_v8 }
0x115c   :  { %v2501_v49 = vpop.f32.mrf.mxu0 }
0x115d   :  { %3674 = vrcp.f32 %v2501_v49 }
0x1161   :  { %v3673_v57 = vpop.eup %3672 }
0x1162   :  { %v2126_v59 = vmul.f32 %v3673_v57, %v2114_v8  ;;  %vm2132_vm12 = vweird.f32 %v3673_v57 }
0x1163   :  { %v3675_v11 = vpop.eup %3674  ;;  %vm2133_vm14 = vmor %vm2131_vm13, %vm2132_vm12 }
0x1164   :  { %v2127_v60 = vmul.f32 %v3673_v57, %v2126_v59  ;;  %v2509_v61 = vmul.f32 %v3675_v11, %v3667_v23  ;;  %v2504_v12 = vpop.f32.mrf.mxu0  ;;  %v2710_v23 = vld [vmem:[%s6220_s20 + $0x8] sm:$0xff] }
0x1165   :  { %3676 = vrcp.f32 %v2504_v12  ;;  %2731 = vmatpush.msrb.mxu2 %v2710_v23  ;;  %v2635_v23 = vld [vmem:[%s6221_s16] sm:$0xff] }
0x1166   :  { %v2128_v62 = vmul.f32 0.5, %v2127_v60  ;;  %3419 = vmatmul.msk.f32.vlgmr.msrb.gmra.mxu1 %vm1345_vm9, %v2509_v61  ;;  %2664 = vmatpush.msrb.mxu0 %v2635_v23  ;;  %v3718_v23 = vld [vmem:[%s6198_s28 + $0x18] sm:$0xff] }
0x1168   :  { %v2129_v1 = vsub.f32 1.5, %v2128_v62  ;;  %2841 = vmatpush.msra.mxu0 %v3706_v3 }
0x116a   :  { %v2130_v0 = vmul.f32 %v3673_v57, %v2129_v1 }
0x116b   :  { %v3677_v2 = vpop.eup %3676 }
0x116c   :  { %v2510_v9 = vmul.f32 %v3677_v2, %v3669_v6  ;;  %v2134_v14 = vsel %vm2133_vm14, %v3673_v57, %v2130_v0 }
0x116d   :  { %v2136_v10 = vmul.f32 %v2134_v14, %v2102_v24  ;;  %v2709_v24 = vld [vmem:[%s6220_s20] sm:$0xff] }
0x116e   :  { %3420 = vmatmul.msk.f32.gmra.mxu1 %vm1345_vm9, %v2510_v9  ;;  %2732 = vmatpush.msrb.mxu2 %v2709_v24 }
0x116f   :  { %v2141_v15 = vmul.f32 %v3600_v32, %v2136_v10 }
0x1171   :  { %v2146_v58 = vadd.f32 %v3601_v35, %v2141_v15 }
0x1173   :  { %v2152_v16 = vsel %vm1170_vm8, %v2146_v58, 0.0 }
0x1174   :  { %v2151_v18 = vpop.xlane.xlu1 %2150  ;;  %2153 = vadd.xlane.f32.xlu2 %v2152_v16 }
0x1175   :  { %v2155_v54 = vmul.f32 %v2151_v18, %v5613_v5 }
0x1177   :  { %v2157_v63 = vsub.f32 %v2145_v41, %v2155_v54 }
0x1179   :  { %v2159_v47 = vmul.f32 %v2157_v63, %v2157_v63 }
0x117b   :  { %v2161_v19 = vsel %vm1170_vm8, %v2159_v47, 0.0 }
0x117c   :  { %2162 = vadd.xlane.f32.xlu1 %v2161_v19 }
0x11e3   :  { %v2534_v55 = vpop.f32.mrf.mxu1 }
0x11e4   :  { %3421 = vmatmul.msk.f32.vlgmr.msra.gmra.mxu2 %vm1170_vm8, %v2534_v55 }
0x11e7   :  { %v2154_v41 = vpop.xlane.xlu2 %2153 }
0x11e8   :  { %v2156_v43 = vmul.f32 %v2154_v41, %v5613_v5 }
0x11ea   :  { %v2158_v49 = vsub.f32 %v2146_v58, %v2156_v43 }
0x11eb   :  { %v2537_v27 = vpop.f32.mrf.mxu1 }
0x11ec   :  { %3422 = vmatmul.msk.f32.gmra.mxu2 %vm1170_vm8, %v2537_v27  ;;  %v2160_v53 = vmul.f32 %v2158_v49, %v2158_v49  ;;  %v3707_v27 = vld [vmem:[%s6199_s1 + $0x30] sm:$0xff] }
0x11ed   :  { %2842 = vmatpush.msra.mxu0 %v3707_v27  ;;  %v3719_v27 = vld [vmem:[%s6198_s28 + $0x10] sm:$0xff] }
0x11ee   :  { %v2164_v11 = vsel %vm1170_vm8, %v2160_v53, 0.0 }
0x11ef   :  { %v2163_v4 = vpop.xlane.xlu1 %2162 }
0x11f0   :  { %v2167_v25 = vmul.f32 %v2163_v4, %v5613_v5 }
0x11f2   :  { %v2169_v31 = vadd.f32 1e-05, %v2167_v25  ;;  %v3708_v25 = vld [vmem:[%s6199_s1 + $0x28] sm:$0xff] }
0x11f3   :  { %2843 = vmatpush.msra.mxu0 %v3708_v25  ;;  %v3720_v25 = vld [vmem:[%s6198_s28 + $0x8] sm:$0xff] }
0x11f4   :  { %3678 = vrsqrt.f32 %v2169_v31  ;;  %vm2177_vm1 = vweird.f32 %v2169_v31 }
0x11fa   :  { %v3679_v6 = vpop.eup %3678 }
0x11fb   :  { %v2172_v13 = vmul.f32 %v3679_v6, %v2169_v31  ;;  %vm2178_vm15 = vweird.f32 %v3679_v6 }
0x11fc   :  { %vm2179_vm7 = vmor %vm2177_vm1, %vm2178_vm15 }
0x11fd   :  { %v2173_v7 = vmul.f32 %v3679_v6, %v2172_v13  ;;  %v3710_v13 = vld [vmem:[%s6199_s1 + $0x18] sm:$0xff] }
0x11ff   :  { %v2174_v26 = vmul.f32 0.5, %v2173_v7 }
0x1201   :  { %v2175_v33 = vsub.f32 1.5, %v2174_v26  ;;  %v3711_v26 = vld [vmem:[%s6199_s1 + $0x10] sm:$0xff] }
0x1203   :  { %v2176_v28 = vmul.f32 %v3679_v6, %v2175_v33 }
0x1205   :  { %v2180_v30 = vsel %vm2179_vm7, %v3679_v6, %v2176_v28  ;;  %v3709_v6 = vld [vmem:[%s6199_s1 + $0x20] sm:$0xff]  ;;  %v3712_v28 = vld [vmem:[%s6199_s1 + $0x8] sm:$0xff] }
0x1206   :  { %v2191_v32 = vmul.f32 %v2180_v30, %v2157_v63  ;;  %2844 = vmatpush.msra.mxu0 %v3709_v6 }
0x1208   :  { %v2196_v34 = vmul.f32 %v3602_v29, %v2191_v32  ;;  %2845 = vmatpush.msra.mxu0 %v3710_v13  ;;  %v3721_v13 = vld [vmem:[%s6198_s28] sm:$0xff] }
0x120a   :  { %v2201_v35 = vadd.f32 %v3603_v36, %v2196_v34  ;;  %2846 = vmatpush.msra.mxu0 %v3711_v26 }
0x120c   :  { %3425 = vmatmul.msk.f32.vlgmr.msra.gmra.mxu1 %vm1170_vm8, %v2201_v35  ;;  %3427 = vmatmul.msk.f32.vlgmr.msrb.gmra.mxu2 %vm1170_vm8, %v2201_v35 }
0x120d   :  { %2847 = vmatpush.msra.mxu0 %v3712_v28  ;;  %v3609_v28 = vld [vmem:[%s6225_s9] ss:$0 sm:$0xff] }
0x1267   :  { %v2571_v42 = vpop.f32.mrf.mxu2 }
0x1268   :  { %v2572_v44 = vadd.f32 %v3604_v37, %v2571_v42 }
0x126a   :  { %v2577_v8 = vadd.f32 %v2572_v44, %v5783_v46  ;;  %v3607_v44 = vld [vmem:[#allocation10] ss:$0 sm:$0xff] }
0x126c   :  { %v2581_v50 = vsel %vm1170_vm8, %v2577_v8, 0.0 }
0x126d   :  { %2582 = vadd.xlane.f32.xlu0 %v2581_v50 }
0x126f   :  { %v2574_v39 = vpop.f32.mrf.mxu2 }
0x1270   :  { %v2575_v52 = vadd.f32 %v3604_v37, %v2574_v39  ;;  %v3608_v39 = vld [vmem:[%s6222_s29] ss:$0 sm:$0xff] }
0x1272   :  { %v2578_v57 = vadd.f32 %v2575_v52, %v5788_v51 }
0x1274   :  { %v2584_v59 = vsel %vm1170_vm8, %v2578_v57, 0.0 }
0x1275   :  { %2585 = vadd.xlane.f32.xlu2 %v2584_v59  ;;  %2165 = vadd.xlane.f32.xlu0 %v2164_v11 }
0x12e0   :  { %v2583_v60 = vpop.xlane.xlu0 %2582 }
0x12e1   :  { %v2587_v61 = vmul.f32 %v2583_v60, %v5613_v5 }
0x12e3   :  { %v5911_v12 = vsub.f32 %v2577_v8, %v2587_v61  ;;  %v2703_v61 = vpop.f32.mrf.mxu1 }
0x12e5   :  { %v2591_v46 = vmul.f32 %v5911_v12, %v5911_v12 }
0x12e7   :  { %v2593_v62 = vsel %vm1170_vm8, %v2591_v46, 0.0 }
0x12e8   :  { %v2586_v1 = vpop.xlane.xlu2 %2585  ;;  %2594 = vadd.xlane.f32.xlu1 %v2593_v62  ;;  %v2166_v0 = vpop.xlane.xlu0 %2165 }
0x12e9   :  { %v2588_v51 = vmul.f32 %v2586_v1, %v5613_v5  ;;  %v2168_v2 = vmul.f32 %v2166_v0, %v5613_v5  ;;  %v2734_v1 = vpop.f32.mrf.mxu2  ;;  %v3605_v0 = vld [vmem:[%s6223_s23] ss:$0 sm:$0xff] }
0x12eb   :  { %v5918_v9 = vsub.f32 %v2578_v57, %v2588_v51  ;;  %v2170_v14 = vadd.f32 1e-05, %v2168_v2 }
0x12ed   :  { %3680 = vrsqrt.f32 %v2170_v14  ;;  %v2592_v10 = vmul.f32 %v5918_v9, %v5918_v9  ;;  %vm2187_vm3 = vweird.f32 %v2170_v14 }
0x12ef   :  { %v2596_v15 = vsel %vm1170_vm8, %v2592_v10, 0.0  ;;  %v3606_v10 = vld [vmem:[%s6224_s4] ss:$0 sm:$0xff] }
0x12f0   :  { %2597 = vadd.xlane.f32.xlu2 %v2596_v15  ;;  %v3714_v15 = vld [vmem:[%s6198_s28 + $0x38] sm:$0xff] }
0x12f3   :  { %v3681_v58 = vpop.eup %3680 }
0x12f4   :  { %v2182_v16 = vmul.f32 %v3681_v58, %v2170_v14  ;;  %vm2188_vm0 = vweird.f32 %v3681_v58  ;;  %v2704_v14 = vadd.f32 %v3605_v0, %v2703_v61 }
0x12f5   :  { %vm2189_vm4 = vmor %vm2187_vm3, %vm2188_vm0 }
0x12f6   :  { %v2183_v18 = vmul.f32 %v3681_v58, %v2182_v16  ;;  %v2735_v16 = vadd.f32 %v3606_v10, %v2734_v1  ;;  %v2744_v20 = vmul.f32 %v3717_v21, %v2704_v14  ;;  %v2742_v6 = vmul.f32 %v3719_v27, %v2704_v14  ;;  %v2891_v1 = vld [vmem:[%s6226_s25 + $0x10] sm:$0xff] }
0x12f8   :  { %v2184_v54 = vmul.f32 0.5, %v2183_v18  ;;  %v2752_v22 = vmul.f32 %v3717_v21, %v2735_v16 }
0x12fa   :  { %v2185_v63 = vsub.f32 1.5, %v2184_v54  ;;  %v3715_v54 = vld [vmem:[%s6198_s28 + $0x30] sm:$0xff] }
0x12fc   :  { %v2186_v47 = vmul.f32 %v3681_v58, %v2185_v63  ;;  %v2746_v63 = vmul.f32 %v3715_v54, %v2704_v14 }
0x12fe   :  { %v2190_v19 = vsel %vm2189_vm4, %v3681_v58, %v2186_v47 }
0x12ff   :  { %v2192_v55 = vmul.f32 %v2190_v19, %v2158_v49  ;;  %v3716_v19 = vld [vmem:[%s6198_s28 + $0x28] sm:$0xff]  ;;  %s6227_s28 = sld [smem:[#allocation102_spill]] }
0x1301   :  { %v2197_v17 = vmul.f32 %v3602_v29, %v2192_v55 }
0x1303   :  { %v2202_v56 = vadd.f32 %v3603_v36, %v2197_v17  ;;  %v3713_v36 = vld [vmem:[%s6199_s1] sm:$0xff]  ;;  %v2754_v17 = vmul.f32 %v3715_v54, %v2735_v16  ;;  %s6228_s1 = sld [smem:[#allocation118_spill]] }
0x1304   :  { %2848 = vmatpush.msra.mxu0 %v3713_v36 }
0x1305   :  { %3426 = vmatmul.msk.f32.gmra.mxu1 %vm1170_vm8, %v2202_v56  ;;  %3428 = vmatmul.msk.f32.gmra.mxu2 %vm1170_vm8, %v2202_v56  ;;  %v3610_v54 = vld [vmem:[%s6227_s28] ss:$0 sm:$0xff] }
0x135b   :  { %v2595_v24 = vpop.xlane.xlu1 %2594 }
0x135c   :  { %v2599_v4 = vmul.f32 %v2595_v24, %v5613_v5 }
0x135e   :  { %v2601_v31 = vadd.f32 1e-05, %v2599_v4  ;;  %v2750_v4 = vmul.f32 %v3719_v27, %v2735_v16 }
0x1360   :  { %3682 = vrsqrt.f32 %v2601_v31  ;;  %vm2609_vm6 = vweird.f32 %v2601_v31 }
0x1363   :  { %v2598_v7 = vpop.xlane.xlu2 %2597 }
0x1364   :  { %v2600_v33 = vmul.f32 %v2598_v7, %v5613_v5  ;;  %v2748_v7 = vmul.f32 %v3721_v13, %v2735_v16 }
0x1366   :  { %v3683_v29 = vpop.eup %3682  ;;  %v2602_v30 = vadd.f32 1e-05, %v2600_v33  ;;  %v2740_v33 = vmul.f32 %v3721_v13, %v2704_v14  ;;  %v2986_v13 = vld [vmem:[%s6228_s1 + $0x10] sm:$0xff] }
0x1367   :  { %v2604_v32 = vmul.f32 %v3683_v29, %v2601_v31  ;;  %vm2610_vm5 = vweird.f32 %v3683_v29 }
0x1368   :  { %3684 = vrsqrt.f32 %v2602_v30  ;;  %vm2611_vm10 = vmor %vm2609_vm6, %vm2610_vm5  ;;  %vm2619_vm12 = vweird.f32 %v2602_v30 }
0x1369   :  { %v2605_v34 = vmul.f32 %v3683_v29, %v2604_v32 }
0x136b   :  { %v2606_v35 = vmul.f32 0.5, %v2605_v34 }
0x136d   :  { %v2607_v37 = vsub.f32 1.5, %v2606_v35  ;;  %v2811_v35 = vld [vmem:[#allocation7] sm:$0xff] }
0x136e   :  { %v3685_v41 = vpop.eup %3684 }
0x136f   :  { %v2608_v42 = vmul.f32 %v3683_v29, %v2607_v37  ;;  %v2614_v43 = vmul.f32 %v3685_v41, %v2602_v30  ;;  %vm2620_vm11 = vweird.f32 %v3685_v41 }
0x1370   :  { %vm2621_vm13 = vmor %vm2619_vm12, %vm2620_vm11 }
0x1371   :  { %v2612_v8 = vsel %vm2611_vm10, %v3683_v29, %v2608_v42  ;;  %v2615_v49 = vmul.f32 %v3685_v41, %v2614_v43 }
0x1372   :  { %v2623_v50 = vmul.f32 %v2612_v8, %v5911_v12 }
0x1373   :  { %v2616_v52 = vmul.f32 0.5, %v2615_v49 }
0x1374   :  { %v2628_v53 = vmul.f32 %v3607_v44, %v2623_v50 }
0x1375   :  { %v2617_v57 = vsub.f32 1.5, %v2616_v52 }
0x1376   :  { %v5941_v59 = vadd.f32 %v3608_v39, %v2628_v53 }
0x1377   :  { %v2618_v11 = vmul.f32 %v3685_v41, %v2617_v57 }
0x1378   :  { %3423 = vmatmul.msk.f32.vlgmr.msrb.gmra.mxu0 %vm1170_vm8, %v5941_v59 }
0x1379   :  { %v2622_v60 = vsel %vm2621_vm13, %v3685_v41, %v2618_v11 }
0x137a   :  { %v2624_v12 = vmul.f32 %v2622_v60, %v5918_v9 }
0x137c   :  { %v2629_v46 = vmul.f32 %v3607_v44, %v2624_v12  ;;  %v2812_v44 = vld [vmem:[#allocation7 + $0x8] sm:$0xff] }
0x137e   :  { %v5946_v62 = vadd.f32 %v3608_v39, %v2629_v46  ;;  %v2892_v46 = vld [vmem:[%s6226_s25 + $0x18] sm:$0xff] }
0x137f   :  { %2915 = vmatpush.msra.mxu2 %v2892_v46  ;;  %v3612_v46 = vld [vmem:[#allocation12] ss:$0 sm:$0xff] }
0x1380   :  { %3424 = vmatmul.msk.f32.gmra.mxu0 %vm1170_vm8, %v5946_v62 }
0x1381   :  { %2916 = vmatpush.msra.mxu2 %v2891_v1 }
0x1382   :  { %v2706_v51 = vpop.f32.mrf.mxu1 }
0x1383   :  { %v2707_v2 = vadd.f32 %v3605_v0, %v2706_v51  ;;  %v2890_v0 = vld [vmem:[%s6226_s25 + $0x8] sm:$0xff]  ;;  %v2889_v51 = vld [vmem:[%s6226_s25] sm:$0xff] }
0x1384   :  { %2917 = vmatpush.msra.mxu2 %v2890_v0 }
0x1385   :  { %v2747_v58 = vmul.f32 %v3714_v15, %v2707_v2  ;;  %v2745_v55 = vmul.f32 %v3716_v19, %v2707_v2  ;;  %v2743_v24 = vmul.f32 %v3718_v23, %v2707_v2  ;;  %v2741_v26 = vmul.f32 %v3720_v25, %v2707_v2 }
0x1386   :  { %2918 = vmatpush.msra.mxu2 %v2889_v51 }
0x1387   :  { %3429 = vmatpush.xpose.msk.msra.mxu3 %vm1170_vm8, %v2747_v58 }
0x1388   :  { %v2737_v9 = vpop.f32.mrf.mxu2 }
0x1389   :  { %v2738_v18 = vadd.f32 %v3606_v10, %v2737_v9 }
0x138b   :  { %3430 = vmatpush.xpose.msk.msra.mxu3 %vm1170_vm8, %v2746_v63  ;;  %v2755_v47 = vmul.f32 %v3714_v15, %v2738_v18  ;;  %v2753_v56 = vmul.f32 %v3716_v19, %v2738_v18  ;;  %v2751_v3 = vmul.f32 %v3718_v23, %v2738_v18  ;;  %v2749_v31 = vmul.f32 %v3720_v25, %v2738_v18 }
0x138d   :  { %2874 = vmatpush.msrb.mxu1 %v2755_v47 }
0x138f   :  { %3431 = vmatpush.xpose.msk.msra.mxu3 %vm1170_vm8, %v2745_v55  ;;  %2875 = vmatpush.msrb.mxu1 %v2754_v17 }
0x1391   :  { %2876 = vmatpush.msrb.mxu1 %v2753_v56 }
0x1393   :  { %3432 = vmatpush.xpose.msk.msra.mxu3 %vm1170_vm8, %v2744_v20  ;;  %2877 = vmatpush.msrb.mxu1 %v2752_v22 }
0x1395   :  { %2878 = vmatpush.msrb.mxu1 %v2751_v3 }
0x1397   :  { %3433 = vmatpush.xpose.msk.msra.mxu3 %vm1170_vm8, %v2743_v24  ;;  %2879 = vmatpush.msrb.mxu1 %v2750_v4 }
0x1399   :  { %2880 = vmatpush.msrb.mxu1 %v2749_v31 }
0x139b   :  { %3434 = vmatpush.xpose.msk.msra.mxu3 %vm1170_vm8, %v2742_v6  ;;  %2881 = vmatpush.msrb.mxu1 %v2748_v7  ;;  %v2987_v6 = vld [vmem:[%s6228_s1 + $0x18] sm:$0xff]  ;;  %v2985_v7 = vld [vmem:[%s6228_s1 + $0x8] sm:$0xff] }
0x139c   :  { %3010 = vmatpush.msrb.mxu0 %v2987_v6 }
0x139e   :  { %3011 = vmatpush.msrb.mxu0 %v2986_v13 }
0x139f   :  { %3435 = vmatpush.xpose.msk.msra.mxu3 %vm1170_vm8, %v2741_v26  ;;  %v2984_v26 = vld [vmem:[%s6228_s1] sm:$0xff] }
0x13a0   :  { %3012 = vmatpush.msrb.mxu0 %v2985_v7 }
0x13a2   :  { %3013 = vmatpush.msrb.mxu0 %v2984_v26 }
0x13a3   :  { %3436 = vmatpush.xpose.msk.msra.mxu3 %vm1170_vm8, %v2740_v33 }
0x13f5   :  { %v2666_v29 = vpop.f32.mrf.mxu0 }
0x13f6   :  { %v2667_v30 = vadd.f32 %v3609_v28, %v2666_v29 }
0x13f8   :  { %3437 = vmatmul.msk.f32.vlgmr.msra.gmra.mxu3 %vm1170_vm8, %v2667_v30  ;;  %v3030_v30 = vld [vmem:[%s6229_s21 + $0x38] sm:$0xff] }
0x13f9   :  { %3049 = vmatpush.msra.mxu1 %v3030_v30 }
0x13fd   :  { %v2669_v32 = vpop.f32.mrf.mxu0 }
0x13fe   :  { %v2670_v36 = vadd.f32 %v3609_v28, %v2669_v32  ;;  %v3029_v32 = vld [vmem:[%s6229_s21 + $0x30] sm:$0xff] }
0x13ff   :  { %3050 = vmatpush.msra.mxu1 %v3029_v32 }
0x1400   :  { %3438 = vmatmul.msk.f32.gmra.mxu3 %vm1170_vm8, %v2670_v36  ;;  %v3028_v36 = vld [vmem:[%s6229_s21 + $0x28] sm:$0xff] }
0x1401   :  { %3051 = vmatpush.msra.mxu1 %v3028_v36 }
0x147b   :  { %v2803_v34 = vpop.f32.mrf.mxu3 }
0x147c   :  { %v2809_v37 = vmul.f32 0.35355338, %v2803_v34 }
0x147e   :  { %v2813_v41 = vadd.f32 %v2811_v35, %v2809_v37  ;;  %v3027_v37 = vld [vmem:[%s6229_s21 + $0x20] sm:$0xff] }
0x147f   :  { %3052 = vmatpush.msra.mxu1 %v3027_v37 }
0x1480   :  { %v2815_v42 = vsel %vm1345_vm9, %v2813_v41, -inf }
0x1481   :  { %2816 = vmax.xlane.f32.xlu0 %v2815_v42 }
0x1483   :  { %v2806_v43 = vpop.f32.mrf.mxu3 }
0x1484   :  { %v2810_v8 = vmul.f32 0.35355338, %v2806_v43  ;;  %v3026_v43 = vld [vmem:[%s6229_s21 + $0x18] sm:$0xff] }
0x1485   :  { %3053 = vmatpush.msra.mxu1 %v3026_v43 }
0x1486   :  { %v2814_v49 = vadd.f32 %v2812_v44, %v2810_v8  ;;  %v3025_v8 = vld [vmem:[%s6229_s21 + $0x10] sm:$0xff] }
0x1487   :  { %3054 = vmatpush.msra.mxu1 %v3025_v8 }
0x1488   :  { %v2818_v50 = vsel %vm1345_vm9, %v2814_v49, -inf }
0x1489   :  { %2819 = vmax.xlane.f32.xlu1 %v2818_v50 }
0x14f4   :  { %v2817_v39 = vpop.xlane.xlu0 %2816 }
0x14f5   :  { %v2821_v52 = vsub.f32 %v2813_v41, %v2817_v39 }
0x14f7   :  { %v2823_v53 = vmul.f32 1.442695, %v2821_v52 }
0x14f9   :  { %3686 = vpow2.f32 %v2823_v53 }
0x14fc   :  { %v2820_v57 = vpop.xlane.xlu1 %2819 }
0x14fd   :  { %v2822_v11 = vsub.f32 %v2814_v49, %v2820_v57 }
0x14ff   :  { %v3687_v60 = vpop.eup %3686  ;;  %v2825_v61 = vmul.f32 1.442695, %v2822_v11  ;;  %v3611_v11 = vld [vmem:[#allocation13] ss:$0 sm:$0xff] }
0x1500   :  { %3439 = vmatmul.msk.f32.vlgmr.msra.gmra.mxu0 %vm1345_vm9, %v3687_v60 }
0x1501   :  { %3688 = vpow2.f32 %v2825_v61 }
0x1507   :  { %v3689_v12 = vpop.eup %3688 }
0x1508   :  { %3440 = vmatmul.msk.f32.gmra.mxu0 %vm1345_vm9, %v3689_v12 }
0x157d   :  { %v2850_v2 = vpop.f32.mrf.mxu0 }
0x157e   :  { %3690 = vrcp.f32 %v2850_v2 }
0x1584   :  { %v3691_v14 = vpop.eup %3690 }
0x1585   :  { %v2858_v10 = vmul.f32 %v3691_v14, %v3687_v60  ;;  %v2853_v15 = vpop.f32.mrf.mxu0 }
0x1586   :  { %3692 = vrcp.f32 %v2853_v15 }
0x1587   :  { %3441 = vmatmul.msk.f32.vlgmr.msrb.gmra.mxu1 %vm1345_vm9, %v2858_v10 }
0x158c   :  { %v3693_v58 = vpop.eup %3692 }
0x158d   :  { %v2859_v9 = vmul.f32 %v3693_v58, %v3689_v12 }
0x158f   :  { %3442 = vmatmul.msk.f32.gmra.mxu1 %vm1345_vm9, %v2859_v9 }
0x1604   :  { %v2883_v16 = vpop.f32.mrf.mxu1 }
0x1605   :  { %3443 = vmatmul.msk.f32.vlgmr.msra.gmra.mxu2 %vm1170_vm8, %v2883_v16  ;;  %v3024_v16 = vld [vmem:[%s6229_s21 + $0x8] sm:$0xff] }
0x1606   :  { %3055 = vmatpush.msra.mxu1 %v3024_v16 }
0x160c   :  { %v2886_v18 = vpop.f32.mrf.mxu1 }
0x160d   :  { %3444 = vmatmul.msk.f32.gmra.mxu2 %vm1170_vm8, %v2886_v18  ;;  %v3023_v18 = vld [vmem:[%s6229_s21] sm:$0xff] }
0x160e   :  { %3056 = vmatpush.msra.mxu1 %v3023_v18 }
0x1688   :  { %v2920_v63 = vpop.f32.mrf.mxu2 }
0x1689   :  { %v2921_v47 = vadd.f32 %v3610_v54, %v2920_v63 }
0x168b   :  { %v2926_v19 = vadd.f32 %v2921_v47, %v5941_v59 }
0x168d   :  { %v2930_v55 = vsel %vm1170_vm8, %v2926_v19, 0.0 }
0x168e   :  { %2931 = vadd.xlane.f32.xlu2 %v2930_v55 }
0x1690   :  { %v2923_v17 = vpop.f32.mrf.mxu2 }
0x1691   :  { %v2924_v56 = vadd.f32 %v3610_v54, %v2923_v17  ;;  %v3613_v54 = vld [vmem:[%s6230_s7] ss:$0 sm:$0xff] }
0x1693   :  { %v2927_v21 = vadd.f32 %v2924_v56, %v5946_v62 }
0x1695   :  { %v2933_v20 = vsel %vm1170_vm8, %v2927_v21, 0.0 }
0x1696   :  { %2934 = vadd.xlane.f32.xlu0 %v2933_v20 }
0x1701   :  { %v2932_v22 = vpop.xlane.xlu2 %2931 }
0x1702   :  { %v2936_v23 = vmul.f32 %v2932_v22, %v5613_v5 }
0x1704   :  { %v2938_v3 = vsub.f32 %v2926_v19, %v2936_v23 }
0x1706   :  { %v2940_v24 = vmul.f32 %v2938_v3, %v2938_v3 }
0x1708   :  { %v2942_v59 = vsel %vm1170_vm8, %v2940_v24, 0.0 }
0x1709   :  { %2943 = vadd.xlane.f32.xlu1 %v2942_v59  ;;  %v2935_v27 = vpop.xlane.xlu0 %2934 }
0x170a   :  { %v2937_v4 = vmul.f32 %v2935_v27, %v5613_v5 }
0x170c   :  { %v2939_v25 = vsub.f32 %v2927_v21, %v2937_v4  ;;  %v3614_v21 = vld [vmem:[%s6231_s10] ss:$0 sm:$0xff] }
0x170e   :  { %v2941_v62 = vmul.f32 %v2939_v25, %v2939_v25 }
0x1710   :  { %v2945_v31 = vsel %vm1170_vm8, %v2941_v62, 0.0 }
0x1711   :  { %2946 = vadd.xlane.f32.xlu2 %v2945_v31 }
0x177c   :  { %v2944_v33 = vpop.xlane.xlu1 %2943 }
0x177d   :  { %v2948_v28 = vmul.f32 %v2944_v33, %v5613_v5 }
0x177f   :  { %v2950_v29 = vadd.f32 1e-05, %v2948_v28 }
0x1781   :  { %3694 = vrsqrt.f32 %v2950_v29  ;;  %vm2958_vm15 = vweird.f32 %v2950_v29 }
0x1784   :  { %v2947_v34 = vpop.xlane.xlu2 %2946 }
0x1785   :  { %v2949_v35 = vmul.f32 %v2947_v34, %v5613_v5 }
0x1787   :  { %v3695_v41 = vpop.eup %3694  ;;  %v2951_v42 = vadd.f32 1e-05, %v2949_v35 }
0x1788   :  { %v2953_v44 = vmul.f32 %v3695_v41, %v2950_v29  ;;  %vm2959_vm14 = vweird.f32 %v3695_v41 }
0x1789   :  { %3696 = vrsqrt.f32 %v2951_v42  ;;  %vm2960_vm1 = vmor %vm2958_vm15, %vm2959_vm14  ;;  %vm2968_vm0 = vweird.f32 %v2951_v42 }
0x178a   :  { %v2954_v49 = vmul.f32 %v3695_v41, %v2953_v44 }
0x178c   :  { %v2955_v50 = vmul.f32 0.5, %v2954_v49 }
0x178e   :  { %v2956_v39 = vsub.f32 1.5, %v2955_v50 }
0x178f   :  { %v3697_v52 = vpop.eup %3696 }
0x1790   :  { %v2957_v53 = vmul.f32 %v3695_v41, %v2956_v39  ;;  %v2963_v57 = vmul.f32 %v3697_v52, %v2951_v42  ;;  %vm2969_vm7 = vweird.f32 %v3697_v52 }
0x1791   :  { %vm2970_vm3 = vmor %vm2968_vm0, %vm2969_vm7 }
0x1792   :  { %v2961_v60 = vsel %vm2960_vm1, %v3695_v41, %v2957_v53  ;;  %v2964_v61 = vmul.f32 %v3697_v52, %v2963_v57 }
0x1793   :  { %v2972_v12 = vmul.f32 %v2961_v60, %v2938_v3  ;;  %v3616_v60 = vld [vmem:[#allocation15] ss:$0 sm:$0xff] }
0x1794   :  { %v2965_v1 = vmul.f32 0.5, %v2964_v61 }
0x1795   :  { %v2977_v0 = vmul.f32 %v3611_v11, %v2972_v12 }
0x1796   :  { %v2966_v51 = vsub.f32 1.5, %v2965_v1 }
0x1797   :  { %v2982_v2 = vadd.f32 %v3612_v46, %v2977_v0 }
0x1798   :  { %v2967_v14 = vmul.f32 %v3697_v52, %v2966_v51 }
0x1799   :  { %3445 = vmatmul.msk.f32.vlgmr.msrb.gmra.mxu0 %vm1170_vm8, %v2982_v2 }
0x179a   :  { %v2971_v10 = vsel %vm2970_vm3, %v3697_v52, %v2967_v14  ;;  %v3615_v52 = vld [vmem:[#allocation16] ss:$0 sm:$0xff] }
0x179b   :  { %v2973_v15 = vmul.f32 %v2971_v10, %v2939_v25 }
0x179d   :  { %v2978_v58 = vmul.f32 %v3611_v11, %v2973_v15 }
0x179f   :  { %v2983_v9 = vadd.f32 %v3612_v46, %v2978_v58 }
0x17a1   :  { %3446 = vmatmul.msk.f32.gmra.mxu0 %vm1170_vm8, %v2983_v9 }
0x1816   :  { %v3015_v63 = vpop.f32.mrf.mxu0 }
0x1817   :  { %v3016_v47 = vadd.f32 %v3613_v54, %v3015_v63 }
0x1819   :  { %v3021_v19 = vmax.f32 %v3016_v47, 0.0 }
0x181b   :  { %3447 = vmatmul.msk.f32.vlgmr.msra.gmra.mxu1 %vm1345_vm9, %v3021_v19 }
0x181e   :  { %v3018_v55 = vpop.f32.mrf.mxu0 }
0x181f   :  { %v3019_v17 = vadd.f32 %v3613_v54, %v3018_v55 }
0x1821   :  { %v3022_v56 = vmax.f32 %v3019_v17, 0.0 }
0x1823   :  { %3448 = vmatmul.msk.f32.gmra.mxu1 %vm1345_vm9, %v3022_v56 }
0x1898   :  { %v3058_v20 = vpop.f32.mrf.mxu1 }
0x1899   :  { %v3059_v22 = vadd.f32 %v3614_v21, %v3058_v20  ;;  %v3180_v20 = vld [vmem:[%s5268_s13 + $0x10] sm:$0xff] }
0x189b   :  { %v3064_v23 = vadd.f32 %v3059_v22, %v2982_v2  ;;  %v3179_v22 = vld [vmem:[%s5268_s13 + $0x8] sm:$0xff] }
0x189d   :  { %v3068_v3 = vsel %vm1170_vm8, %v3064_v23, 0.0 }
0x189e   :  { %3069 = vadd.xlane.f32.xlu0 %v3068_v3 }
0x18a0   :  { %v3061_v24 = vpop.f32.mrf.mxu1 }
0x18a1   :  { %v3062_v59 = vadd.f32 %v3614_v21, %v3061_v24  ;;  %v3181_v21 = vld [vmem:[%s5268_s13 + $0x18] sm:$0xff] }
0x18a2   :  { %3204 = vmatpush.msrb.mxu2 %v3181_v21 }
0x18a3   :  { %v3065_v27 = vadd.f32 %v3062_v59, %v2983_v9 }
0x18a4   :  { %3205 = vmatpush.msrb.mxu2 %v3180_v20 }
0x18a5   :  { %v3071_v4 = vsel %vm1170_vm8, %v3065_v27, 0.0 }
0x18a6   :  { %3072 = vadd.xlane.f32.xlu1 %v3071_v4  ;;  %3206 = vmatpush.msrb.mxu2 %v3179_v22 }
0x1911   :  { %v3070_v25 = vpop.xlane.xlu0 %3069 }
0x1912   :  { %v3074_v62 = vmul.f32 %v3070_v25, %v5613_v5 }
0x1914   :  { %v3076_v31 = vsub.f32 %v3064_v23, %v3074_v62  ;;  %v3178_v23 = vld [vmem:[%s5268_s13] sm:$0xff] }
0x1915   :  { %3207 = vmatpush.msrb.mxu2 %v3178_v23 }
0x1916   :  { %v3078_v6 = vmul.f32 %v3076_v31, %v3076_v31 }
0x1918   :  { %v3080_v13 = vsel %vm1170_vm8, %v3078_v6, 0.0 }
0x1919   :  { %v3073_v7 = vpop.xlane.xlu1 %3072  ;;  %3081 = vadd.xlane.f32.xlu2 %v3080_v13 }
0x191a   :  { %v3075_v26 = vmul.f32 %v3073_v7, %v5613_v5 }
0x191c   :  { %v3077_v33 = vsub.f32 %v3065_v27, %v3075_v26 }
0x191e   :  { %v3079_v28 = vmul.f32 %v3077_v33, %v3077_v33 }
0x1920   :  { %v3083_v29 = vsel %vm1170_vm8, %v3079_v28, 0.0 }
0x1921   :  { %3084 = vadd.xlane.f32.xlu0 %v3083_v29  ;;  %v3617_v29 = vld [vmem:[#allocation25] ss:$0 sm:$0xff] }
0x198c   :  { %v3082_v30 = vpop.xlane.xlu2 %3081 }
0x198d   :  { %v3086_v32 = vmul.f32 %v3082_v30, %v5613_v5 }
0x198f   :  { %v3088_v36 = vadd.f32 1e-05, %v3086_v32 }
0x1991   :  { %3698 = vrsqrt.f32 %v3088_v36  ;;  %vm3096_vm4 = vweird.f32 %v3088_v36 }
0x1994   :  { %v3085_v34 = vpop.xlane.xlu0 %3084 }
0x1995   :  { %v3087_v35 = vmul.f32 %v3085_v34, %v5613_v5  ;;  %v3618_v34 = vld [vmem:[#allocation24] ss:$0 sm:$0xff] }
0x1997   :  { %v3699_v37 = vpop.eup %3698  ;;  %v3089_v41 = vadd.f32 1e-05, %v3087_v35 }
0x1998   :  { %v3091_v42 = vmul.f32 %v3699_v37, %v3088_v36  ;;  %vm3097_vm9 = vweird.f32 %v3699_v37 }
0x1999   :  { %3700 = vrsqrt.f32 %v3089_v41  ;;  %vm3098_vm5 = vmor %vm3096_vm4, %vm3097_vm9  ;;  %vm3106_vm10 = vweird.f32 %v3089_v41 }
0x199a   :  { %v3092_v43 = vmul.f32 %v3699_v37, %v3091_v42 }
0x199c   :  { %v3093_v44 = vmul.f32 0.5, %v3092_v43 }
0x199e   :  { %v3094_v8 = vsub.f32 1.5, %v3093_v44 }
0x199f   :  { %v3701_v49 = vpop.eup %3700 }
0x19a0   :  { %v3095_v50 = vmul.f32 %v3699_v37, %v3094_v8  ;;  %v3101_v39 = vmul.f32 %v3701_v49, %v3089_v41  ;;  %vm3107_vm6 = vweird.f32 %v3701_v49 }
0x19a1   :  { %vm3108_vm11 = vmor %vm3106_vm10, %vm3107_vm6 }
0x19a2   :  { %v3102_v53 = vmul.f32 %v3701_v49, %v3101_v39  ;;  %v3099_v57 = vsel %vm3098_vm5, %v3699_v37, %v3095_v50  ;;  %v3619_v50 = vld [vmem:[#allocation61] ss:$0 sm:$0xff] }
0x19a3   :  { %v3110_v11 = vmul.f32 %v3099_v57, %v3076_v31 }
0x19a4   :  { %v3103_v61 = vmul.f32 0.5, %v3102_v53 }
0x19a5   :  { %v3115_v12 = vmul.f32 %v3615_v52, %v3110_v11 }
0x19a6   :  { %v3104_v46 = vsub.f32 1.5, %v3103_v61 }
0x19a7   :  { %v3120_v1 = vadd.f32 %v3616_v60, %v3115_v12 }
0x19a8   :  { %v3105_v0 = vmul.f32 %v3701_v49, %v3104_v46 }
0x19a9   :  { %v3124_v51 = vsel %vm1170_vm8, %v3120_v1, 0.0 }
0x19aa   :  { %3125 = vadd.xlane.f32.xlu1 %v3124_v51  ;;  %v3109_v2 = vsel %vm3108_vm11, %v3701_v49, %v3105_v0 }
0x19ab   :  { %v3111_v14 = vmul.f32 %v3109_v2, %v3077_v33 }
0x19ad   :  { %v3116_v10 = vmul.f32 %v3615_v52, %v3111_v14 }
0x19af   :  { %v3121_v15 = vadd.f32 %v3616_v60, %v3116_v10 }
0x19b1   :  { %v3127_v58 = vsel %vm1170_vm8, %v3121_v15, 0.0 }
0x19b2   :  { %3128 = vadd.xlane.f32.xlu2 %v3127_v58 }
0x1a1d   :  { %v3126_v9 = vpop.xlane.xlu1 %3125 }
0x1a1e   :  { %v3130_v16 = vmul.f32 %v3126_v9, %v5613_v5 }
0x1a20   :  { %v3132_v18 = vsub.f32 %v3120_v1, %v3130_v16 }
0x1a22   :  { %v3134_v54 = vmul.f32 %v3132_v18, %v3132_v18 }
0x1a24   :  { %v3136_v63 = vsel %vm1170_vm8, %v3134_v54, 0.0 }
0x1a25   :  { %3137 = vadd.xlane.f32.xlu0 %v3136_v63  ;;  %v3129_v47 = vpop.xlane.xlu2 %3128 }
0x1a26   :  { %v3131_v19 = vmul.f32 %v3129_v47, %v5613_v5 }
0x1a28   :  { %v3133_v55 = vsub.f32 %v3121_v15, %v3131_v19 }
0x1a2a   :  { %v3135_v17 = vmul.f32 %v3133_v55, %v3133_v55 }
0x1a2c   :  { %v3139_v56 = vsel %vm1170_vm8, %v3135_v17, 0.0 }
0x1a2d   :  { %3140 = vadd.xlane.f32.xlu1 %v3139_v56 }
0x1a98   :  { %v3138_v3 = vpop.xlane.xlu0 %3137 }
0x1a99   :  { %v3142_v24 = vmul.f32 %v3138_v3, %v5613_v5 }
0x1a9b   :  { %v3144_v59 = vadd.f32 1e-05, %v3142_v24 }
0x1a9d   :  { %3702 = vrsqrt.f32 %v3144_v59  ;;  %vm3152_vm13 = vweird.f32 %v3144_v59 }
0x1aa0   :  { %v3141_v27 = vpop.xlane.xlu1 %3140 }
0x1aa1   :  { %v3143_v4 = vmul.f32 %v3141_v27, %v5613_v5 }
0x1aa3   :  { %v3703_v25 = vpop.eup %3702  ;;  %v3145_v62 = vadd.f32 1e-05, %v3143_v4 }
0x1aa4   :  { %v3147_v31 = vmul.f32 %v3703_v25, %v3144_v59  ;;  %vm3153_vm12 = vweird.f32 %v3703_v25 }
0x1aa5   :  { %3704 = vrsqrt.f32 %v3145_v62  ;;  %vm3154_vm14 = vmor %vm3152_vm13, %vm3153_vm12  ;;  %vm3162_vm1 = vweird.f32 %v3145_v62 }
0x1aa6   :  { %v3148_v6 = vmul.f32 %v3703_v25, %v3147_v31 }
0x1aa8   :  { %v3149_v13 = vmul.f32 0.5, %v3148_v6 }
0x1aaa   :  { %v3150_v7 = vsub.f32 1.5, %v3149_v13 }
0x1aab   :  { %v3705_v26 = vpop.eup %3704 }
0x1aac   :  { %v3151_v33 = vmul.f32 %v3703_v25, %v3150_v7  ;;  %v3157_v28 = vmul.f32 %v3705_v26, %v3145_v62  ;;  %vm3163_vm15 = vweird.f32 %v3705_v26 }
0x1aad   :  { %vm3164_vm7 = vmor %vm3162_vm1, %vm3163_vm15 }
0x1aae   :  { %v3155_v30 = vsel %vm3154_vm14, %v3703_v25, %v3151_v33  ;;  %v3158_v32 = vmul.f32 %v3705_v26, %v3157_v28 }
0x1aaf   :  { %v3166_v36 = vmul.f32 %v3155_v30, %v3132_v18 }
0x1ab0   :  { %v3159_v35 = vmul.f32 0.5, %v3158_v32 }
0x1ab1   :  { %v3171_v5 = vmul.f32 %v3617_v29, %v3166_v36 }
0x1ab2   :  { %v3160_v37 = vsub.f32 1.5, %v3159_v35 }
0x1ab3   :  { %v3176_v41 = vadd.f32 %v3618_v34, %v3171_v5 }
0x1ab4   :  { %v3161_v42 = vmul.f32 %v3705_v26, %v3160_v37 }
0x1ab5   :  { %3449 = vmatmul.msk.f32.vlgmr.msrb.gmra.mxu2 %vm1170_vm8, %v3176_v41 }
0x1ab6   :  { %v3165_v43 = vsel %vm3164_vm7, %v3705_v26, %v3161_v42 }
0x1ab7   :  { %v3167_v44 = vmul.f32 %v3165_v43, %v3133_v55 }
0x1ab9   :  { %v3172_v8 = vmul.f32 %v3617_v29, %v3167_v44 }
0x1abb   :  { %v3177_v49 = vadd.f32 %v3618_v34, %v3172_v8 }
0x1abd   :  { %3450 = vmatmul.msk.f32.gmra.mxu2 %vm1170_vm8, %v3177_v49 }
0x1b38   :  { %v3209_v39 = vpop.f32.mrf.mxu2 }
0x1b39   :  { %v3210_v52 = vadd.f32 %v3619_v50, %v3209_v39 }
0x1b3b   :  { %v3215_v53 = vmul.f32 %v3210_v52, %v5738_v38 }
0x1b3d   :  { %v3217_v57 = vadd.f32 %v3215_v53, %v5540_v40 }
0x1b3f   :  { %3219 = vst.msk [vmem:[%s5273_s3] sm:$0xff] %vm1091_vm2, %v3217_v57 }
0x1b40   :  { %v3212_v11 = vpop.f32.mrf.mxu2 }
0x1b41   :  { %v3213_v60 = vadd.f32 %v3619_v50, %v3212_v11 }
0x1b43   :  { %v3216_v61 = vmul.f32 %v3213_v60, %v5746_v48 }
0x1b45   :  { %v3218_v12 = vadd.f32 %v3216_v61, %v5548_v45 }
0x1b47   :  { %3220 = vst.msk [vmem:[%s5273_s3 + $0x8] sm:$0xff] %vm1091_vm2, %v3218_v12 }
0x1b48   :  { %3225 = vsyncpa [#allocation3], 1 }
0x1b49   :  { %3226 = vsyncpa [#allocation5], 1 }
0x1b4a   :  { %3227 = vsyncpa [#allocation8], 1 }
0x1b4b   :  { %3228 = vsyncpa [#allocation11], 1 }
0x1b4c   :  { %3229 = vsyncpa [#allocation14], 1 }
0x1b4d   :  { %3230 = vsyncpa [#allocation17], 1 }
0x1b4e   :  { %3231 = vsyncpa [#allocation20], 1 }
0x1b4f   :  { %3232 = vsyncpa [#allocation23], 1 }
0x1b50   :  { %3233 = vsyncpa [#allocation26], 1 }
0x1b51   :  { %3234 = vsyncpa [#allocation29], 1 }
0x1b52   :  { %3235 = vsyncpa [#allocation32], 1 }
0x1b53   :  { %3236 = vsyncpa [#allocation35], 1 }
0x1b54   :  { %3237 = vsyncpa [#allocation38], 1 }
0x1b55   :  { %3238 = vsyncpa [#allocation41], 1 }
0x1b56   :  { %3239 = vsyncpa [#allocation44], 1 }
0x1b57   :  { %3240 = vsyncpa [#allocation47], 1 }
0x1b58   :  { %3241 = vsyncpa [#allocation50], 1 }
0x1b59   :  { %3242 = vsyncpa [#allocation53], 1 }
0x1b5a   :  { %3243 = vsyncpa [#allocation56], 1 }
0x1b5b   :  { %3244 = vsyncpa [#allocation59], 1 }
0x1b5c   :  { %3245 = vsyncpa [#allocation62], 1 }

</bundles_post_ra>
